<compile_context>
chip_gen: v7x
topology: tpu7x:2x2x1
jax: 0.10.0
libtpu: 0.0.40
codegen_flags: <defaults>
</compile_context>

<pallas_src>
import functools
import math

import jax
import jax.numpy as jnp
from jax import lax
from jax.experimental import pallas as pl
from jax.experimental.pallas import tpu as pltpu

BN_EPS = 1e-5


# ----------------------------- Pallas kernel ------------------------------- #

def _double_conv_kernel(x_ref, w1_ref, sh1_ref, w2_ref, sh2_ref, o_ref, xpad_ref,
                        *, H, W, W_h):
    """Fused (conv3x3 pad=1 no-bias -> BN(eval) -> ReLU) x 2 for one batch element.

    w1_ref / w2_ref already carry the folded BN scale; sh*_ref are the per-channel shifts.
    xpad_ref is a (H+4, W+16, Cin) VMEM scratch used to build the zero halo in-kernel.
    """
    He = H + 2                                    # extended rows of the intermediate
    Cin = x_ref.shape[-1]
    Cmid = w1_ref.shape[-1]
    Cout = w2_ref.shape[-1]

    # ---- build zero-padded input halo in VMEM (no HBM pad round trip) -------------- #
    # Image lands at rows [2, 2+H), cols [8, 8+W): sublane-aligned interior store.
    xpad_ref[...] = jnp.zeros_like(xpad_ref)
    xpad_ref[2:2 + H, 8:8 + W, :] = x_ref[0].astype(xpad_ref.dtype)
    x = xpad_ref[...]                             # (H+4, W+16, Cin), zero halo

    # ---- stage 1: conv1 evaluated on the (He, W_h) extended grid ------------------- #
    # Extended output (r, c) corresponds to image coord (r-1, c-1); tap (ky, kx) reads
    # xpad[r+ky, c+kx+6].  Static taps -> unrolled, 9 MXU matmuls in f32.
    acc1 = jnp.zeros((He * W_h, Cmid), jnp.float32)
    for ky in range(3):
        for kx in range(3):
            patch = x[ky:ky + He, kx + 6:kx + 6 + W_h, :].reshape(He * W_h, Cin)
            acc1 = acc1 + jnp.dot(patch, w1_ref[ky * 3 + kx],
                                  preferred_element_type=jnp.float32)
    h = jnp.maximum(acc1 + sh1_ref[...], 0.0)     # BN shift (scale already in weights) + ReLU
    h = h.reshape(He, W_h, Cmid)

    # Zero everything outside the true H x W window: rows/cols 0 and H+1 / W+1 become the
    # zero padding stage 2 needs; columns > W+1 are lane-alignment slack.
    row = lax.broadcasted_iota(jnp.int32, (He, W_h, Cmid), 0)
    col = lax.broadcasted_iota(jnp.int32, (He, W_h, Cmid), 1)
    valid = (row >= 1) & (row <= H) & (col >= 1) & (col <= W)
    h = jnp.where(valid, h, 0.0)                  # padded intermediate, stays in VMEM/vregs

    # ---- stage 2: conv2 on the padded intermediate, output H x W ------------------- #
    acc2 = jnp.zeros((H * W, Cout), jnp.float32)
    for ky in range(3):
        for kx in range(3):
            patch = h[ky:ky + H, kx:kx + W, :].reshape(H * W, Cmid)
            acc2 = acc2 + jnp.dot(patch, w2_ref[ky * 3 + kx],
                                  preferred_element_type=jnp.float32)
    y = jnp.maximum(acc2 + sh2_ref[...], 0.0)     # BN shift + ReLU
    o_ref[0] = y.reshape(H, W, Cout).astype(o_ref.dtype)


# ------------------------------ Pallas wrapper ------------------------------ #

def double_conv(x, w1, sc1, sh1, w2, sc2, sh2):
    """x: (N, H, W, Cin) NHWC; w*: (9, Cin, Cout); sc*/sh*: (C,). Returns (N, H, W, Cout)."""
    N, H, W, Cin = x.shape
    Cmid = w1.shape[-1]
    Cout = w2.shape[-1]
    assert W % 8 == 0, "W must be a multiple of 8 (sublane tiling of in-kernel reshapes)"

    W_h = W + 8                                   # extended width: multiple of 8, >= W + 2

    # Fold the eval-mode BN scale into the conv weights once (tiny tensors -> negligible
    # wrapper cost); the kernel then only adds the per-channel shift.  bias=False in module.
    w1s = (w1 * sc1[None, None, :]).astype(jnp.float32)
    w2s = (w2 * sc2[None, None, :]).astype(jnp.float32)

    kernel = functools.partial(_double_conv_kernel, H=H, W=W, W_h=W_h)
    return pl.pallas_call(
        kernel,
        out_shape=jax.ShapeDtypeStruct((N, H, W, Cout), x.dtype),
        grid=(N,),
        in_specs=[
            pl.BlockSpec((1, H, W, Cin), lambda n: (n, 0, 0, 0)),
            pl.BlockSpec((9, Cin, Cmid), lambda n: (0, 0, 0)),
            pl.BlockSpec((1, Cmid), lambda n: (0, 0)),
            pl.BlockSpec((9, Cmid, Cout), lambda n: (0, 0, 0)),
            pl.BlockSpec((1, Cout), lambda n: (0, 0)),
        ],
        out_specs=pl.BlockSpec((1, H, W, Cout), lambda n: (n, 0, 0, 0)),
        scratch_shapes=[pltpu.VMEM((H + 4, W + 16, Cin), jnp.float32)],
        compiler_params=pltpu.CompilerParams(dimension_semantics=("parallel",)),
    )(x, w1s, sh1.reshape(1, Cmid), w2s, sh2.reshape(1, Cout))


# -------------------------- parameters & forward ---------------------------- #

def init_double_conv_params(key, in_channels, out_channels, mid_channels=None):
    if mid_channels is None:
        mid_channels = out_channels
    keys = iter(jax.random.split(key, 8))

    def conv_w(k, cin, cout):
        fan = cin * 9
        return jax.random.normal(k, (9, cin, cout), jnp.float32) / math.sqrt(fan)

    def bn(k, c):                                 # eval-mode BN folded to scale/shift
        k1, k2, k3, k4 = jax.random.split(k, 4)
        gamma = 1.0 + 0.1 * jax.random.normal(k1, (c,), jnp.float32)
        beta = 0.1 * jax.random.normal(k2, (c,), jnp.float32)
        mean = 0.1 * jax.random.normal(k3, (c,), jnp.float32)
        var = 1.0 + 0.1 * jnp.abs(jax.random.normal(k4, (c,), jnp.float32))
        scale = gamma / jnp.sqrt(var + BN_EPS)
        shift = beta - mean * scale
        return scale, shift

    p = {}
    p["w1"] = conv_w(next(keys), in_channels, mid_channels)
    p["sc1"], p["sh1"] = bn(next(keys), mid_channels)
    p["w2"] = conv_w(next(keys), mid_channels, out_channels)
    p["sc2"], p["sh2"] = bn(next(keys), out_channels)
    return p


def double_conv_forward(x, params):
    return double_conv(x, params["w1"], params["sc1"], params["sh1"],
                       params["w2"], params["sc2"], params["sh2"])


# ------------------------------ pure-JAX reference -------------------------- #

def _ref_conv_bn_relu(x, w, scale, shift):
    Cin, Cout = w.shape[1], w.shape[2]
    w4 = w.reshape(3, 3, Cin, Cout)
    y = lax.conv_general_dilated(x, w4, (1, 1), [(1, 1), (1, 1)],
                                 dimension_numbers=("NHWC", "HWIO", "NHWC"),
                                 precision=lax.Precision.HIGHEST)
    return jnp.maximum(y * scale + shift, 0.0)


def double_conv_reference(x, params):
    h = _ref_conv_bn_relu(x, params["w1"], params["sc1"], params["sh1"])
    return _ref_conv_bn_relu(h, params["w2"], params["sc2"], params["sh2"])


# ----------------------------------- main ----------------------------------- #

if __name__ == "__main__":
    B, C_IN, H, W = 2, 4, 16, 16
    C_MID, C_OUT = 16, 32

    key = jax.random.PRNGKey(0)
    k_x, k_p = jax.random.split(key)
    x_nchw = jax.random.normal(k_x, (B, C_IN, H, W), jnp.float32)   # PyTorch-style input
    x = jnp.transpose(x_nchw, (0, 2, 3, 1))                         # -> NHWC for the kernel

    params = init_double_conv_params(k_p, C_IN, C_OUT, C_MID)

    y = jax.block_until_ready(double_conv_forward(x, params))
    assert y.shape == (B, H, W, C_OUT), y.shape
    assert bool(jnp.all(jnp.isfinite(y)))

    y_ref = jax.block_until_ready(double_conv_reference(x, params))
    assert bool(jnp.allclose(y, y_ref, rtol=1e-2, atol=1e-2)), (
        float(jnp.max(jnp.abs(y - y_ref))))

    print("KERNEL_OK")
</pallas_src>

<mosaic_0001>
module attributes {stable_mosaic.version = 11 : i64} {
  func.func @_double_conv_kernel(%arg0: i32, %arg1: memref<1x16x16x4xf32, #tpu.memory_space<vmem>>, %arg2: memref<9x4x16xf32, #tpu.memory_space<vmem>>, %arg3: memref<1x16xf32, #tpu.memory_space<vmem>>, %arg4: memref<9x16x32xf32, #tpu.memory_space<vmem>>, %arg5: memref<1x32xf32, #tpu.memory_space<vmem>>, %arg6: memref<1x16x16x32xf32, #tpu.memory_space<vmem>>, %arg7: memref<20x32x4xf32, #tpu.memory_space<vmem>>) attributes {dimension_semantics = [#tpu.dimension_semantics<parallel>], iteration_bounds = array<i64: 2>, scalar_prefetch = 0 : i64, scratch_operands = 1 : i64, tpu.core_type = #tpu.core_type<tc>, window_params = [{transform_indices = @transform_0, window_bounds = array<i64: 1, 16, 16, 4>}, {pipeline_mode = #tpu.pipeline_mode<synchronous>, transform_indices = @transform_1, window_bounds = array<i64: 9, 4, 16>}, {pipeline_mode = #tpu.pipeline_mode<synchronous>, transform_indices = @transform_2, window_bounds = array<i64: 1, 16>}, {pipeline_mode = #tpu.pipeline_mode<synchronous>, transform_indices = @transform_3, window_bounds = array<i64: 9, 16, 32>}, {pipeline_mode = #tpu.pipeline_mode<synchronous>, transform_indices = @transform_4, window_bounds = array<i64: 1, 32>}, {transform_indices = @transform_5, window_bounds = array<i64: 1, 16, 16, 32>}]} {
    %cst = arith.constant 0.000000e+00 : f32
    %0 = vector.broadcast %cst : f32 to vector<20x32x4xf32>
    %c0 = arith.constant 0 : index
    %c0_0 = arith.constant 0 : index
    %c0_1 = arith.constant 0 : index
    %1 = vector.load %arg7[%c0, %c0_0, %c0_1] : memref<20x32x4xf32, #tpu.memory_space<vmem>>, vector<20x32x4xf32>
    tpu.vector_store %arg7[%c0, %c0_0, %c0_1], %0 {strides = array<i32>} : memref<20x32x4xf32, #tpu.memory_space<vmem>>, vector<20x32x4xf32>,
    %c0_2 = arith.constant 0 : index
    %c0_3 = arith.constant 0 : index
    %c0_4 = arith.constant 0 : index
    %c0_5 = arith.constant 0 : index
    %2 = vector.load %arg1[%c0_2, %c0_3, %c0_4, %c0_5] : memref<1x16x16x4xf32, #tpu.memory_space<vmem>>, vector<1x16x16x4xf32>
    %3 = vector.shape_cast %2 : vector<1x16x16x4xf32> to vector<16x16x4xf32>
    %c2 = arith.constant 2 : index
    %c8 = arith.constant 8 : index
    %c0_6 = arith.constant 0 : index
    %4 = vector.load %arg7[%c2, %c8, %c0_6] : memref<20x32x4xf32, #tpu.memory_space<vmem>>, vector<16x16x4xf32>
    tpu.vector_store %arg7[%c2, %c8, %c0_6], %3 {strides = array<i32>} : memref<20x32x4xf32, #tpu.memory_space<vmem>>, vector<16x16x4xf32>,
    %c0_7 = arith.constant 0 : index
    %c0_8 = arith.constant 0 : index
    %c0_9 = arith.constant 0 : index
    %5 = vector.load %arg7[%c0_7, %c0_8, %c0_9] : memref<20x32x4xf32, #tpu.memory_space<vmem>>, vector<20x32x4xf32>
    %cst_10 = arith.constant 0.000000e+00 : f32
    %6 = vector.broadcast %cst_10 : f32 to vector<432x16xf32>
    %7 = vector.extract_strided_slice %5 {offsets = [0, 6, 0], sizes = [18, 24, 4], strides = [1, 1, 1]} : vector<20x32x4xf32> to vector<18x24x4xf32>
    %8 = vector.shape_cast %7 : vector<18x24x4xf32> to vector<432x4xf32>
    %c0_11 = arith.constant 0 : index
    %c0_12 = arith.constant 0 : index
    %c0_13 = arith.constant 0 : index
    %9 = vector.load %arg2[%c0_11, %c0_12, %c0_13] : memref<9x4x16xf32, #tpu.memory_space<vmem>>, vector<1x4x16xf32>
    %10 = vector.shape_cast %9 : vector<1x4x16xf32> to vector<4x16xf32>
    %cst_14 = arith.constant dense<0.000000e+00> : vector<432x16xf32>
    %11 = tpu.matmul %8, %10, %cst_14 {dimension_numbers = #tpu.dot_dimension_numbers<[1], [0], [0], [1], [0, 0, 1, 1], [], []>} : vector<432x4xf32>, vector<4x16xf32>, vector<432x16xf32> -> vector<432x16xf32>
    %12 = arith.addf %6, %11 : vector<432x16xf32>
    %13 = vector.extract_strided_slice %5 {offsets = [0, 7, 0], sizes = [18, 24, 4], strides = [1, 1, 1]} : vector<20x32x4xf32> to vector<18x24x4xf32>
    %14 = vector.shape_cast %13 : vector<18x24x4xf32> to vector<432x4xf32>
    %c1 = arith.constant 1 : index
    %c0_15 = arith.constant 0 : index
    %c0_16 = arith.constant 0 : index
    %15 = vector.load %arg2[%c1, %c0_15, %c0_16] : memref<9x4x16xf32, #tpu.memory_space<vmem>>, vector<1x4x16xf32>
    %16 = vector.shape_cast %15 : vector<1x4x16xf32> to vector<4x16xf32>
    %cst_17 = arith.constant dense<0.000000e+00> : vector<432x16xf32>
    %17 = tpu.matmul %14, %16, %cst_17 {dimension_numbers = #tpu.dot_dimension_numbers<[1], [0], [0], [1], [0, 0, 1, 1], [], []>} : vector<432x4xf32>, vector<4x16xf32>, vector<432x16xf32> -> vector<432x16xf32>
    %18 = arith.addf %12, %17 : vector<432x16xf32>
    %19 = vector.extract_strided_slice %5 {offsets = [0, 8, 0], sizes = [18, 24, 4], strides = [1, 1, 1]} : vector<20x32x4xf32> to vector<18x24x4xf32>
    %20 = vector.shape_cast %19 : vector<18x24x4xf32> to vector<432x4xf32>
    %c2_18 = arith.constant 2 : index
    %c0_19 = arith.constant 0 : index
    %c0_20 = arith.constant 0 : index
    %21 = vector.load %arg2[%c2_18, %c0_19, %c0_20] : memref<9x4x16xf32, #tpu.memory_space<vmem>>, vector<1x4x16xf32>
    %22 = vector.shape_cast %21 : vector<1x4x16xf32> to vector<4x16xf32>
    %cst_21 = arith.constant dense<0.000000e+00> : vector<432x16xf32>
    %23 = tpu.matmul %20, %22, %cst_21 {dimension_numbers = #tpu.dot_dimension_numbers<[1], [0], [0], [1], [0, 0, 1, 1], [], []>} : vector<432x4xf32>, vector<4x16xf32>, vector<432x16xf32> -> vector<432x16xf32>
    %24 = arith.addf %18, %23 : vector<432x16xf32>
    %25 = vector.extract_strided_slice %5 {offsets = [1, 6, 0], sizes = [18, 24, 4], strides = [1, 1, 1]} : vector<20x32x4xf32> to vector<18x24x4xf32>
    %26 = vector.shape_cast %25 : vector<18x24x4xf32> to vector<432x4xf32>
    %c3 = arith.constant 3 : index
    %c0_22 = arith.constant 0 : index
    %c0_23 = arith.constant 0 : index
    %27 = vector.load %arg2[%c3, %c0_22, %c0_23] : memref<9x4x16xf32, #tpu.memory_space<vmem>>, vector<1x4x16xf32>
    %28 = vector.shape_cast %27 : vector<1x4x16xf32> to vector<4x16xf32>
    %cst_24 = arith.constant dense<0.000000e+00> : vector<432x16xf32>
    %29 = tpu.matmul %26, %28, %cst_24 {dimension_numbers = #tpu.dot_dimension_numbers<[1], [0], [0], [1], [0, 0, 1, 1], [], []>} : vector<432x4xf32>, vector<4x16xf32>, vector<432x16xf32> -> vector<432x16xf32>
    %30 = arith.addf %24, %29 : vector<432x16xf32>
    %31 = vector.extract_strided_slice %5 {offsets = [1, 7, 0], sizes = [18, 24, 4], strides = [1, 1, 1]} : vector<20x32x4xf32> to vector<18x24x4xf32>
    %32 = vector.shape_cast %31 : vector<18x24x4xf32> to vector<432x4xf32>
    %c4 = arith.constant 4 : index
    %c0_25 = arith.constant 0 : index
    %c0_26 = arith.constant 0 : index
    %33 = vector.load %arg2[%c4, %c0_25, %c0_26] : memref<9x4x16xf32, #tpu.memory_space<vmem>>, vector<1x4x16xf32>
    %34 = vector.shape_cast %33 : vector<1x4x16xf32> to vector<4x16xf32>
    %cst_27 = arith.constant dense<0.000000e+00> : vector<432x16xf32>
    %35 = tpu.matmul %32, %34, %cst_27 {dimension_numbers = #tpu.dot_dimension_numbers<[1], [0], [0], [1], [0, 0, 1, 1], [], []>} : vector<432x4xf32>, vector<4x16xf32>, vector<432x16xf32> -> vector<432x16xf32>
    %36 = arith.addf %30, %35 : vector<432x16xf32>
    %37 = vector.extract_strided_slice %5 {offsets = [1, 8, 0], sizes = [18, 24, 4], strides = [1, 1, 1]} : vector<20x32x4xf32> to vector<18x24x4xf32>
    %38 = vector.shape_cast %37 : vector<18x24x4xf32> to vector<432x4xf32>
    %c5 = arith.constant 5 : index
    %c0_28 = arith.constant 0 : index
    %c0_29 = arith.constant 0 : index
    %39 = vector.load %arg2[%c5, %c0_28, %c0_29] : memref<9x4x16xf32, #tpu.memory_space<vmem>>, vector<1x4x16xf32>
    %40 = vector.shape_cast %39 : vector<1x4x16xf32> to vector<4x16xf32>
    %cst_30 = arith.constant dense<0.000000e+00> : vector<432x16xf32>
    %41 = tpu.matmul %38, %40, %cst_30 {dimension_numbers = #tpu.dot_dimension_numbers<[1], [0], [0], [1], [0, 0, 1, 1], [], []>} : vector<432x4xf32>, vector<4x16xf32>, vector<432x16xf32> -> vector<432x16xf32>
    %42 = arith.addf %36, %41 : vector<432x16xf32>
    %43 = vector.extract_strided_slice %5 {offsets = [2, 6, 0], sizes = [18, 24, 4], strides = [1, 1, 1]} : vector<20x32x4xf32> to vector<18x24x4xf32>
    %44 = vector.shape_cast %43 : vector<18x24x4xf32> to vector<432x4xf32>
    %c6 = arith.constant 6 : index
    %c0_31 = arith.constant 0 : index
    %c0_32 = arith.constant 0 : index
    %45 = vector.load %arg2[%c6, %c0_31, %c0_32] : memref<9x4x16xf32, #tpu.memory_space<vmem>>, vector<1x4x16xf32>
    %46 = vector.shape_cast %45 : vector<1x4x16xf32> to vector<4x16xf32>
    %cst_33 = arith.constant dense<0.000000e+00> : vector<432x16xf32>
    %47 = tpu.matmul %44, %46, %cst_33 {dimension_numbers = #tpu.dot_dimension_numbers<[1], [0], [0], [1], [0, 0, 1, 1], [], []>} : vector<432x4xf32>, vector<4x16xf32>, vector<432x16xf32> -> vector<432x16xf32>
    %48 = arith.addf %42, %47 : vector<432x16xf32>
    %49 = vector.extract_strided_slice %5 {offsets = [2, 7, 0], sizes = [18, 24, 4], strides = [1, 1, 1]} : vector<20x32x4xf32> to vector<18x24x4xf32>
    %50 = vector.shape_cast %49 : vector<18x24x4xf32> to vector<432x4xf32>
    %c7 = arith.constant 7 : index
    %c0_34 = arith.constant 0 : index
    %c0_35 = arith.constant 0 : index
    %51 = vector.load %arg2[%c7, %c0_34, %c0_35] : memref<9x4x16xf32, #tpu.memory_space<vmem>>, vector<1x4x16xf32>
    %52 = vector.shape_cast %51 : vector<1x4x16xf32> to vector<4x16xf32>
    %cst_36 = arith.constant dense<0.000000e+00> : vector<432x16xf32>
    %53 = tpu.matmul %50, %52, %cst_36 {dimension_numbers = #tpu.dot_dimension_numbers<[1], [0], [0], [1], [0, 0, 1, 1], [], []>} : vector<432x4xf32>, vector<4x16xf32>, vector<432x16xf32> -> vector<432x16xf32>
    %54 = arith.addf %48, %53 : vector<432x16xf32>
    %55 = vector.extract_strided_slice %5 {offsets = [2, 8, 0], sizes = [18, 24, 4], strides = [1, 1, 1]} : vector<20x32x4xf32> to vector<18x24x4xf32>
    %56 = vector.shape_cast %55 : vector<18x24x4xf32> to vector<432x4xf32>
    %c8_37 = arith.constant 8 : index
    %c0_38 = arith.constant 0 : index
    %c0_39 = arith.constant 0 : index
    %57 = vector.load %arg2[%c8_37, %c0_38, %c0_39] : memref<9x4x16xf32, #tpu.memory_space<vmem>>, vector<1x4x16xf32>
    %58 = vector.shape_cast %57 : vector<1x4x16xf32> to vector<4x16xf32>
    %cst_40 = arith.constant dense<0.000000e+00> : vector<432x16xf32>
    %59 = tpu.matmul %56, %58, %cst_40 {dimension_numbers = #tpu.dot_dimension_numbers<[1], [0], [0], [1], [0, 0, 1, 1], [], []>} : vector<432x4xf32>, vector<4x16xf32>, vector<432x16xf32> -> vector<432x16xf32>
    %60 = arith.addf %54, %59 : vector<432x16xf32>
    %c0_41 = arith.constant 0 : index
    %c0_42 = arith.constant 0 : index
    %61 = vector.load %arg3[%c0_41, %c0_42] : memref<1x16xf32, #tpu.memory_space<vmem>>, vector<1x16xf32>
    %62 = vector.broadcast %61 : vector<1x16xf32> to vector<432x16xf32>
    %63 = arith.addf %60, %62 : vector<432x16xf32>
    %cst_43 = arith.constant 0.000000e+00 : f32
    %64 = vector.broadcast %cst_43 : f32 to vector<432x16xf32>
    %65 = arith.maximumf %63, %64 : vector<432x16xf32>
    %66 = vector.shape_cast %65 : vector<432x16xf32> to vector<18x24x16xf32>
    %67 = tpu.iota {dimensions = array<i32: 0>} : vector<18x24x16xi32>
    %68 = tpu.iota {dimensions = array<i32: 1>} : vector<18x24x16xi32>
    %c1_i32 = arith.constant 1 : i32
    %69 = vector.broadcast %c1_i32 : i32 to vector<18x24x16xi32>
    %70 = arith.cmpi sge, %67, %69 : vector<18x24x16xi32>
    %c16_i32 = arith.constant 16 : i32
    %71 = vector.broadcast %c16_i32 : i32 to vector<18x24x16xi32>
    %72 = arith.cmpi sle, %67, %71 : vector<18x24x16xi32>
    %73 = arith.andi %70, %72 : vector<18x24x16xi1>
    %c1_i32_44 = arith.constant 1 : i32
    %74 = vector.broadcast %c1_i32_44 : i32 to vector<18x24x16xi32>
    %75 = arith.cmpi sge, %68, %74 : vector<18x24x16xi32>
    %76 = arith.andi %73, %75 : vector<18x24x16xi1>
    %c16_i32_45 = arith.constant 16 : i32
    %77 = vector.broadcast %c16_i32_45 : i32 to vector<18x24x16xi32>
    %78 = arith.cmpi sle, %68, %77 : vector<18x24x16xi32>
    %79 = arith.andi %76, %78 : vector<18x24x16xi1>
    %cst_46 = arith.constant 0.000000e+00 : f32
    %80 = vector.broadcast %cst_46 : f32 to vector<18x24x16xf32>
    %81 = arith.select %79, %66, %80 : vector<18x24x16xi1>, vector<18x24x16xf32>
    %cst_47 = arith.constant 0.000000e+00 : f32
    %82 = vector.broadcast %cst_47 : f32 to vector<256x32xf32>
    %83 = vector.extract_strided_slice %81 {offsets = [0, 0, 0], sizes = [16, 16, 16], strides = [1, 1, 1]} : vector<18x24x16xf32> to vector<16x16x16xf32>
    %84 = vector.shape_cast %83 : vector<16x16x16xf32> to vector<256x16xf32>
    %c0_48 = arith.constant 0 : index
    %c0_49 = arith.constant 0 : index
    %c0_50 = arith.constant 0 : index
    %85 = vector.load %arg4[%c0_48, %c0_49, %c0_50] : memref<9x16x32xf32, #tpu.memory_space<vmem>>, vector<1x16x32xf32>
    %86 = vector.shape_cast %85 : vector<1x16x32xf32> to vector<16x32xf32>
    %cst_51 = arith.constant dense<0.000000e+00> : vector<256x32xf32>
    %87 = tpu.matmul %84, %86, %cst_51 {dimension_numbers = #tpu.dot_dimension_numbers<[1], [0], [0], [1], [0, 0, 1, 1], [], []>} : vector<256x16xf32>, vector<16x32xf32>, vector<256x32xf32> -> vector<256x32xf32>
    %88 = arith.addf %82, %87 : vector<256x32xf32>
    %89 = vector.extract_strided_slice %81 {offsets = [0, 1, 0], sizes = [16, 16, 16], strides = [1, 1, 1]} : vector<18x24x16xf32> to vector<16x16x16xf32>
    %90 = vector.shape_cast %89 : vector<16x16x16xf32> to vector<256x16xf32>
    %c1_52 = arith.constant 1 : index
    %c0_53 = arith.constant 0 : index
    %c0_54 = arith.constant 0 : index
    %91 = vector.load %arg4[%c1_52, %c0_53, %c0_54] : memref<9x16x32xf32, #tpu.memory_space<vmem>>, vector<1x16x32xf32>
    %92 = vector.shape_cast %91 : vector<1x16x32xf32> to vector<16x32xf32>
    %cst_55 = arith.constant dense<0.000000e+00> : vector<256x32xf32>
    %93 = tpu.matmul %90, %92, %cst_55 {dimension_numbers = #tpu.dot_dimension_numbers<[1], [0], [0], [1], [0, 0, 1, 1], [], []>} : vector<256x16xf32>, vector<16x32xf32>, vector<256x32xf32> -> vector<256x32xf32>
    %94 = arith.addf %88, %93 : vector<256x32xf32>
    %95 = vector.extract_strided_slice %81 {offsets = [0, 2, 0], sizes = [16, 16, 16], strides = [1, 1, 1]} : vector<18x24x16xf32> to vector<16x16x16xf32>
    %96 = vector.shape_cast %95 : vector<16x16x16xf32> to vector<256x16xf32>
    %c2_56 = arith.constant 2 : index
    %c0_57 = arith.constant 0 : index
    %c0_58 = arith.constant 0 : index
    %97 = vector.load %arg4[%c2_56, %c0_57, %c0_58] : memref<9x16x32xf32, #tpu.memory_space<vmem>>, vector<1x16x32xf32>
    %98 = vector.shape_cast %97 : vector<1x16x32xf32> to vector<16x32xf32>
    %cst_59 = arith.constant dense<0.000000e+00> : vector<256x32xf32>
    %99 = tpu.matmul %96, %98, %cst_59 {dimension_numbers = #tpu.dot_dimension_numbers<[1], [0], [0], [1], [0, 0, 1, 1], [], []>} : vector<256x16xf32>, vector<16x32xf32>, vector<256x32xf32> -> vector<256x32xf32>
    %100 = arith.addf %94, %99 : vector<256x32xf32>
    %101 = vector.extract_strided_slice %81 {offsets = [1, 0, 0], sizes = [16, 16, 16], strides = [1, 1, 1]} : vector<18x24x16xf32> to vector<16x16x16xf32>
    %102 = vector.shape_cast %101 : vector<16x16x16xf32> to vector<256x16xf32>
    %c3_60 = arith.constant 3 : index
    %c0_61 = arith.constant 0 : index
    %c0_62 = arith.constant 0 : index
    %103 = vector.load %arg4[%c3_60, %c0_61, %c0_62] : memref<9x16x32xf32, #tpu.memory_space<vmem>>, vector<1x16x32xf32>
    %104 = vector.shape_cast %103 : vector<1x16x32xf32> to vector<16x32xf32>
    %cst_63 = arith.constant dense<0.000000e+00> : vector<256x32xf32>
    %105 = tpu.matmul %102, %104, %cst_63 {dimension_numbers = #tpu.dot_dimension_numbers<[1], [0], [0], [1], [0, 0, 1, 1], [], []>} : vector<256x16xf32>, vector<16x32xf32>, vector<256x32xf32> -> vector<256x32xf32>
    %106 = arith.addf %100, %105 : vector<256x32xf32>
    %107 = vector.extract_strided_slice %81 {offsets = [1, 1, 0], sizes = [16, 16, 16], strides = [1, 1, 1]} : vector<18x24x16xf32> to vector<16x16x16xf32>
    %108 = vector.shape_cast %107 : vector<16x16x16xf32> to vector<256x16xf32>
    %c4_64 = arith.constant 4 : index
    %c0_65 = arith.constant 0 : index
    %c0_66 = arith.constant 0 : index
    %109 = vector.load %arg4[%c4_64, %c0_65, %c0_66] : memref<9x16x32xf32, #tpu.memory_space<vmem>>, vector<1x16x32xf32>
    %110 = vector.shape_cast %109 : vector<1x16x32xf32> to vector<16x32xf32>
    %cst_67 = arith.constant dense<0.000000e+00> : vector<256x32xf32>
    %111 = tpu.matmul %108, %110, %cst_67 {dimension_numbers = #tpu.dot_dimension_numbers<[1], [0], [0], [1], [0, 0, 1, 1], [], []>} : vector<256x16xf32>, vector<16x32xf32>, vector<256x32xf32> -> vector<256x32xf32>
    %112 = arith.addf %106, %111 : vector<256x32xf32>
    %113 = vector.extract_strided_slice %81 {offsets = [1, 2, 0], sizes = [16, 16, 16], strides = [1, 1, 1]} : vector<18x24x16xf32> to vector<16x16x16xf32>
    %114 = vector.shape_cast %113 : vector<16x16x16xf32> to vector<256x16xf32>
    %c5_68 = arith.constant 5 : index
    %c0_69 = arith.constant 0 : index
    %c0_70 = arith.constant 0 : index
    %115 = vector.load %arg4[%c5_68, %c0_69, %c0_70] : memref<9x16x32xf32, #tpu.memory_space<vmem>>, vector<1x16x32xf32>
    %116 = vector.shape_cast %115 : vector<1x16x32xf32> to vector<16x32xf32>
    %cst_71 = arith.constant dense<0.000000e+00> : vector<256x32xf32>
    %117 = tpu.matmul %114, %116, %cst_71 {dimension_numbers = #tpu.dot_dimension_numbers<[1], [0], [0], [1], [0, 0, 1, 1], [], []>} : vector<256x16xf32>, vector<16x32xf32>, vector<256x32xf32> -> vector<256x32xf32>
    %118 = arith.addf %112, %117 : vector<256x32xf32>
    %119 = vector.extract_strided_slice %81 {offsets = [2, 0, 0], sizes = [16, 16, 16], strides = [1, 1, 1]} : vector<18x24x16xf32> to vector<16x16x16xf32>
    %120 = vector.shape_cast %119 : vector<16x16x16xf32> to vector<256x16xf32>
    %c6_72 = arith.constant 6 : index
    %c0_73 = arith.constant 0 : index
    %c0_74 = arith.constant 0 : index
    %121 = vector.load %arg4[%c6_72, %c0_73, %c0_74] : memref<9x16x32xf32, #tpu.memory_space<vmem>>, vector<1x16x32xf32>
    %122 = vector.shape_cast %121 : vector<1x16x32xf32> to vector<16x32xf32>
    %cst_75 = arith.constant dense<0.000000e+00> : vector<256x32xf32>
    %123 = tpu.matmul %120, %122, %cst_75 {dimension_numbers = #tpu.dot_dimension_numbers<[1], [0], [0], [1], [0, 0, 1, 1], [], []>} : vector<256x16xf32>, vector<16x32xf32>, vector<256x32xf32> -> vector<256x32xf32>
    %124 = arith.addf %118, %123 : vector<256x32xf32>
    %125 = vector.extract_strided_slice %81 {offsets = [2, 1, 0], sizes = [16, 16, 16], strides = [1, 1, 1]} : vector<18x24x16xf32> to vector<16x16x16xf32>
    %126 = vector.shape_cast %125 : vector<16x16x16xf32> to vector<256x16xf32>
    %c7_76 = arith.constant 7 : index
    %c0_77 = arith.constant 0 : index
    %c0_78 = arith.constant 0 : index
    %127 = vector.load %arg4[%c7_76, %c0_77, %c0_78] : memref<9x16x32xf32, #tpu.memory_space<vmem>>, vector<1x16x32xf32>
    %128 = vector.shape_cast %127 : vector<1x16x32xf32> to vector<16x32xf32>
    %cst_79 = arith.constant dense<0.000000e+00> : vector<256x32xf32>
    %129 = tpu.matmul %126, %128, %cst_79 {dimension_numbers = #tpu.dot_dimension_numbers<[1], [0], [0], [1], [0, 0, 1, 1], [], []>} : vector<256x16xf32>, vector<16x32xf32>, vector<256x32xf32> -> vector<256x32xf32>
    %130 = arith.addf %124, %129 : vector<256x32xf32>
    %131 = vector.extract_strided_slice %81 {offsets = [2, 2, 0], sizes = [16, 16, 16], strides = [1, 1, 1]} : vector<18x24x16xf32> to vector<16x16x16xf32>
    %132 = vector.shape_cast %131 : vector<16x16x16xf32> to vector<256x16xf32>
    %c8_80 = arith.constant 8 : index
    %c0_81 = arith.constant 0 : index
    %c0_82 = arith.constant 0 : index
    %133 = vector.load %arg4[%c8_80, %c0_81, %c0_82] : memref<9x16x32xf32, #tpu.memory_space<vmem>>, vector<1x16x32xf32>
    %134 = vector.shape_cast %133 : vector<1x16x32xf32> to vector<16x32xf32>
    %cst_83 = arith.constant dense<0.000000e+00> : vector<256x32xf32>
    %135 = tpu.matmul %132, %134, %cst_83 {dimension_numbers = #tpu.dot_dimension_numbers<[1], [0], [0], [1], [0, 0, 1, 1], [], []>} : vector<256x16xf32>, vector<16x32xf32>, vector<256x32xf32> -> vector<256x32xf32>
    %136 = arith.addf %130, %135 : vector<256x32xf32>
    %c0_84 = arith.constant 0 : index
    %c0_85 = arith.constant 0 : index
    %137 = vector.load %arg5[%c0_84, %c0_85] : memref<1x32xf32, #tpu.memory_space<vmem>>, vector<1x32xf32>
    %138 = vector.broadcast %137 : vector<1x32xf32> to vector<256x32xf32>
    %139 = arith.addf %136, %138 : vector<256x32xf32>
    %cst_86 = arith.constant 0.000000e+00 : f32
    %140 = vector.broadcast %cst_86 : f32 to vector<256x32xf32>
    %141 = arith.maximumf %139, %140 : vector<256x32xf32>
    %142 = vector.shape_cast %141 : vector<256x32xf32> to vector<16x16x32xf32>
    %c0_87 = arith.constant 0 : index
    %c0_88 = arith.constant 0 : index
    %c0_89 = arith.constant 0 : index
    %c0_90 = arith.constant 0 : index
    %143 = vector.load %arg6[%c0_87, %c0_88, %c0_89, %c0_90] : memref<1x16x16x32xf32, #tpu.memory_space<vmem>>, vector<1x16x16x32xf32>
    %144 = vector.shape_cast %143 : vector<1x16x16x32xf32> to vector<16x16x32xf32>
    %145 = vector.shape_cast %142 : vector<16x16x32xf32> to vector<1x16x16x32xf32>
    tpu.vector_store %arg6[%c0_87, %c0_88, %c0_89, %c0_90], %145 {strides = array<i32>} : memref<1x16x16x32xf32, #tpu.memory_space<vmem>>, vector<1x16x16x32xf32>,
    return
  }
  func.func @transform_0(%arg0: i32) -> (i32, i32, i32, i32) {
    %c0_i32 = arith.constant 0 : i32
    %c0_i32_0 = arith.constant 0 : i32
    %c0_i32_1 = arith.constant 0 : i32
    %c0_i32_2 = arith.constant 0 : i32
    return %arg0, %c0_i32, %c0_i32_0, %c0_i32_1 : i32, i32, i32, i32
  }
  func.func @transform_1(%arg0: i32) -> (i32, i32, i32) {
    %c0_i32 = arith.constant 0 : i32
    %c0_i32_0 = arith.constant 0 : i32
    %c0_i32_1 = arith.constant 0 : i32
    %c0_i32_2 = arith.constant 0 : i32
    return %c0_i32, %c0_i32_0, %c0_i32_1 : i32, i32, i32
  }
  func.func @transform_2(%arg0: i32) -> (i32, i32) {
    %c0_i32 = arith.constant 0 : i32
    %c0_i32_0 = arith.constant 0 : i32
    %c0_i32_1 = arith.constant 0 : i32
    return %c0_i32, %c0_i32_0 : i32, i32
  }
  func.func @transform_3(%arg0: i32) -> (i32, i32, i32) {
    %c0_i32 = arith.constant 0 : i32
    %c0_i32_0 = arith.constant 0 : i32
    %c0_i32_1 = arith.constant 0 : i32
    %c0_i32_2 = arith.constant 0 : i32
    return %c0_i32, %c0_i32_0, %c0_i32_1 : i32, i32, i32
  }
  func.func @transform_4(%arg0: i32) -> (i32, i32) {
    %c0_i32 = arith.constant 0 : i32
    %c0_i32_0 = arith.constant 0 : i32
    %c0_i32_1 = arith.constant 0 : i32
    return %c0_i32, %c0_i32_0 : i32, i32
  }
  func.func @transform_5(%arg0: i32) -> (i32, i32, i32, i32) {
    %c0_i32 = arith.constant 0 : i32
    %c0_i32_0 = arith.constant 0 : i32
    %c0_i32_1 = arith.constant 0 : i32
    %c0_i32_2 = arith.constant 0 : i32
    return %arg0, %c0_i32, %c0_i32_0, %c0_i32_1 : i32, i32, i32, i32
  }
}

</mosaic_0001>

<bundles_post_ra>
// kernel: tpu_custom_call.1
= control target key start
LH: loop header
LB: loop body
LE: loop exit
PB: predicated region body
PF: predicated region fallthrough
CT: control target
= control target key end

     0   :  { %10 = vsyncpa [#allocation4], 0  ;;  %s14888_s0 = inlined_call_operand.vmem [shape: f32[2,16,16,4], index: 0, kind: input, shape index: {}]   ;;  %s14889_s1 = inlined_call_operand.vmem [shape: f32[9,4,16], index: 1, kind: input, shape index: {}]   ;;  %s14890_s2 = inlined_call_operand.vmem [shape: f32[1,16], index: 2, kind: input, shape index: {}]   ;;  %s14891_s3 = inlined_call_operand.vmem [shape: f32[9,16,32], index: 3, kind: input, shape index: {}]   ;;  %s14892_s4 = inlined_call_operand.vmem [shape: f32[1,32], index: 4, kind: input, shape index: {}]   ;;  %s14893_s5 = inlined_call_operand.hbm [shape: f32[2,16,16,32], index: 5, kind: output, shape index: {}]  }
   0x1   :  { %12 = vsyncpa [#allocation4 + $0x1], 0  ;;  %s11397_s18 = smov 0   ;;  %s11399_s19 = smov 0  }
   0x2   :  { %s11401_s20 = smov 0   ;;  %s11403_s21 = smov 0  }
   0x3 LB: > { %s11418_s22 = sadd.s32 4294967295, %s11361_s21   ;;  %s7708_s23 = sadd.s32 4294967294, %s11361_s21   ;;  %s11361_s21 = sphi %s11403_s21, %s15635_s21   ;;  %s11357_s20 = sphi %s11401_s20, %s15634_s20   ;;  %s11353_s19 = sphi %s11399_s19, %s15633_s19   ;;  %s11349_s18 = sphi %s11397_s18, %s15632_s18  }
   0x4   : > { %s11422_s24 = sadd.s32 1, %s11361_s21   ;;  %s135_s25 = sadd.s32 1, %s11357_s20 }
   0x5   : > { %s132_s26 = ssub.s32 %s11361_s21, %s11422_s24  ;;  %p145_p0 = scmp.ne.s32.totalorder %s11357_s20, %s11353_s19 }
   0x6   : > { %p133_p1 = scmp.eq.s32.totalorder %s132_s26, 0  ;;  %p146_p2 = scmp.eq.s32.totalorder %s11418_s22, 1 }
   0x7   : > { %p151_p3 = scmp.ne.s32.totalorder %s11353_s19, %s11349_s18  ;;  %p152_p4 = scmp.eq.s32.totalorder %s7708_s23, 1 }
   0x8   : > { %s11433_s27 = scalar_select %p133_p1, %s11357_s20, %s135_s25  }
   0x9   : > { %p11435_p5 = por %p146_p2, %p145_p0  ;;  %p11439_p6 = por %p152_p4, %p151_p3 }
   0xa   : > { %p7711_p7 = scmp.ge.s32.totalorder %s11361_s21, 1  ;;  %p190_p8 = scmp.lt.s32.totalorder %s11361_s21, 3 }
   0xc   : > { %p191_p9 = pnand %p7711_p7, %p190_p8 }
   0xe   : > { %194 = sbr.rel (%p191_p9) target bundleno = 1790 (0x6fe), region = 40 }
  0x15   : > { %v11448_v0 = vld [vmem:[%s14889_s1] sm:$0xf]  ;;  %vm886_vm0 = vcmask 1043456   ;;  %v7715_v1 = vld [vmem:[%s14889_s1 + $0x4] sm:$0xf]  ;;  %vm223_vm1 = vcmask 31744  }
  0x16   : > { %9411 = vmatprep.subr.msk.mxu0 %vm886_vm0, %v11448_v0  ;;  %9328 = vmatprep.subr.msk.mxu1 %vm886_vm0, %v7715_v1  ;;  %v11459_v2 = vld [vmem:[%s14889_s1 + $0x8] sm:$0xf]  ;;  %p218_p10 = scmp.lt.s32.totalorder %s11418_s22, 1  ;;  %v14894_v3 = vmov 0.0   ;;  %vm649_vm2 = vcmask 1040384   ;;  %vm521_vm3 = vcmask 1041408  }
  0x17   : > { %9412 = vmatpush3.msk.msra.mxu0 %vm886_vm0, %v11448_v0  ;;  %9329 = vmatpush3.msk.msra.mxu1 %vm886_vm0, %v7715_v1  ;;  %224 = vst.msk [vmem:[#allocation2] sm:$0xff] %vm223_vm1, %v14894_v3  ;;  %225 = vst.msk [vmem:[#allocation2 + $0x8] sm:$0xff] %vm223_vm1, %v14894_v3  ;;  %v11678_v35 = vld [vmem:[%s14889_s1 + $0xc] sm:$0xf]  ;;  %vm4934_vm4 = vcmask 130048   ;;  %vm4850_vm7 = vcmask 1046528  }
  0x18   : > { %226 = vst.msk [vmem:[#allocation2 + $0x10] sm:$0xff] %vm223_vm1, %v14894_v3  ;;  %227 = vst.msk [vmem:[#allocation2 + $0x18] sm:$0xff] %vm223_vm1, %v14894_v3  ;;  %9494 = vmatprep.subr.msk.mxu0 %vm886_vm0, %v11459_v2  ;;  %s219_s11 = scalar_select %p218_p10, %s11418_s22, 1  ;;  %10579 = vmatprep.subr.msk.mxu1 %vm886_vm0, %v11448_v0  ;;  %vm5513_vm8 = vcmask 1045504   ;;  %vm7599_vm9 = vcmask 261120  }
  0x19   : > { %228 = vst.msk [vmem:[#allocation2 + $0x20] sm:$0xff] %vm223_vm1, %v14894_v3  ;;  %229 = vst.msk [vmem:[#allocation2 + $0x28] sm:$0xff] %vm223_vm1, %v14894_v3  ;;  %s215_s26 = sand.u32 1, %s11353_s19   ;;  %s8526_s9 = sshll.u32 %s11418_s22, 12 }
  0x1a   : > { %230 = vst.msk [vmem:[#allocation2 + $0x30] sm:$0xff] %vm223_vm1, %v14894_v3  ;;  %231 = vst.msk [vmem:[#allocation2 + $0x38] sm:$0xff] %vm223_vm1, %v14894_v3  ;;  %s8525_s12 = sshll.u32 %s219_s11, 8  ;;  %s7712_s7 = sshll.u32 %s215_s26, 8 }
  0x1b   : > { %232 = vst.msk [vmem:[#allocation2 + $0x40] sm:$0xff] %vm223_vm1, %v14894_v3  ;;  %233 = vst.msk [vmem:[#allocation2 + $0x48] sm:$0xff] %vm223_vm1, %v14894_v3  ;;  %s11635_s15 = scalar_lea.vmem %s14888_s0, %s8525_s12  ;;  %s14740_s8 = scalar_lea.vmem [#allocation3], %s7712_s7 }
  0x1c   : > { %234 = vst.msk [vmem:[#allocation2 + $0x50] sm:$0xff] %vm223_vm1, %v14894_v3  ;;  %235 = vst.msk [vmem:[#allocation2 + $0x58] sm:$0xff] %vm223_vm1, %v14894_v3  ;;  %v304_v4 = vld [vmem:[%s11635_s15] sm:$0xff]  ;;  %v305_v5 = vld [vmem:[%s11635_s15 + $0x8] sm:$0xff]  ;;  %s7646_s10 = sshll.u32 %s14740_s8, 4  ;;  %s14837_s13 = scalar_lea.hbm %s14893_s5, %s8526_s9  ;;  %s14839_s10 = int_to_ptr.vmem [resolvable:$true] %s7646_s10 }
  0x1d   : > { %236 = vst.msk [vmem:[#allocation2 + $0x60] sm:$0xff] %vm223_vm1, %v14894_v3  ;;  %237 = vst.msk [vmem:[#allocation2 + $0x68] sm:$0xff] %vm223_vm1, %v14894_v3  ;;  %v306_v6 = vld [vmem:[%s11635_s15 + $0x10] sm:$0xff]  ;;  %v307_v7 = vld [vmem:[%s11635_s15 + $0x18] sm:$0xff]  ;;  %s14847_s22 = scalar_lea.sflag [#allocation4], %s215_s26  ;;  %s11299_s14 = scalar_lea.vmem %s14839_s10, 4096 }
  0x1e   : > { %238 = vst.msk [vmem:[#allocation2 + $0x70] sm:$0xff] %vm223_vm1, %v14894_v3  ;;  %239 = vst.msk [vmem:[#allocation2 + $0x78] sm:$0xff] %vm223_vm1, %v14894_v3  ;;  %v308_v8 = vld [vmem:[%s11635_s15 + $0x20] sm:$0xff]  ;;  %v309_v9 = vld [vmem:[%s11635_s15 + $0x28] sm:$0xff]  ;;  %p11300_p11 = scmp.ne.s32.totalorder %s14839_s10, %s11299_s14 }
  0x1f   : > { %240 = vst.msk [vmem:[#allocation2 + $0x80] sm:$0xff] %vm223_vm1, %v14894_v3  ;;  %241 = vst.msk [vmem:[#allocation2 + $0x88] sm:$0xff] %vm223_vm1, %v14894_v3  ;;  %v369_v10 = vld [vmem:[#allocation2] sm:$0xff]  ;;  %v11646_v11 = vld [vmem:[#allocation2 + $0x8] sm:$0xff] }
  0x20   : > { %242 = vst.msk [vmem:[#allocation2 + $0x90] sm:$0xff] %vm223_vm1, %v14894_v3  ;;  %243 = vst.msk [vmem:[#allocation2 + $0x98] sm:$0xff] %vm223_vm1, %v14894_v3  ;;  %v11648_v12 = vld [vmem:[#allocation2 + $0x10] sm:$0xff]  ;;  %v650_v13 = vrot.slane %v369_v10, 7  ;;  %v651_v14 = vrot.slane %v11646_v11, 7  ;;  %v522_v15 = vrot.slane %v369_v10, 6  ;;  %p11301_p12 = pnand %p11300_p11, %p11435_p5 }
  0x21   : > { %244 = vst.msk [vmem:[#allocation2 + $0xa0] sm:$0xff] %vm223_vm1, %v14894_v3  ;;  %245 = vst.msk [vmem:[#allocation2 + $0xa8] sm:$0xff] %vm223_vm1, %v14894_v3  ;;  %v523_v16 = vrot.slane %v11646_v11, 6  ;;  %v11655_v17 = vld [vmem:[#allocation2 + $0x18] sm:$0xff]  ;;  %v373_v18 = vld [vmem:[#allocation2 + $0x20] sm:$0xff]  ;;  %v653_v19 = vrot.slane %v11648_v12, 7 }
  0x22   : > { %246 = vst.msk [vmem:[#allocation2 + $0xb0] sm:$0xff] %vm223_vm1, %v14894_v3  ;;  %247 = vst.msk [vmem:[#allocation2 + $0xb8] sm:$0xff] %vm223_vm1, %v14894_v3  ;;  %v525_v20 = vrot.slane %v11648_v12, 6  ;;  %v655_v21 = vrot.slane %v11655_v17, 7  ;;  %v527_v22 = vrot.slane %v11655_v17, 6  ;;  %v11661_v23 = vld [vmem:[#allocation2 + $0x28] sm:$0xff]  ;;  %v652_v25 = vsel %vm649_vm2, %v650_v13, %v651_v14  ;;  %p11302_p13 = pneg %p11301_p12 }
  0x23   : > { %248 = vst.msk [vmem:[#allocation2 + $0xc0] sm:$0xff] %vm223_vm1, %v14894_v3  ;;  %249 = vst.msk [vmem:[#allocation2 + $0xc8] sm:$0xff] %vm223_vm1, %v14894_v3  ;;  %v11663_v24 = vld [vmem:[#allocation2 + $0x30] sm:$0xff]  ;;  %v524_v26 = vsel %vm521_vm3, %v522_v15, %v523_v16  ;;  %v657_v27 = vrot.slane %v373_v18, 7  ;;  %v658_v28 = vrot.slane %v11661_v23, 7  ;;  %v11668_v29 = vld [vmem:[#allocation2 + $0x38] sm:$0xff]  ;;  %9330 = vmatprep.mubr.msk.f32.mxu1 %vm223_vm1, %v652_v25  ;;  %v654_v31 = vsel %vm649_vm2, %v651_v14, %v653_v19 }
  0x24   : > { %250 = vst.msk [vmem:[#allocation2 + $0xd0] sm:$0xff] %vm223_vm1, %v14894_v3  ;;  %251 = vst.msk [vmem:[#allocation2 + $0xd8] sm:$0xff] %vm223_vm1, %v14894_v3  ;;  %v377_v30 = vld [vmem:[#allocation2 + $0x40] sm:$0xff]  ;;  %9413 = vmatprep.mubr.msk.f32.mxu0 %vm223_vm1, %v524_v26  ;;  %v526_v32 = vsel %vm521_vm3, %v523_v16, %v525_v20  ;;  %v656_v33 = vsel %vm649_vm2, %v653_v19, %v655_v21  ;;  %v529_v34 = vrot.slane %v373_v18, 6  ;;  %9331 = vmatmul.mubr.msk.f32.vlgmr.msra.gmra.mrb[0].mxu1 %vm223_vm1, %v654_v31  ;;  %v310_v40 = vld [vmem:[%s11635_s15 + $0x30] sm:$0xff] }
  0x25   : > { %252 = vst.msk [vmem:[#allocation2 + $0xe0] sm:$0xff] %vm223_vm1, %v14894_v3  ;;  %253 = vst.msk [vmem:[#allocation2 + $0xe8] sm:$0xff] %vm223_vm1, %v14894_v3  ;;  %9414 = vmatmul.mubr.msk.f32.vlgmr.msra.gmra.mrb[0].mxu0 %vm223_vm1, %v526_v32  ;;  %v528_v36 = vsel %vm521_vm3, %v525_v20, %v527_v22  ;;  %v11684_v37 = vsel %vm649_vm2, %v657_v27, %v658_v28  ;;  %v530_v38 = vrot.slane %v11661_v23, 6  ;;  %v660_v39 = vrot.slane %v11663_v24, 7  ;;  %v11714_v53 = vld [vmem:[#allocation2 + $0x58] sm:$0xff]  ;;  %v312_v55 = vld [vmem:[%s11635_s15 + $0x40] sm:$0xff] }
  0x26   : > { %254 = vst.msk [vmem:[#allocation2 + $0xf0] sm:$0xff] %vm223_vm1, %v14894_v3  ;;  %255 = vst.msk [vmem:[#allocation2 + $0xf8] sm:$0xff] %vm223_vm1, %v14894_v3  ;;  %9495 = vmatpush3.msk.msra.mxu0 %vm886_vm0, %v11459_v2  ;;  %9333 = vmatprep.mubr.msk.f32.mxu1 %vm223_vm1, %v656_v33  ;;  %v532_v41 = vrot.slane %v11663_v24, 6  ;;  %v662_v42 = vrot.slane %v11668_v29, 7  ;;  %v534_v43 = vrot.slane %v11668_v29, 6  ;;  %v664_v45 = vrot.slane %v377_v30, 7 }
  0x27   : > { %256 = vst.msk [vmem:[#allocation2 + $0x100] sm:$0xff] %vm223_vm1, %v14894_v3  ;;  %257 = vst.msk [vmem:[#allocation2 + $0x108] sm:$0xff] %vm223_vm1, %v14894_v3  ;;  %9416 = vmatprep.mubr.msk.f32.mxu0 %vm223_vm1, %v528_v36  ;;  %v11700_v46 = vsel %vm521_vm3, %v529_v34, %v530_v38  ;;  %v11703_v47 = vsel %vm649_vm2, %v658_v28, %v660_v39  ;;  %v536_v49 = vrot.slane %v377_v30, 6  ;;  %9577 = vmatprep.subr.msk.mxu0 %vm886_vm0, %v11678_v35  ;;  %v311_v54 = vld [vmem:[%s11635_s15 + $0x38] sm:$0xff]  ;;  %v313_v56 = vld [vmem:[%s11635_s15 + $0x48] sm:$0xff] }
  0x28   : > { %258 = vst.msk [vmem:[#allocation2 + $0x110] sm:$0xff] %vm223_vm1, %v14894_v3  ;;  %259 = vst.msk [vmem:[#allocation2 + $0x118] sm:$0xff] %vm223_vm1, %v14894_v3  ;;  %v11711_v51 = vsel %vm521_vm3, %v530_v38, %v532_v41  ;;  %10580 = vmatpush3.msk.msra.mxu1 %vm886_vm0, %v11448_v0  ;;  %v11731_v57 = vsel %vm649_vm2, %v660_v39, %v662_v42  ;;  %v11734_v58 = vsel %vm521_vm3, %v532_v41, %v534_v43  ;;  %v381_v61 = vld [vmem:[#allocation2 + $0x60] sm:$0xff]  ;;  %v314_v63 = vld [vmem:[%s11635_s15 + $0x50] sm:$0xff] }
  0x29   : > { %260 = vst.msk [vmem:[#allocation2 + $0x120] sm:$0xff] %vm223_vm1, %v14894_v3  ;;  %261 = vst.msk [vmem:[#allocation2 + $0x128] sm:$0xff] %vm223_vm1, %v14894_v3  ;;  %9334 = vmatmul.mubr.msk.f32.gmra.mrb[2].mxu1 %vm223_vm1, %v11684_v37  ;;  %9417 = vmatmul.mubr.msk.f32.gmra.mrb[2].mxu0 %vm223_vm1, %v11700_v46  ;;  %v669_v2 = vrot.slane %v11714_v53, 7  ;;  %v318_v13 = vld [vmem:[%s11635_s15 + $0x70] sm:$0xff]  ;;  %v543_v16 = vrot.slane %v381_v61, 6  ;;  %v319_v19 = vld [vmem:[%s11635_s15 + $0x78] sm:$0xff] }
  0x2a   : > { %262 = vst.msk [vmem:[#allocation2 + $0x130] sm:$0xff] %vm223_vm1, %v14894_v3  ;;  %263 = vst.msk [vmem:[#allocation2 + $0x138] sm:$0xff] %vm223_vm1, %v14894_v3  ;;  %9336 = vmatprep.mubr.msk.f32.mxu1 %vm223_vm1, %v11703_v47  ;;  %9419 = vmatprep.mubr.msk.f32.mxu0 %vm223_vm1, %v11711_v51  ;;  %v11786_v25 = vld [vmem:[#allocation2 + $0x78] sm:$0xff]  ;;  %v320_v26 = vld [vmem:[%s11635_s15 + $0x80] sm:$0xff] }
  0x2b   : > { %264 = vst.msk [vmem:[#allocation2 + $0x140] sm:$0xff] %vm223_vm1, %v14894_v3  ;;  %265 = vst.msk [vmem:[#allocation2 + $0x148] sm:$0xff] %vm223_vm1, %v14894_v3  ;;  %v321_v27 = vld [vmem:[%s11635_s15 + $0x88] sm:$0xff]  ;;  %v11791_v28 = vld [vmem:[#allocation2 + $0x80] sm:$0xff]  ;;  %v676_v34 = vrot.slane %v11786_v25, 7 }
  0x2c   : > { %266 = vst.msk [vmem:[#allocation2 + $0x150] sm:$0xff] %vm223_vm1, %v14894_v3  ;;  %267 = vst.msk [vmem:[#allocation2 + $0x158] sm:$0xff] %vm223_vm1, %v14894_v3  ;;  %v322_v31 = vld [vmem:[%s11635_s15 + $0x90] sm:$0xff]  ;;  %v323_v36 = vld [vmem:[%s11635_s15 + $0x98] sm:$0xff]  ;;  %v678_v39 = vrot.slane %v11791_v28, 7 }
  0x2d   : > { %268 = vst.msk [vmem:[#allocation2 + $0x160] sm:$0xff] %vm223_vm1, %v14894_v3  ;;  %269 = vst.msk [vmem:[#allocation2 + $0x168] sm:$0xff] %vm223_vm1, %v14894_v3  ;;  %9337 = vmatmul.mubr.msk.f32.gmra.mrb[4].mxu1 %vm223_vm1, %v11731_v57  ;;  %9420 = vmatmul.mubr.msk.f32.gmra.mrb[4].mxu0 %vm223_vm1, %v11734_v58  ;;  %v11825_v42 = vld [vmem:[#allocation2 + $0x98] sm:$0xff]  ;;  %v324_v43 = vld [vmem:[%s11635_s15 + $0xa0] sm:$0xff] }
  0x2e   : > { %270 = vst.msk [vmem:[#allocation2 + $0x170] sm:$0xff] %vm223_vm1, %v14894_v3  ;;  %271 = vst.msk [vmem:[#allocation2 + $0x178] sm:$0xff] %vm223_vm1, %v14894_v3 }
  0x2f   : > { %272 = vst.msk [vmem:[#allocation2 + $0x180] sm:$0xff] %vm223_vm1, %v14894_v3  ;;  %273 = vst.msk [vmem:[#allocation2 + $0x188] sm:$0xff] %vm223_vm1, %v14894_v3 }
  0x30   : > { %274 = vst.msk [vmem:[#allocation2 + $0x190] sm:$0xff] %vm223_vm1, %v14894_v3  ;;  %275 = vst.msk [vmem:[#allocation2 + $0x198] sm:$0xff] %vm223_vm1, %v14894_v3 }
  0x31   : > { %276 = vst.msk [vmem:[#allocation2 + $0x1a0] sm:$0xff] %vm223_vm1, %v14894_v3  ;;  %277 = vst.msk [vmem:[#allocation2 + $0x1a8] sm:$0xff] %vm223_vm1, %v14894_v3 }
  0x32   : > { %278 = vst.msk [vmem:[#allocation2 + $0x1b0] sm:$0xff] %vm223_vm1, %v14894_v3  ;;  %279 = vst.msk [vmem:[#allocation2 + $0x1b8] sm:$0xff] %vm223_vm1, %v14894_v3 }
  0x33   : > { %280 = vst.msk [vmem:[#allocation2 + $0x1c0] sm:$0xff] %vm223_vm1, %v14894_v3  ;;  %281 = vst.msk [vmem:[#allocation2 + $0x1c8] sm:$0xff] %vm223_vm1, %v14894_v3 }
  0x34   : > { %282 = vst.msk [vmem:[#allocation2 + $0x1d0] sm:$0xff] %vm223_vm1, %v14894_v3  ;;  %283 = vst.msk [vmem:[#allocation2 + $0x1d8] sm:$0xff] %vm223_vm1, %v14894_v3 }
  0x35   : > { %284 = vst.msk [vmem:[#allocation2 + $0x1e0] sm:$0xff] %vm223_vm1, %v14894_v3  ;;  %285 = vst.msk [vmem:[#allocation2 + $0x1e8] sm:$0xff] %vm223_vm1, %v14894_v3 }
  0x36   : > { %286 = vst.msk [vmem:[#allocation2 + $0x1f0] sm:$0xff] %vm223_vm1, %v14894_v3  ;;  %287 = vst.msk [vmem:[#allocation2 + $0x1f8] sm:$0xff] %vm223_vm1, %v14894_v3 }
  0x37   : > { %288 = vst.msk [vmem:[#allocation2 + $0x200] sm:$0xff] %vm223_vm1, %v14894_v3  ;;  %289 = vst.msk [vmem:[#allocation2 + $0x208] sm:$0xff] %vm223_vm1, %v14894_v3 }
  0x38   : > { %290 = vst.msk [vmem:[#allocation2 + $0x210] sm:$0xff] %vm223_vm1, %v14894_v3  ;;  %291 = vst.msk [vmem:[#allocation2 + $0x218] sm:$0xff] %vm223_vm1, %v14894_v3 }
  0x39   : > { %292 = vst.msk [vmem:[#allocation2 + $0x220] sm:$0xff] %vm223_vm1, %v14894_v3  ;;  %293 = vst.msk [vmem:[#allocation2 + $0x228] sm:$0xff] %vm223_vm1, %v14894_v3 }
  0x3a   : > { %294 = vst.msk [vmem:[#allocation2 + $0x230] sm:$0xff] %vm223_vm1, %v14894_v3  ;;  %295 = vst.msk [vmem:[#allocation2 + $0x238] sm:$0xff] %vm223_vm1, %v14894_v3 }
  0x3b   : > { %296 = vst.msk [vmem:[#allocation2 + $0x240] sm:$0xff] %vm223_vm1, %v14894_v3  ;;  %297 = vst.msk [vmem:[#allocation2 + $0x248] sm:$0xff] %vm223_vm1, %v14894_v3 }
  0x3c   : > { %298 = vst.msk [vmem:[#allocation2 + $0x250] sm:$0xff] %vm223_vm1, %v14894_v3  ;;  %299 = vst.msk [vmem:[#allocation2 + $0x258] sm:$0xff] %vm223_vm1, %v14894_v3 }
  0x3d   : > { %300 = vst.msk [vmem:[#allocation2 + $0x260] sm:$0xff] %vm223_vm1, %v14894_v3  ;;  %301 = vst.msk [vmem:[#allocation2 + $0x268] sm:$0xff] %vm223_vm1, %v14894_v3 }
  0x3e   : > { %302 = vst.msk [vmem:[#allocation2 + $0x270] sm:$0xff] %vm223_vm1, %v14894_v3  ;;  %303 = vst.msk [vmem:[#allocation2 + $0x278] sm:$0xff] %vm223_vm1, %v14894_v3 }
  0x3f   : > { %337 = vst.msk [vmem:[#allocation2 + $0x48] sm:$0xff] %vm223_vm1, %v304_v4  ;;  %338 = vst.msk [vmem:[#allocation2 + $0x50] sm:$0xff] %vm223_vm1, %v305_v5  ;;  %v541_v4 = vrot.slane %v11714_v53, 6  ;;  %v315_v5 = vld [vmem:[%s11635_s15 + $0x58] sm:$0xff] }
  0x40   : > { %339 = vst.msk [vmem:[#allocation2 + $0x68] sm:$0xff] %vm223_vm1, %v306_v6  ;;  %340 = vst.msk [vmem:[#allocation2 + $0x70] sm:$0xff] %vm223_vm1, %v307_v7  ;;  %v316_v6 = vld [vmem:[%s11635_s15 + $0x60] sm:$0xff] }
  0x41   : > { %341 = vst.msk [vmem:[#allocation2 + $0x88] sm:$0xff] %vm223_vm1, %v308_v8  ;;  %342 = vst.msk [vmem:[#allocation2 + $0x90] sm:$0xff] %vm223_vm1, %v309_v9  ;;  %v317_v8 = vld [vmem:[%s11635_s15 + $0x68] sm:$0xff]  ;;  %v671_v9 = vrot.slane %v381_v61, 7  ;;  %v328_v61 = vld [vmem:[%s11635_s15 + $0xc0] sm:$0xff] }
  0x42   : > { %15145 = vst [vmem:[#allocation6_spill] sm:$0xff] %v11684_v37  ;;  %343 = vst.msk [vmem:[#allocation2 + $0xa8] sm:$0xff] %vm223_vm1, %v310_v40  ;;  %v12188_v37 = vld [vmem:[#allocation2 + $0x1d8] sm:$0xff] }
  0x43   : > { %15146 = vst [vmem:[#allocation7_spill] sm:$0xff] %v11703_v47  ;;  %344 = vst.msk [vmem:[#allocation2 + $0xb0] sm:$0xff] %vm223_vm1, %v311_v54 }
  0x44   : > { %15147 = vst [vmem:[#allocation8_spill] sm:$0xff] %v11731_v57  ;;  %345 = vst.msk [vmem:[#allocation2 + $0xc8] sm:$0xff] %vm223_vm1, %v312_v55  ;;  %v683_v55 = vrot.slane %v11825_v42, 7 }
  0x45   : > { %346 = vst.msk [vmem:[#allocation2 + $0xd0] sm:$0xff] %vm223_vm1, %v313_v56  ;;  %347 = vst.msk [vmem:[#allocation2 + $0xe8] sm:$0xff] %vm223_vm1, %v314_v63  ;;  %v11848_v56 = vld [vmem:[#allocation2 + $0xa0] sm:$0xff]  ;;  %v329_v63 = vld [vmem:[%s11635_s15 + $0xc8] sm:$0xff] }
  0x46   : > { %v11695_v44 = vld [vmem:[#allocation2 + $0x48] sm:$0xff]  ;;  %v11706_v50 = vld [vmem:[#allocation2 + $0x50] sm:$0xff]  ;;  %348 = vst.msk [vmem:[#allocation2 + $0xf0] sm:$0xff] %vm223_vm1, %v315_v5  ;;  %349 = vst.msk [vmem:[#allocation2 + $0x108] sm:$0xff] %vm223_vm1, %v316_v6 }
  0x47   : > { %v665_v48 = vrot.slane %v11695_v44, 7  ;;  %v537_v52 = vrot.slane %v11695_v44, 6  ;;  %v667_v59 = vrot.slane %v11706_v50, 7  ;;  %v539_v60 = vrot.slane %v11706_v50, 6  ;;  %v11738_v62 = vld [vmem:[#allocation2 + $0x68] sm:$0xff]  ;;  %v11754_v7 = vld [vmem:[#allocation2 + $0x70] sm:$0xff] }
  0x48   : > { %v672_v10 = vrot.slane %v11738_v62, 7  ;;  %350 = vst.msk [vmem:[#allocation2 + $0x110] sm:$0xff] %vm223_vm1, %v317_v8  ;;  %v14896_v18 = vrot.slane %v11738_v62, 6  ;;  %351 = vst.msk [vmem:[#allocation2 + $0x128] sm:$0xff] %vm223_vm1, %v318_v13  ;;  %v674_v22 = vrot.slane %v11754_v7, 7  ;;  %v11793_v30 = vld [vmem:[#allocation2 + $0x88] sm:$0xff] }
  0x49   : > { %v11744_v0 = vsel %vm649_vm2, %v664_v45, %v665_v48  ;;  %v11747_v1 = vsel %vm521_vm3, %v536_v49, %v537_v52  ;;  %v11771_v14 = vsel %vm649_vm2, %v665_v48, %v667_v59  ;;  %v11774_v15 = vsel %vm521_vm3, %v537_v52, %v539_v60  ;;  %352 = vst.msk [vmem:[#allocation2 + $0x130] sm:$0xff] %vm223_vm1, %v319_v19  ;;  %v11822_v41 = vld [vmem:[#allocation2 + $0x90] sm:$0xff]  ;;  %v325_v45 = vld [vmem:[%s11635_s15 + $0xa8] sm:$0xff]  ;;  %v11881_v8 = vld [vmem:[#allocation2 + $0xb8] sm:$0xff] }
  0x4a   : > { %15148 = vst [vmem:[#allocation9_spill] sm:$0xff] %v11744_v0  ;;  %9339 = vmatprep.mubr.msk.f32.mxu1 %vm223_vm1, %v11744_v0  ;;  %9422 = vmatprep.mubr.msk.f32.mxu0 %vm223_vm1, %v11747_v1  ;;  %15149 = vst [vmem:[#allocation10_spill] sm:$0xff] %v11771_v14  ;;  %v11780_v20 = vsel %vm649_vm2, %v667_v59, %v669_v2  ;;  %v11783_v21 = vsel %vm521_vm3, %v539_v60, %v541_v4  ;;  %v679_v40 = vrot.slane %v11793_v30, 7  ;;  %v326_v52 = vld [vmem:[%s11635_s15 + $0xb0] sm:$0xff]  ;;  %v11850_v59 = vld [vmem:[#allocation2 + $0xa8] sm:$0xff] }
  0x4b   : > { %15150 = vst [vmem:[#allocation11_spill] sm:$0xff] %v11780_v20  ;;  %353 = vst.msk [vmem:[#allocation2 + $0x148] sm:$0xff] %vm223_vm1, %v320_v26  ;;  %9340 = vmatmul.mubr.msk.f32.gmra.mrb[6].mxu1 %vm223_vm1, %v11771_v14  ;;  %9423 = vmatmul.mubr.msk.f32.gmra.mrb[6].mxu0 %vm223_vm1, %v11774_v15  ;;  %v11808_v32 = vsel %vm649_vm2, %v671_v9, %v672_v10  ;;  %v11813_v33 = vsel %vm521_vm3, %v543_v16, %v14896_v18  ;;  %v681_v49 = vrot.slane %v11822_v41, 7  ;;  %v11854_v60 = vld [vmem:[#allocation2 + $0xb0] sm:$0xff]  ;;  %v331_v9 = vld [vmem:[%s11635_s15 + $0xd8] sm:$0xff] }
  0x4c   : > { %354 = vst.msk [vmem:[#allocation2 + $0x150] sm:$0xff] %vm223_vm1, %v321_v27  ;;  %355 = vst.msk [vmem:[#allocation2 + $0x168] sm:$0xff] %vm223_vm1, %v322_v31  ;;  %9342 = vmatprep.mubr.msk.f32.mxu1 %vm223_vm1, %v11780_v20  ;;  %9425 = vmatprep.mubr.msk.f32.mxu0 %vm223_vm1, %v11783_v21  ;;  %v11818_v38 = vsel %vm649_vm2, %v672_v10, %v674_v22  ;;  %v11839_v48 = vsel %vm649_vm2, %v674_v22, %v676_v34  ;;  %v685_v4 = vrot.slane %v11848_v56, 7  ;;  %v332_v10 = vld [vmem:[%s11635_s15 + $0xe0] sm:$0xff]  ;;  %v11888_v16 = vld [vmem:[#allocation2 + $0xc8] sm:$0xff] }
  0x4d   : > { %15151 = vst [vmem:[#allocation12_spill] sm:$0xff] %v11808_v32  ;;  %15152 = vst [vmem:[#allocation13_spill] sm:$0xff] %v11818_v38  ;;  %v11845_v54 = vsel %vm649_vm2, %v678_v39, %v679_v40  ;;  %v11869_v2 = vsel %vm649_vm2, %v679_v40, %v681_v49  ;;  %v686_v5 = vrot.slane %v11850_v59, 7  ;;  %v11878_v6 = vsel %vm649_vm2, %v681_v49, %v683_v55  ;;  %v11886_v13 = vld [vmem:[#allocation2 + $0xc0] sm:$0xff]  ;;  %v334_v26 = vld [vmem:[%s11635_s15 + $0xf0] sm:$0xff] }
  0x4e   : > { %356 = vst.msk [vmem:[#allocation2 + $0x170] sm:$0xff] %vm223_vm1, %v323_v36  ;;  %357 = vst.msk [vmem:[#allocation2 + $0x188] sm:$0xff] %vm223_vm1, %v324_v43  ;;  %v690_v22 = vrot.slane %v11881_v8, 7  ;;  %v693_v31 = vrot.slane %v11888_v16, 7  ;;  %v11912_v34 = vld [vmem:[#allocation2 + $0xd0] sm:$0xff]  ;;  %v11916_v36 = vld [vmem:[#allocation2 + $0xd8] sm:$0xff] }
  0x4f   : > { %9343 = vmatmul.mubr.msk.f32.gmra.mrb[8].mxu1 %vm223_vm1, %v11808_v32  ;;  %9426 = vmatmul.mubr.msk.f32.gmra.mrb[8].mxu0 %vm223_vm1, %v11813_v33  ;;  %15153 = vst [vmem:[#allocation14_spill] sm:$0xff] %v11839_v48  ;;  %358 = vst.msk [vmem:[#allocation2 + $0x190] sm:$0xff] %vm223_vm1, %v325_v45  ;;  %v11902_v19 = vsel %vm649_vm2, %v685_v4, %v686_v5  ;;  %v11922_v39 = vld [vmem:[%s14889_s1 + $0x10] sm:$0xf]  ;;  %v695_v43 = vrot.slane %v11912_v34, 7  ;;  %v697_v49 = vrot.slane %v11916_v36, 7 }
  0x50   : > { %9345 = vmatprep.mubr.msk.f32.mxu1 %vm223_vm1, %v11818_v38  ;;  %9496 = vmatprep.mubr.msk.f32.mxu0 %vm223_vm1, %v11646_v11  ;;  %15154 = vst [vmem:[#allocation15_spill] sm:$0xff] %v11845_v54  ;;  %359 = vst.msk [vmem:[#allocation2 + $0x1a8] sm:$0xff] %vm223_vm1, %v326_v52  ;;  %v327_v11 = vld [vmem:[%s11635_s15 + $0xb8] sm:$0xff]  ;;  %v11940_v52 = vld [vmem:[#allocation2 + $0xe0] sm:$0xff] }
  0x51   : > { %360 = vst.msk [vmem:[#allocation2 + $0x1b0] sm:$0xff] %vm223_vm1, %v327_v11  ;;  %361 = vst.msk [vmem:[#allocation2 + $0x1c8] sm:$0xff] %vm223_vm1, %v328_v61  ;;  %v11942_v55 = vld [vmem:[#allocation2 + $0xe8] sm:$0xff]  ;;  %v699_v11 = vrot.slane %v11940_v52, 7  ;;  %v12163_v14 = vld [vmem:[#allocation2 + $0x1b8] sm:$0xff] }
  0x52   : > { %15155 = vst [vmem:[#allocation16_spill] sm:$0xff] %v11869_v2  ;;  %362 = vst.msk [vmem:[#allocation2 + $0x1d0] sm:$0xff] %vm223_vm1, %v329_v63  ;;  %v700_v61 = vrot.slane %v11942_v55, 7  ;;  %v11962_v63 = vsel %vm649_vm2, %v695_v43, %v697_v49  ;;  %v12008_v49 = vld [vmem:[#allocation2 + $0x120] sm:$0xff] }
  0x53   : > { %9346 = vmatmul.mubr.msk.f32.gmra.mrb[10].mxu1 %vm223_vm1, %v11839_v48  ;;  %9497 = vmatmul.mubr.msk.f32.vlgmr.msra.gmra.mrb[10].mxu0 %vm223_vm1, %v11648_v12  ;;  %v330_v12 = vld [vmem:[%s11635_s15 + $0xd0] sm:$0xff]  ;;  %15156 = vst [vmem:[#allocation17_spill] sm:$0xff] %v11878_v6  ;;  %364 = vst.msk [vmem:[#allocation2 + $0x1f0] sm:$0xff] %vm223_vm1, %v331_v9  ;;  %v12122_v48 = vld [vmem:[#allocation2 + $0x198] sm:$0xff] }
  0x54   : > { %9578 = vmatpush3.msk.msra.mxu0 %vm886_vm0, %v11678_v35  ;;  %9348 = vmatprep.mubr.msk.f32.mxu1 %vm223_vm1, %v11845_v54  ;;  %v688_v35 = vrot.slane %v11854_v60, 7  ;;  %363 = vst.msk [vmem:[#allocation2 + $0x1e8] sm:$0xff] %vm223_vm1, %v330_v12  ;;  %365 = vst.msk [vmem:[#allocation2 + $0x208] sm:$0xff] %vm223_vm1, %v332_v10  ;;  %v11969_v12 = vld [vmem:[#allocation2 + $0x108] sm:$0xff]  ;;  %v739_v38 = vrot.slane %v12122_v48, 7  ;;  %v12165_v0 = vld [vmem:[#allocation2 + $0x1c0] sm:$0xff] }
  0x55   : > { %9499 = vmatprep.mubr.msk.f32.mxu0 %vm223_vm1, %v11655_v17  ;;  %v333_v17 = vld [vmem:[%s11635_s15 + $0xe8] sm:$0xff]  ;;  %15157 = vst [vmem:[#allocation18_spill] sm:$0xff] %v11902_v19  ;;  %367 = vst.msk [vmem:[#allocation2 + $0x228] sm:$0xff] %vm223_vm1, %v334_v26  ;;  %9660 = vmatprep.subr.msk.mxu0 %vm886_vm0, %v11922_v39  ;;  %v11990_v26 = vld [vmem:[#allocation2 + $0x118] sm:$0xff]  ;;  %v748_v57 = vrot.slane %v12165_v0, 7 }
  0x56   : > { %366 = vst.msk [vmem:[#allocation2 + $0x210] sm:$0xff] %vm223_vm1, %v333_v17  ;;  %v11908_v27 = vsel %vm649_vm2, %v686_v5, %v688_v35  ;;  %v11933_v40 = vsel %vm649_vm2, %v688_v35, %v690_v22  ;;  %15162 = vst [vmem:[#allocation23_spill] sm:$0xff] %v11962_v63  ;;  %v11965_v5 = vld [vmem:[#allocation2 + $0xf8] sm:$0xff]  ;;  %v707_v17 = vrot.slane %v11969_v12, 7  ;;  %v11988_v22 = vld [vmem:[#allocation2 + $0x110] sm:$0xff] }
  0x57   : > { %9349 = vmatmul.mubr.msk.f32.gmra.mrb[12].mxu1 %vm223_vm1, %v11869_v2  ;;  %9500 = vmatmul.mubr.msk.f32.gmra.mrb[12].mxu0 %vm223_vm1, %v11661_v23  ;;  %15158 = vst [vmem:[#allocation19_spill] sm:$0xff] %v11908_v27  ;;  %v692_v23 = vrot.slane %v11886_v13, 7  ;;  %15159 = vst [vmem:[#allocation20_spill] sm:$0xff] %v11933_v40  ;;  %v704_v35 = vrot.slane %v11965_v5, 7  ;;  %v12120_v54 = vld [vmem:[#allocation2 + $0x190] sm:$0xff]  ;;  %v12142_v32 = vld [vmem:[#allocation2 + $0x1a8] sm:$0xff] }
  0x58   : > { %9351 = vmatprep.mubr.msk.f32.mxu1 %vm223_vm1, %v11878_v6  ;;  %9502 = vmatprep.mubr.msk.f32.mxu0 %vm223_vm1, %v11663_v24  ;;  %v335_v24 = vld [vmem:[%s11635_s15 + $0xf8] sm:$0xff]  ;;  %v12099_v6 = vld [vmem:[#allocation2 + $0x180] sm:$0xff]  ;;  %v12144_v20 = vld [vmem:[#allocation2 + $0x1b0] sm:$0xff]  ;;  %15190 = vst [vmem:[#allocation51_spill] sm:$0xff] %v12165_v0  ;;  %v753_v0 = vrot.slane %v12188_v37, 7  ;;  %s11364_s15 = smov [#allocation3]  }
  0x59   : > { %368 = vst.msk [vmem:[#allocation2 + $0x230] sm:$0xff] %vm223_vm1, %v335_v24  ;;  %v11937_v45 = vsel %vm649_vm2, %v692_v23, %v693_v31  ;;  %15181 = vst [vmem:[#allocation42_spill] sm:$0xff] %v12099_v6  ;;  %v734_v2 = vrot.slane %v12099_v6, 7  ;;  %v12186_v47 = vld [vmem:[#allocation2 + $0x1d0] sm:$0xff]  ;;  %s11303_s16 = sshll.u32 %s11364_s15, 4  ;;  %s11304_s16 = int_to_ptr.vmem [resolvable:$false] %s11303_s16 }
  0x5a   : > { %15160 = vst [vmem:[#allocation21_spill] sm:$0xff] %v11937_v45  ;;  %v12210_v6 = vld [vmem:[#allocation2 + $0x1f0] sm:$0xff]  ;;  %s11305_s17 = scalar_lea.vmem %s11304_s16, 8192  ;;  %p11306_p0 = scmp.lt.s32.totalorder %s14839_s10, %s11304_s16 }
  0x5b   : > { %9352 = vmatmul.mubr.msk.f32.gmra.mrb[14].mxu1 %vm223_vm1, %v11902_v19  ;;  %9503 = vmatmul.mubr.msk.f32.gmra.mrb[4].mxu0 %vm223_vm1, %v11668_v29  ;;  %v11946_v29 = vld [vmem:[#allocation2 + $0xf0] sm:$0xff]  ;;  %v12097_v19 = vld [vmem:[#allocation2 + $0x178] sm:$0xff]  ;;  %p11307_p1 = scmp.lt.s32.totalorder %s11305_s17, %s11299_s14 }
  0x5c   : > { %9354 = vmatprep.mubr.msk.f32.mxu1 %vm223_vm1, %v11908_v27  ;;  %9505 = vmatprep.mubr.msk.f32.mxu0 %vm223_vm1, %v11695_v44  ;;  %v11957_v44 = vsel %vm649_vm2, %v693_v31, %v695_v43  ;;  %v702_v4 = vrot.slane %v11946_v29, 7  ;;  %v709_v31 = vrot.slane %v11988_v22, 7  ;;  %v711_v43 = vrot.slane %v11990_v26, 7  ;;  %v12078_v27 = vld [vmem:[#allocation2 + $0x170] sm:$0xff]  ;;  %15180 = vst [vmem:[#allocation41_spill] sm:$0xff] %v12097_v19 }
  0x5d   : > { %15161 = vst [vmem:[#allocation22_spill] sm:$0xff] %v11957_v44  ;;  %15177 = vst [vmem:[#allocation38_spill] sm:$0xff] %v12078_v27  ;;  %p11308_p2 = por %p11307_p1, %p11306_p0 }
  0x5e   : > { %v11984_v9 = vsel %vm649_vm2, %v700_v61, %v702_v4  ;;  %v12001_v23 = vsel %vm649_vm2, %v702_v4, %v704_v35  ;;  %v12023_v4 = vsel %vm649_vm2, %v707_v17, %v709_v31  ;;  %v713_v35 = vrot.slane %v12008_v49, 7 }
  0x5f   : > { %9355 = vmatmul.mubr.msk.f32.gmra.mrb[16].mxu1 %vm223_vm1, %v11933_v40  ;;  %9506 = vmatmul.mubr.msk.f32.gmra.mrb[6].mxu0 %vm223_vm1, %v11706_v50  ;;  %v11967_v50 = vld [vmem:[#allocation2 + $0x100] sm:$0xff]  ;;  %15164 = vst [vmem:[#allocation25_spill] sm:$0xff] %v11984_v9  ;;  %15165 = vst [vmem:[#allocation26_spill] sm:$0xff] %v12001_v23  ;;  %v12028_v3 = vsel %vm649_vm2, %v709_v31, %v711_v43  ;;  %v12076_v40 = vld [vmem:[#allocation2 + $0x168] sm:$0xff]  ;;  %p11309_p3 = pnand %p11308_p2, %p11302_p13 }
  0x60   : > { %9357 = vmatprep.mubr.msk.f32.mxu1 %vm223_vm1, %v11937_v45  ;;  %9508 = vmatprep.mubr.msk.f32.mxu0 %vm223_vm1, %v11714_v53  ;;  %v11980_v53 = vsel %vm649_vm2, %v699_v11, %v700_v61  ;;  %v706_v10 = vrot.slane %v11967_v50, 7  ;;  %v12010_v11 = vld [vmem:[#allocation2 + $0x128] sm:$0xff]  ;;  %v12012_v61 = vld [vmem:[#allocation2 + $0x130] sm:$0xff]  ;;  %15167 = vst [vmem:[#allocation28_spill] sm:$0xff] %v12023_v4  ;;  %15168 = vst [vmem:[#allocation29_spill] sm:$0xff] %v12028_v3 }
  0x61   : > { %15163 = vst [vmem:[#allocation24_spill] sm:$0xff] %v11980_v53  ;;  %v716_v18 = vrot.slane %v12012_v61, 7  ;;  %15176 = vst [vmem:[#allocation37_spill] sm:$0xff] %v12076_v40 }
  0x62   : > { %v12005_v24 = vsel %vm649_vm2, %v706_v10, %v707_v17  ;;  %v714_v10 = vrot.slane %v12010_v11, 7 }
  0x63   : > { %9358 = vmatmul.mubr.msk.f32.gmra.mrb[18].mxu1 %vm223_vm1, %v11957_v44  ;;  %9509 = vmatmul.mubr.msk.f32.gmra.mrb[8].mxu0 %vm223_vm1, %v11738_v62  ;;  %15166 = vst [vmem:[#allocation27_spill] sm:$0xff] %v12005_v24  ;;  %v12056_v44 = vld [vmem:[#allocation2 + $0x158] sm:$0xff] }
  0x64   : > { %9360 = vmatprep.mubr.msk.f32.mxu1 %vm223_vm1, %v11962_v63  ;;  %9511 = vmatprep.mubr.msk.f32.mxu0 %vm223_vm1, %v11754_v7  ;;  %v12046_v17 = vsel %vm649_vm2, %v713_v35, %v714_v10  ;;  %v12050_v43 = vsel %vm649_vm2, %v714_v10, %v716_v18  ;;  %v12054_v63 = vld [vmem:[#allocation2 + $0x150] sm:$0xff]  ;;  %15172 = vst [vmem:[#allocation33_spill] sm:$0xff] %v12056_v44  ;;  %v725_v45 = vrot.slane %v12056_v44, 7 }
  0x65   : > { %15169 = vst [vmem:[#allocation30_spill] sm:$0xff] %v12046_v17  ;;  %15170 = vst [vmem:[#allocation31_spill] sm:$0xff] %v12050_v43  ;;  %v723_v10 = vrot.slane %v12054_v63, 7 }
  0x66   : > { %15171 = vst [vmem:[#allocation32_spill] sm:$0xff] %v12054_v63 }
  0x67   : > { %9361 = vmatmul.mubr.msk.f32.gmra.mrb[20].mxu1 %vm223_vm1, %v11980_v53  ;;  %9512 = vmatmul.mubr.msk.f32.gmra.mrb[14].mxu0 %vm223_vm1, %v11786_v25 }
  0x68   : > { %9363 = vmatprep.mubr.msk.f32.mxu1 %vm223_vm1, %v11984_v9  ;;  %9514 = vmatprep.mubr.msk.f32.mxu0 %vm223_vm1, %v11793_v30  ;;  %v12033_v9 = vld [vmem:[#allocation2 + $0x140] sm:$0xff] }
  0x69   : > { %v720_v53 = vrot.slane %v12033_v9, 7 }
  0x6b   : > { %9364 = vmatmul.mubr.msk.f32.gmra.mrb[22].mxu1 %vm223_vm1, %v12001_v23  ;;  %9515 = vmatmul.mubr.msk.f32.gmra.mrb[16].mxu0 %vm223_vm1, %v11822_v41  ;;  %v12031_v23 = vld [vmem:[#allocation2 + $0x138] sm:$0xff] }
  0x6c   : > { %9366 = vmatprep.mubr.msk.f32.mxu1 %vm223_vm1, %v12005_v24  ;;  %9517 = vmatprep.mubr.msk.f32.mxu0 %vm223_vm1, %v11825_v42  ;;  %v12035_v24 = vld [vmem:[#allocation2 + $0x148] sm:$0xff]  ;;  %v718_v31 = vrot.slane %v12031_v23, 7 }
  0x6e   : > { %v12067_v35 = vsel %vm649_vm2, %v716_v18, %v718_v31  ;;  %v728_v31 = vrot.slane %v12076_v40, 7 }
  0x6f   : > { %9367 = vmatmul.mubr.msk.f32.gmra.mrb[24].mxu1 %vm223_vm1, %v12023_v4  ;;  %9518 = vmatmul.mubr.msk.f32.gmra.mrb[18].mxu0 %vm223_vm1, %v11850_v59  ;;  %v721_v4 = vrot.slane %v12035_v24, 7  ;;  %15173 = vst [vmem:[#allocation34_spill] sm:$0xff] %v12067_v35 }
  0x70   : > { %9369 = vmatprep.mubr.msk.f32.mxu1 %vm223_vm1, %v12028_v3  ;;  %9520 = vmatprep.mubr.msk.f32.mxu0 %vm223_vm1, %v11854_v60 }
  0x71   : > { %v12071_v3 = vsel %vm649_vm2, %v720_v53, %v721_v4  ;;  %v12089_v18 = vsel %vm649_vm2, %v721_v4, %v723_v10  ;;  %v732_v4 = vrot.slane %v12097_v19, 7 }
  0x72   : > { %15174 = vst [vmem:[#allocation35_spill] sm:$0xff] %v12071_v3  ;;  %15178 = vst [vmem:[#allocation39_spill] sm:$0xff] %v12089_v18 }
  0x73   : > { %9370 = vmatmul.mubr.msk.f32.gmra.mrb[26].mxu1 %vm223_vm1, %v12046_v17  ;;  %9521 = vmatmul.mubr.msk.f32.gmra.mrb[20].mxu0 %vm223_vm1, %v11881_v8  ;;  %v12074_v17 = vld [vmem:[#allocation2 + $0x160] sm:$0xff] }
  0x74   : > { %9372 = vmatprep.mubr.msk.f32.mxu1 %vm223_vm1, %v12050_v43  ;;  %9523 = vmatprep.mubr.msk.f32.mxu0 %vm223_vm1, %v11888_v16  ;;  %15175 = vst [vmem:[#allocation36_spill] sm:$0xff] %v12074_v17  ;;  %v727_v53 = vrot.slane %v12074_v17, 7  ;;  %v12094_v43 = vsel %vm649_vm2, %v723_v10, %v725_v45  ;;  %v12229_v17 = vld [vmem:[#allocation2 + $0x1f8] sm:$0xff] }
  0x75   : > { %15179 = vst [vmem:[#allocation40_spill] sm:$0xff] %v12094_v43 }
  0x76   : > { %v12112_v45 = vsel %vm649_vm2, %v727_v53, %v728_v31 }
  0x77   : > { %9373 = vmatmul.mubr.msk.f32.gmra.mrb[28].mxu1 %vm223_vm1, %v12067_v35  ;;  %9524 = vmatmul.mubr.msk.f32.gmra.mrb[22].mxu0 %vm223_vm1, %v11912_v34  ;;  %v730_v35 = vrot.slane %v12078_v27, 7  ;;  %15183 = vst [vmem:[#allocation44_spill] sm:$0xff] %v12112_v45 }
  0x78   : > { %9375 = vmatprep.mubr.msk.f32.mxu1 %vm223_vm1, %v12071_v3  ;;  %9526 = vmatprep.mubr.msk.f32.mxu0 %vm223_vm1, %v11916_v36  ;;  %v12101_v3 = vld [vmem:[#allocation2 + $0x188] sm:$0xff] }
  0x79   : > { %15182 = vst [vmem:[#allocation43_spill] sm:$0xff] %v12101_v3  ;;  %v12116_v10 = vsel %vm649_vm2, %v728_v31, %v730_v35  ;;  %v12133_v53 = vsel %vm649_vm2, %v730_v35, %v732_v4  ;;  %v737_v31 = vrot.slane %v12120_v54, 7  ;;  %v742_v4 = vrot.slane %v12142_v32, 7 }
  0x7a   : > { %15184 = vst [vmem:[#allocation45_spill] sm:$0xff] %v12116_v10  ;;  %15185 = vst [vmem:[#allocation46_spill] sm:$0xff] %v12133_v53 }
  0x7b   : > { %9376 = vmatmul.mubr.msk.f32.gmra.mrb[30].mxu1 %vm223_vm1, %v12089_v18  ;;  %9527 = vmatmul.mubr.msk.f32.gmra.mrb[24].mxu0 %vm223_vm1, %v11942_v55  ;;  %v735_v18 = vrot.slane %v12101_v3, 7 }
  0x7c   : > { %9378 = vmatprep.mubr.msk.f32.mxu1 %vm223_vm1, %v12094_v43  ;;  %9529 = vmatprep.mubr.msk.f32.mxu0 %vm223_vm1, %v11946_v29 }
  0x7d   : > { %v12137_v43 = vsel %vm649_vm2, %v734_v2, %v735_v18  ;;  %v12155_v2 = vsel %vm649_vm2, %v735_v18, %v737_v31  ;;  %v746_v18 = vrot.slane %v12163_v14, 7 }
  0x7e   : > { %15186 = vst [vmem:[#allocation47_spill] sm:$0xff] %v12137_v43  ;;  %15188 = vst [vmem:[#allocation49_spill] sm:$0xff] %v12155_v2 }
  0x7f   : > { %9379 = vmatmul.mubr.msk.f32.gmra.mrb[32].mxu1 %vm223_vm1, %v12112_v45  ;;  %9530 = vmatmul.mubr.msk.f32.gmra.mrb[26].mxu0 %vm223_vm1, %v11965_v5  ;;  %v12140_v45 = vld [vmem:[#allocation2 + $0x1a0] sm:$0xff] }
  0x80   : > { %9381 = vmatprep.mubr.msk.f32.mxu1 %vm223_vm1, %v12116_v10  ;;  %9532 = vmatprep.mubr.msk.f32.mxu0 %vm223_vm1, %v11969_v12  ;;  %15187 = vst [vmem:[#allocation48_spill] sm:$0xff] %v12140_v45  ;;  %v741_v35 = vrot.slane %v12140_v45, 7  ;;  %v12160_v10 = vsel %vm649_vm2, %v737_v31, %v739_v38  ;;  %v12208_v45 = vld [vmem:[#allocation2 + $0x1e8] sm:$0xff] }
  0x81   : > { %15189 = vst [vmem:[#allocation50_spill] sm:$0xff] %v12160_v10 }
  0x82   : > { %v12178_v38 = vsel %vm649_vm2, %v741_v35, %v742_v4 }
  0x83   : > { %9382 = vmatmul.mubr.msk.f32.gmra.mrb[34].mxu1 %vm223_vm1, %v12133_v53  ;;  %9533 = vmatmul.mubr.msk.f32.gmra.mrb[28].mxu0 %vm223_vm1, %v11988_v22  ;;  %v744_v53 = vrot.slane %v12144_v20, 7  ;;  %15191 = vst [vmem:[#allocation52_spill] sm:$0xff] %v12178_v38 }
  0x84   : > { %9384 = vmatprep.mubr.msk.f32.mxu1 %vm223_vm1, %v12137_v43  ;;  %9535 = vmatprep.mubr.msk.f32.mxu0 %vm223_vm1, %v11990_v26  ;;  %v12167_v43 = vld [vmem:[#allocation2 + $0x1c8] sm:$0xff] }
  0x85   : > { %v12182_v31 = vsel %vm649_vm2, %v742_v4, %v744_v53  ;;  %v12199_v35 = vsel %vm649_vm2, %v744_v53, %v746_v18  ;;  %v751_v4 = vrot.slane %v12186_v47, 7  ;;  %v756_v18 = vrot.slane %v12208_v45, 7 }
  0x86   : > { %15192 = vst [vmem:[#allocation53_spill] sm:$0xff] %v12182_v31  ;;  %15193 = vst [vmem:[#allocation54_spill] sm:$0xff] %v12199_v35 }
  0x87   : > { %9385 = vmatmul.mubr.msk.f32.gmra.mrb[36].mxu1 %vm223_vm1, %v12155_v2  ;;  %9536 = vmatmul.mubr.msk.f32.gmra.mrb[30].mxu0 %vm223_vm1, %v12010_v11  ;;  %v749_v2 = vrot.slane %v12167_v43, 7 }
  0x88   : > { %9387 = vmatprep.mubr.msk.f32.mxu1 %vm223_vm1, %v12160_v10  ;;  %9538 = vmatprep.mubr.msk.f32.mxu0 %vm223_vm1, %v12012_v61 }
  0x89   : > { %v12203_v10 = vsel %vm649_vm2, %v748_v57, %v749_v2  ;;  %v12221_v57 = vsel %vm649_vm2, %v749_v2, %v751_v4  ;;  %v760_v2 = vrot.slane %v12229_v17, 7 }
  0x8a   : > { %15194 = vst [vmem:[#allocation55_spill] sm:$0xff] %v12203_v10  ;;  %15196 = vst [vmem:[#allocation57_spill] sm:$0xff] %v12221_v57 }
  0x8b   : > { %9388 = vmatmul.mubr.msk.f32.gmra.mrb[38].mxu1 %vm223_vm1, %v12178_v38  ;;  %9539 = vmatmul.mubr.msk.f32.gmra.mrb[32].mxu0 %vm223_vm1, %v12031_v23  ;;  %v12206_v38 = vld [vmem:[#allocation2 + $0x1e0] sm:$0xff] }
  0x8c   : > { %9390 = vmatprep.mubr.msk.f32.mxu1 %vm223_vm1, %v12182_v31  ;;  %9541 = vmatprep.mubr.msk.f32.mxu0 %vm223_vm1, %v12035_v24  ;;  %15195 = vst [vmem:[#allocation56_spill] sm:$0xff] %v12206_v38  ;;  %v755_v53 = vrot.slane %v12206_v38, 7  ;;  %v12226_v31 = vsel %vm649_vm2, %v751_v4, %v753_v0 }
  0x8d   : > { %15197 = vst [vmem:[#allocation58_spill] sm:$0xff] %v12226_v31 }
  0x8e   : > { %v12244_v0 = vsel %vm649_vm2, %v755_v53, %v756_v18 }
  0x8f   : > { %9391 = vmatmul.mubr.msk.f32.gmra.mrb[40].mxu1 %vm223_vm1, %v12199_v35  ;;  %9542 = vmatmul.mubr.msk.f32.gmra.mrb[34].mxu0 %vm223_vm1, %v12054_v63  ;;  %v758_v35 = vrot.slane %v12210_v6, 7  ;;  %v12231_v63 = vld [vmem:[#allocation2 + $0x200] sm:$0xff]  ;;  %15199 = vst [vmem:[#allocation60_spill] sm:$0xff] %v12244_v0 }
  0x90   : > { %9393 = vmatprep.mubr.msk.f32.mxu1 %vm223_vm1, %v12203_v10  ;;  %9544 = vmatprep.mubr.msk.f32.mxu0 %vm223_vm1, %v12056_v44  ;;  %15198 = vst [vmem:[#allocation59_spill] sm:$0xff] %v12231_v63  ;;  %v12233_v10 = vld [vmem:[#allocation2 + $0x208] sm:$0xff]  ;;  %v762_v38 = vrot.slane %v12231_v63, 7  ;;  %v12252_v44 = vld [vmem:[#allocation2 + $0x210] sm:$0xff] }
  0x91   : > { %v12248_v4 = vsel %vm649_vm2, %v756_v18, %v758_v35  ;;  %v12265_v53 = vsel %vm649_vm2, %v758_v35, %v760_v2  ;;  %v765_v18 = vrot.slane %v12252_v44, 7 }
  0x92   : > { %15200 = vst [vmem:[#allocation61_spill] sm:$0xff] %v12248_v4  ;;  %15201 = vst [vmem:[#allocation62_spill] sm:$0xff] %v12265_v53 }
  0x93   : > { %9394 = vmatmul.mubr.msk.f32.gmra.mrb[42].mxu1 %vm223_vm1, %v12221_v57  ;;  %9545 = vmatmul.mubr.msk.f32.gmra.mrb[36].mxu0 %vm223_vm1, %v12076_v40  ;;  %v763_v57 = vrot.slane %v12233_v10, 7  ;;  %v12254_v40 = vld [vmem:[#allocation2 + $0x218] sm:$0xff] }
  0x94   : > { %9396 = vmatprep.mubr.msk.f32.mxu1 %vm223_vm1, %v12226_v31  ;;  %9547 = vmatprep.mubr.msk.f32.mxu0 %vm223_vm1, %v12078_v27  ;;  %v767_v63 = vrot.slane %v12254_v40, 7  ;;  %v12274_v27 = vld [vmem:[#allocation2 + $0x228] sm:$0xff] }
  0x95   : > { %v12269_v31 = vsel %vm649_vm2, %v762_v38, %v763_v57  ;;  %v12287_v38 = vsel %vm649_vm2, %v763_v57, %v765_v18  ;;  %v770_v2 = vrot.slane %v12274_v27, 7 }
  0x96   : > { %15202 = vst [vmem:[#allocation63_spill] sm:$0xff] %v12269_v31  ;;  %15203 = vst [vmem:[#allocation64_spill] sm:$0xff] %v12287_v38 }
  0x97   : > { %9397 = vmatmul.mubr.msk.f32.gmra.mrb[44].mxu1 %vm223_vm1, %v12244_v0  ;;  %9548 = vmatmul.mubr.msk.f32.gmra.mrb[38].mxu0 %vm223_vm1, %v12097_v19  ;;  %v12272_v0 = vld [vmem:[#allocation2 + $0x220] sm:$0xff]  ;;  %v12276_v19 = vld [vmem:[#allocation2 + $0x230] sm:$0xff] }
  0x98   : > { %9399 = vmatprep.mubr.msk.f32.mxu1 %vm223_vm1, %v12248_v4  ;;  %9550 = vmatprep.mubr.msk.f32.mxu0 %vm223_vm1, %v12101_v3  ;;  %v769_v35 = vrot.slane %v12272_v0, 7  ;;  %v12292_v4 = vsel %vm649_vm2, %v765_v18, %v767_v63  ;;  %v12295_v3 = vld [vmem:[#allocation2 + $0x238] sm:$0xff] }
  0x99   : > { %15204 = vst [vmem:[#allocation65_spill] sm:$0xff] %v12292_v4  ;;  %v774_v63 = vrot.slane %v12295_v3, 7 }
  0x9a   : > { %v12306_v57 = vsel %vm649_vm2, %v769_v35, %v770_v2 }
  0x9b   : > { %9400 = vmatmul.mubr.msk.f32.gmra.mrb[46].mxu1 %vm223_vm1, %v12265_v53  ;;  %9551 = vmatmul.mubr.msk.f32.gmra.mrb[40].mxu0 %vm223_vm1, %v12120_v54  ;;  %v772_v53 = vrot.slane %v12276_v19, 7  ;;  %15205 = vst [vmem:[#allocation66_spill] sm:$0xff] %v12306_v57 }
  0x9c   : > { %9402 = vmatprep.mubr.msk.f32.mxu1 %vm223_vm1, %v12269_v31  ;;  %9553 = vmatprep.mubr.msk.f32.mxu0 %vm223_vm1, %v12122_v48  ;;  %v546_v31 = vrot.slane %v11754_v7, 6 }
  0x9d   : > { %v12310_v18 = vsel %vm649_vm2, %v770_v2, %v772_v53  ;;  %v12322_v35 = vsel %vm649_vm2, %v772_v53, %v774_v63  ;;  %v548_v2 = vrot.slane %v11786_v25, 6  ;;  %v553_v25 = vrot.slane %v11822_v41, 6 }
  0x9e   : > { %15206 = vst [vmem:[#allocation67_spill] sm:$0xff] %v12310_v18  ;;  %15207 = vst [vmem:[#allocation68_spill] sm:$0xff] %v12322_v35  ;;  %v557_v41 = vrot.slane %v11848_v56, 6  ;;  %v560_v53 = vrot.slane %v11854_v60, 6  ;;  %v564_v60 = vrot.slane %v11886_v13, 6  ;;  %v567_v63 = vrot.slane %v11912_v34, 6 }
  0x9f   : > { %9403 = vmatmul.mubr.msk.f32.gmra.mrb[48].mxu1 %vm223_vm1, %v12287_v38  ;;  %9554 = vmatmul.mubr.msk.f32.gmra.mrb[42].mxu0 %vm223_vm1, %v12142_v32  ;;  %v551_v38 = vrot.slane %v11793_v30, 6  ;;  %v555_v30 = vrot.slane %v11825_v42, 6  ;;  %v571_v34 = vrot.slane %v11940_v52, 6 }
  0xa0   : > { %9405 = vmatprep.mubr.msk.f32.mxu1 %vm223_vm1, %v12292_v4  ;;  %9556 = vmatprep.mubr.msk.f32.mxu0 %vm223_vm1, %v12144_v20  ;;  %v15208_v4 = vrot.slane %v11738_v62, 6  ;;  %v12341_v62 = vsel %vm521_vm3, %v546_v31, %v548_v2 }
  0xa1   : > { %v12362_v42 = vsel %vm521_vm3, %v553_v25, %v555_v30  ;;  %v574_v30 = vrot.slane %v11946_v29, 6  ;;  %v578_v29 = vrot.slane %v11967_v50, 6 }
  0xa2   : > { %v12328_v7 = vsel %vm521_vm3, %v15208_v4, %v546_v31  ;;  %v12357_v31 = vsel %vm521_vm3, %v551_v38, %v553_v25  ;;  %v558_v4 = vrot.slane %v11850_v59, 6  ;;  %v562_v59 = vrot.slane %v11881_v8, 6 }
  0xa3   : > { %9406 = vmatmul.mubr.msk.f32.gmra.mrb[50].mxu1 %vm223_vm1, %v12306_v57  ;;  %9557 = vmatmul.mubr.msk.f32.gmra.mrb[44].mxu0 %vm223_vm1, %v12163_v14  ;;  %v550_v57 = vrot.slane %v11791_v28, 6  ;;  %v572_v25 = vrot.slane %v11942_v55, 6  ;;  %v576_v55 = vrot.slane %v11965_v5, 6  ;;  %v581_v5 = vrot.slane %v11988_v22, 6 }
  0xa4   : > { %9408 = vmatprep.mubr.msk.f32.mxu1 %vm223_vm1, %v12310_v18  ;;  %9559 = vmatprep.mubr.msk.f32.mxu0 %vm223_vm1, %v12167_v43  ;;  %v12374_v56 = vsel %vm521_vm3, %v557_v41, %v558_v4  ;;  %v12391_v8 = vsel %vm521_vm3, %v560_v53, %v562_v59 }
  0xa5   : > { %v12345_v28 = vsel %vm521_vm3, %v550_v57, %v551_v38  ;;  %v12378_v38 = vsel %vm521_vm3, %v558_v4, %v560_v53  ;;  %v565_v57 = vrot.slane %v11888_v16, 6  ;;  %v569_v16 = vrot.slane %v11916_v36, 6  ;;  %v12435_v53 = vld [vmem:[%s14889_s1 + $0x14] sm:$0xf] }
  0xa6   : > { %v12424_v52 = vsel %vm521_vm3, %v571_v34, %v572_v25  ;;  %v12428_v41 = vsel %vm521_vm3, %v572_v25, %v574_v30  ;;  %v579_v4 = vrot.slane %v11969_v12, 6  ;;  %v583_v12 = vrot.slane %v11990_v26, 6  ;;  %v15219_v25 = vld [vmem:[#allocation36_spill] sm:$0xff] }
  0xa7   : > { %9409 = vmatmul.mubr.msk.f32.gmra.mrb[52].mxu1 %vm223_vm1, %v12322_v35  ;;  %9560 = vmatmul.mubr.msk.f32.gmra.mrb[46].mxu0 %vm223_vm1, %v12186_v47  ;;  %v12395_v13 = vsel %vm521_vm3, %v564_v60, %v565_v57  ;;  %v12407_v2 = vsel %vm521_vm3, %v565_v57, %v567_v63  ;;  %v12412_v36 = vsel %vm521_vm3, %v567_v63, %v569_v16  ;;  %v588_v26 = vrot.slane %v12012_v61, 6  ;;  %v15216_v57 = vld [vmem:[#allocation32_spill] sm:$0xff] }
  0xa8   : > { %9428 = vmatprep.mubr.msk.f32.mxu1 %vm223_vm1, %v12328_v7  ;;  %9562 = vmatprep.mubr.msk.f32.mxu0 %vm223_vm1, %v12188_v37  ;;  %15209 = vst [vmem:[#allocation69_spill] sm:$0xff] %v12424_v52  ;;  %15210 = vst [vmem:[#allocation70_spill] sm:$0xff] %v12428_v41  ;;  %v12452_v50 = vsel %vm521_vm3, %v578_v29, %v579_v4  ;;  %v12471_v22 = vsel %vm521_vm3, %v581_v5, %v583_v12  ;;  %v592_v61 = vrot.slane %v12033_v9, 6 }
  0xa9   : > { %15212 = vst [vmem:[#allocation72_spill] sm:$0xff] %v12452_v50  ;;  %v593_v60 = vrot.slane %v12035_v24, 6  ;;  %v595_v63 = vrot.slane %v15216_v57, 6  ;;  %v15218_v24 = vld [vmem:[#allocation33_spill] sm:$0xff]  ;;  %v15224_v57 = vld [vmem:[#allocation43_spill] sm:$0xff] }
  0xaa   : > { %v597_v16 = vrot.slane %v15218_v24, 6 }
  0xab   : > { %9429 = vmatmul.mubr.msk.f32.vlgmr.msra.gmra.mrb[10].mxu1 %vm223_vm1, %v12341_v62  ;;  %9563 = vmatmul.mubr.msk.f32.gmra.mrb[48].mxu0 %vm223_vm1, %v12208_v45  ;;  %v12504_v9 = vsel %vm521_vm3, %v592_v61, %v593_v60  ;;  %v12516_v34 = vsel %vm521_vm3, %v593_v60, %v595_v63  ;;  %v15223_v61 = vld [vmem:[#allocation42_spill] sm:$0xff] }
  0xac   : > { %9431 = vmatprep.mubr.msk.f32.mxu1 %vm223_vm1, %v12345_v28  ;;  %9565 = vmatprep.mubr.msk.f32.mxu0 %vm223_vm1, %v12210_v6  ;;  %15217 = vst [vmem:[#allocation32_spill] sm:$0xff] %v12504_v9  ;;  %v606_v60 = vrot.slane %v15223_v61, 6 }
  0xaf   : > { %9432 = vmatmul.mubr.msk.f32.gmra.mrb[12].mxu1 %vm223_vm1, %v12357_v31  ;;  %9566 = vmatmul.mubr.msk.f32.gmra.mrb[50].mxu0 %vm223_vm1, %v12229_v17 }
  0xb0   : > { %9434 = vmatprep.mubr.msk.f32.mxu1 %vm223_vm1, %v12362_v42  ;;  %9568 = vmatprep.mubr.msk.f32.mxu0 %vm223_vm1, %v12233_v10 }
  0xb3   : > { %9435 = vmatmul.mubr.msk.f32.gmra.mrb[14].mxu1 %vm223_vm1, %v12374_v56  ;;  %9569 = vmatmul.mubr.msk.f32.gmra.mrb[52].mxu0 %vm223_vm1, %v12252_v44 }
  0xb4   : > { %9437 = vmatprep.mubr.msk.f32.mxu1 %vm223_vm1, %v12378_v38  ;;  %9571 = vmatprep.mubr.msk.f32.mxu0 %vm223_vm1, %v12254_v40 }
  0xb7   : > { %9438 = vmatmul.mubr.msk.f32.gmra.mrb[16].mxu1 %vm223_vm1, %v12391_v8  ;;  %9572 = vmatmul.mubr.msk.f32.gmra.mrb[54].mxu0 %vm223_vm1, %v12274_v27 }
  0xb8   : > { %9440 = vmatprep.mubr.msk.f32.mxu1 %vm223_vm1, %v12395_v13  ;;  %9574 = vmatprep.mubr.msk.f32.mxu0 %vm223_vm1, %v12276_v19 }
  0xbb   : > { %9441 = vmatmul.mubr.msk.f32.gmra.mrb[18].mxu1 %vm223_vm1, %v12407_v2  ;;  %9575 = vmatmul.mubr.msk.f32.gmra.mrb[56].mxu0 %vm223_vm1, %v12295_v3 }
  0xbc   : > { %9443 = vmatprep.mubr.msk.f32.mxu1 %vm223_vm1, %v12412_v36  ;;  %9579 = vmatprep.mubr.msk.f32.mxu0 %vm223_vm1, %v11700_v46  ;;  %v12446_v46 = vsel %vm521_vm3, %v574_v30, %v576_v55  ;;  %v599_v30 = vrot.slane %v15219_v25, 6  ;;  %v15220_v55 = vld [vmem:[#allocation37_spill] sm:$0xff] }
  0xbd   : > { %15211 = vst [vmem:[#allocation71_spill] sm:$0xff] %v12446_v46  ;;  %v600_v29 = vrot.slane %v15220_v55, 6 }
  0xbf   : > { %9444 = vmatmul.mubr.msk.f32.gmra.mrb[20].mxu1 %vm223_vm1, %v12424_v52  ;;  %9580 = vmatmul.mubr.msk.f32.vlgmr.msra.gmra.mrb[58].mxu0 %vm223_vm1, %v11711_v51  ;;  %v12466_v51 = vsel %vm521_vm3, %v579_v4, %v581_v5  ;;  %v12521_v4 = vsel %vm521_vm3, %v595_v63, %v597_v16  ;;  %v15221_v5 = vld [vmem:[#allocation38_spill] sm:$0xff]  ;;  %v607_v63 = vrot.slane %v15224_v57, 6  ;;  %v609_v16 = vrot.slane %v12120_v54, 6 }
  0xc0   : > { %9661 = vmatpush3.msk.msra.mxu0 %vm886_vm0, %v11922_v39  ;;  %9446 = vmatprep.mubr.msk.f32.mxu1 %vm223_vm1, %v12428_v41  ;;  %15213 = vst [vmem:[#allocation73_spill] sm:$0xff] %v12466_v51  ;;  %v586_v39 = vrot.slane %v12010_v11, 6  ;;  %v590_v11 = vrot.slane %v12031_v23, 6  ;;  %v602_v12 = vrot.slane %v15221_v5, 6 }
  0xc1   : > { %9582 = vmatprep.mubr.msk.f32.mxu0 %vm223_vm1, %v11734_v58  ;;  %9743 = vmatprep.subr.msk.mxu0 %vm886_vm0, %v12435_v53  ;;  %v585_v58 = vrot.slane %v12008_v49, 6  ;;  %v12554_v25 = vsel %vm521_vm3, %v606_v60, %v607_v63  ;;  %v12566_v55 = vsel %vm521_vm3, %v607_v63, %v609_v16  ;;  %v618_v60 = vrot.slane %v12163_v14, 6  ;;  %v15227_v63 = vld [vmem:[#allocation51_spill] sm:$0xff] }
  0xc2   : > { %v12487_v59 = vsel %vm521_vm3, %v586_v39, %v588_v26  ;;  %v12500_v23 = vsel %vm521_vm3, %v588_v26, %v590_v11  ;;  %v12537_v11 = vsel %vm521_vm3, %v600_v29, %v602_v12 }
  0xc3   : > { %9447 = vmatmul.mubr.msk.f32.gmra.mrb[22].mxu1 %vm223_vm1, %v12446_v46  ;;  %9583 = vmatmul.mubr.msk.f32.gmra.mrb[60].mxu0 %vm223_vm1, %v11747_v1  ;;  %v12483_v49 = vsel %vm521_vm3, %v585_v58, %v586_v39  ;;  %15215 = vst [vmem:[#allocation75_spill] sm:$0xff] %v12500_v23  ;;  %v12533_v58 = vsel %vm521_vm3, %v599_v30, %v600_v29  ;;  %v15222_v39 = vld [vmem:[#allocation41_spill] sm:$0xff]  ;;  %v611_v30 = vrot.slane %v12122_v48, 6  ;;  %v15225_v29 = vld [vmem:[#allocation48_spill] sm:$0xff] }
  0xc4   : > { %9449 = vmatprep.mubr.msk.f32.mxu1 %vm223_vm1, %v12452_v50  ;;  %9585 = vmatprep.mubr.msk.f32.mxu0 %vm223_vm1, %v11774_v15  ;;  %15214 = vst [vmem:[#allocation74_spill] sm:$0xff] %v12483_v49  ;;  %v604_v26 = vrot.slane %v15222_v39, 6  ;;  %v613_v5 = vrot.slane %v15225_v29, 6 }
  0xc5   : > { %v12571_v39 = vsel %vm521_vm3, %v609_v16, %v611_v30  ;;  %v620_v16 = vrot.slane %v15227_v63, 6  ;;  %v621_v30 = vrot.slane %v12167_v43, 6  ;;  %v625_v63 = vrot.slane %v12188_v37, 6 }
  0xc6   : > { %v12550_v24 = vsel %vm521_vm3, %v602_v12, %v604_v26  ;;  %v614_v12 = vrot.slane %v12142_v32, 6  ;;  %v616_v26 = vrot.slane %v12144_v20, 6 }
  0xc7   : > { %9450 = vmatmul.mubr.msk.f32.gmra.mrb[24].mxu1 %vm223_vm1, %v12466_v51  ;;  %9586 = vmatmul.mubr.msk.f32.gmra.mrb[4].mxu0 %vm223_vm1, %v11783_v21 }
  0xc8   : > { %9452 = vmatprep.mubr.msk.f32.mxu1 %vm223_vm1, %v12471_v22  ;;  %9588 = vmatprep.mubr.msk.f32.mxu0 %vm223_vm1, %v11813_v33  ;;  %v12583_v61 = vsel %vm521_vm3, %v613_v5, %v614_v12  ;;  %v12587_v57 = vsel %vm521_vm3, %v614_v12, %v616_v26  ;;  %v12600_v29 = vsel %vm521_vm3, %v616_v26, %v618_v60  ;;  %v623_v5 = vrot.slane %v12186_v47, 6  ;;  %v15231_v60 = vld [vmem:[#allocation56_spill] sm:$0xff] }
  0xc9   : > { %15226 = vst [vmem:[#allocation33_spill] sm:$0xff] %v12587_v57  ;;  %15228 = vst [vmem:[#allocation36_spill] sm:$0xff] %v12600_v29  ;;  %v12604_v12 = vsel %vm521_vm3, %v620_v16, %v621_v30  ;;  %v627_v16 = vrot.slane %v15231_v60, 6  ;;  %v15233_v60 = vld [vmem:[#allocation59_spill] sm:$0xff] }
  0xca   : > { %15229 = vst [vmem:[#allocation37_spill] sm:$0xff] %v12604_v12  ;;  %v12616_v26 = vsel %vm521_vm3, %v621_v30, %v623_v5 }
  0xcb   : > { %9453 = vmatmul.mubr.msk.f32.gmra.mrb[26].mxu1 %vm223_vm1, %v12483_v49  ;;  %9589 = vmatmul.mubr.msk.f32.gmra.mrb[6].mxu0 %vm223_vm1, %v12328_v7  ;;  %15230 = vst [vmem:[#allocation38_spill] sm:$0xff] %v12616_v26 }
  0xcc   : > { %9455 = vmatprep.mubr.msk.f32.mxu1 %vm223_vm1, %v12487_v59  ;;  %9591 = vmatprep.mubr.msk.f32.mxu0 %vm223_vm1, %v12341_v62 }
  0xcf   : > { %9456 = vmatmul.mubr.msk.f32.gmra.mrb[28].mxu1 %vm223_vm1, %v12500_v23  ;;  %9592 = vmatmul.mubr.msk.f32.gmra.mrb[8].mxu0 %vm223_vm1, %v12345_v28 }
  0xd0   : > { %9458 = vmatprep.mubr.msk.f32.mxu1 %vm223_vm1, %v12504_v9  ;;  %9594 = vmatprep.mubr.msk.f32.mxu0 %vm223_vm1, %v12357_v31 }
  0xd3   : > { %9459 = vmatmul.mubr.msk.f32.gmra.mrb[30].mxu1 %vm223_vm1, %v12516_v34  ;;  %9595 = vmatmul.mubr.msk.f32.gmra.mrb[14].mxu0 %vm223_vm1, %v12362_v42 }
  0xd4   : > { %9461 = vmatprep.mubr.msk.f32.mxu1 %vm223_vm1, %v12521_v4  ;;  %9597 = vmatprep.mubr.msk.f32.mxu0 %vm223_vm1, %v12374_v56 }
  0xd7   : > { %9462 = vmatmul.mubr.msk.f32.gmra.mrb[32].mxu1 %vm223_vm1, %v12533_v58  ;;  %9598 = vmatmul.mubr.msk.f32.gmra.mrb[16].mxu0 %vm223_vm1, %v12378_v38 }
  0xd8   : > { %9464 = vmatprep.mubr.msk.f32.mxu1 %vm223_vm1, %v12537_v11  ;;  %9600 = vmatprep.mubr.msk.f32.mxu0 %vm223_vm1, %v12391_v8 }
  0xdb   : > { %9465 = vmatmul.mubr.msk.f32.gmra.mrb[34].mxu1 %vm223_vm1, %v12550_v24  ;;  %9601 = vmatmul.mubr.msk.f32.gmra.mrb[18].mxu0 %vm223_vm1, %v12395_v13 }
  0xdc   : > { %9467 = vmatprep.mubr.msk.f32.mxu1 %vm223_vm1, %v12554_v25  ;;  %9603 = vmatprep.mubr.msk.f32.mxu0 %vm223_vm1, %v12407_v2 }
  0xdf   : > { %9468 = vmatmul.mubr.msk.f32.gmra.mrb[36].mxu1 %vm223_vm1, %v12566_v55  ;;  %9604 = vmatmul.mubr.msk.f32.gmra.mrb[20].mxu0 %vm223_vm1, %v12412_v36 }
  0xe0   : > { %9470 = vmatprep.mubr.msk.f32.mxu1 %vm223_vm1, %v12571_v39  ;;  %9606 = vmatprep.mubr.msk.f32.mxu0 %vm223_vm1, %v12424_v52  ;;  %v630_v52 = vrot.slane %v12210_v6, 6 }
  0xe3   : > { %9471 = vmatmul.mubr.msk.f32.gmra.mrb[38].mxu1 %vm223_vm1, %v12583_v61  ;;  %9607 = vmatmul.mubr.msk.f32.gmra.mrb[22].mxu0 %vm223_vm1, %v12428_v41  ;;  %v12621_v41 = vsel %vm521_vm3, %v623_v5, %v625_v63  ;;  %v632_v5 = vrot.slane %v12229_v17, 6 }
  0xe4   : > { %9473 = vmatprep.mubr.msk.f32.mxu1 %vm223_vm1, %v12587_v57  ;;  %9609 = vmatprep.mubr.msk.f32.mxu0 %vm223_vm1, %v12446_v46  ;;  %v628_v46 = vrot.slane %v12208_v45, 6  ;;  %15232 = vst [vmem:[#allocation41_spill] sm:$0xff] %v12621_v41 }
  0xe6   : > { %v12633_v30 = vsel %vm521_vm3, %v627_v16, %v628_v46  ;;  %v12637_v63 = vsel %vm521_vm3, %v628_v46, %v630_v52  ;;  %v12650_v16 = vsel %vm521_vm3, %v630_v52, %v632_v5  ;;  %v637_v46 = vrot.slane %v12252_v44, 6 }
  0xe7   : > { %9474 = vmatmul.mubr.msk.f32.gmra.mrb[40].mxu1 %vm223_vm1, %v12600_v29  ;;  %9610 = vmatmul.mubr.msk.f32.gmra.mrb[24].mxu0 %vm223_vm1, %v12452_v50  ;;  %v635_v50 = vrot.slane %v12233_v10, 6  ;;  %15234 = vst [vmem:[#allocation42_spill] sm:$0xff] %v12650_v16  ;;  %v642_v5 = vrot.slane %v12274_v27, 6 }
  0xe8   : > { %9476 = vmatprep.mubr.msk.f32.mxu1 %vm223_vm1, %v12604_v12  ;;  %9612 = vmatprep.mubr.msk.f32.mxu0 %vm223_vm1, %v12466_v51  ;;  %v634_v51 = vrot.slane %v15233_v60, 6 }
  0xe9   : > { %v12666_v52 = vsel %vm521_vm3, %v635_v50, %v637_v46 }
  0xea   : > { %v12654_v60 = vsel %vm521_vm3, %v634_v51, %v635_v50  ;;  %15236 = vst [vmem:[#allocation48_spill] sm:$0xff] %v12666_v52  ;;  %v641_v51 = vrot.slane %v12272_v0, 6  ;;  %v646_v50 = vrot.slane %v12295_v3, 6 }
  0xeb   : > { %9477 = vmatmul.mubr.msk.f32.gmra.mrb[42].mxu1 %vm223_vm1, %v12616_v26  ;;  %9613 = vmatmul.mubr.msk.f32.gmra.mrb[26].mxu0 %vm223_vm1, %v12471_v22  ;;  %15235 = vst [vmem:[#allocation43_spill] sm:$0xff] %v12654_v60 }
  0xec   : > { %9479 = vmatprep.mubr.msk.f32.mxu1 %vm223_vm1, %v12621_v41  ;;  %9615 = vmatprep.mubr.msk.f32.mxu0 %vm223_vm1, %v12483_v49  ;;  %v639_v49 = vrot.slane %v12254_v40, 6  ;;  %v12683_v0 = vsel %vm521_vm3, %v641_v51, %v642_v5 }
  0xed   : > { %15238 = vst [vmem:[#allocation56_spill] sm:$0xff] %v12683_v0 }
  0xef   : > { %9480 = vmatmul.mubr.msk.f32.gmra.mrb[44].mxu1 %vm223_vm1, %v12633_v30  ;;  %9616 = vmatmul.mubr.msk.f32.gmra.mrb[28].mxu0 %vm223_vm1, %v12487_v59 }
  0xf0   : > { %9482 = vmatprep.mubr.msk.f32.mxu1 %vm223_vm1, %v12637_v63  ;;  %9618 = vmatprep.mubr.msk.f32.mxu0 %vm223_vm1, %v12500_v23  ;;  %v12671_v23 = vsel %vm521_vm3, %v637_v46, %v639_v49 }
  0xf1   : > { %15237 = vst [vmem:[#allocation51_spill] sm:$0xff] %v12671_v23 }
  0xf3   : > { %9483 = vmatmul.mubr.msk.f32.gmra.mrb[46].mxu1 %vm223_vm1, %v12650_v16  ;;  %9619 = vmatmul.mubr.msk.f32.gmra.mrb[30].mxu0 %vm223_vm1, %v12504_v9  ;;  %v644_v9 = vrot.slane %v12276_v19, 6 }
  0xf4   : > { %9485 = vmatprep.mubr.msk.f32.mxu1 %vm223_vm1, %v12654_v60  ;;  %9621 = vmatprep.mubr.msk.f32.mxu0 %vm223_vm1, %v12516_v34 }
  0xf5   : > { %v12691_v49 = vsel %vm521_vm3, %v642_v5, %v644_v9  ;;  %v12698_v46 = vsel %vm521_vm3, %v644_v9, %v646_v50 }
  0xf6   : > { %15239 = vst [vmem:[#allocation59_spill] sm:$0xff] %v12691_v49  ;;  %15240 = vst [vmem:[#allocation76_spill] sm:$0xff] %v12698_v46 }
  0xf7   : > { %9486 = vmatmul.mubr.msk.f32.gmra.mrb[48].mxu1 %vm223_vm1, %v12666_v52  ;;  %9622 = vmatmul.mubr.msk.f32.gmra.mrb[32].mxu0 %vm223_vm1, %v12521_v4  ;;  %v9332_v51 = vpop.f32.mrb[0].mxu1 }
  0xf8   : > { %9488 = vmatprep.mubr.msk.f32.mxu1 %vm223_vm1, %v12671_v23  ;;  %9624 = vmatprep.mubr.msk.f32.mxu0 %vm223_vm1, %v12533_v58  ;;  %v9415_v9 = vpop.f32.mrb[0].mxu0  ;;  %v956_v50 = vpop.f32.mrb[1].mxu1  ;;  %v12732_v51 = vld [vmem:[#allocation2 + $0x248] sm:$0xff] }
  0xf9   : > { %v1402_v5 = vpop.f32.mrb[1].mxu0  ;;  %v12730_v9 = vld [vmem:[#allocation2 + $0x240] sm:$0xff] }
  0xfa   : > { %v12734_v5 = vld [vmem:[#allocation2 + $0x250] sm:$0xff] }
  0xfb   : > { %9489 = vmatmul.mubr.msk.f32.gmra.mrb[54].mxu1 %vm223_vm1, %v12683_v0  ;;  %9625 = vmatmul.mubr.msk.f32.gmra.mrb[34].mxu0 %vm223_vm1, %v12537_v11 }
  0xfc   : > { %9627 = vmatprep.mubr.msk.f32.mxu0 %vm223_vm1, %v12550_v24  ;;  %9491 = vmatprep.mubr.msk.f32.mxu1 %vm223_vm1, %v12691_v49 }
  0xff   : > { %9628 = vmatmul.mubr.msk.f32.gmra.mrb[36].mxu0 %vm223_vm1, %v12554_v25  ;;  %9492 = vmatmul.mubr.msk.f32.gmra.mrb[56].mxu1 %vm223_vm1, %v12698_v46 }
 0x100   : > { %9630 = vmatprep.mubr.msk.f32.mxu0 %vm223_vm1, %v12566_v55 }
 0x103   : > { %9631 = vmatmul.mubr.msk.f32.gmra.mrb[38].mxu0 %vm223_vm1, %v12571_v39 }
 0x104   : > { %9633 = vmatprep.mubr.msk.f32.mxu0 %vm223_vm1, %v12583_v61 }
 0x107   : > { %9634 = vmatmul.mubr.msk.f32.gmra.mrb[40].mxu0 %vm223_vm1, %v12587_v57 }
 0x108   : > { %9636 = vmatprep.mubr.msk.f32.mxu0 %vm223_vm1, %v12600_v29  ;;  %v9418_v29 = vpop.f32.mrb[2].mxu0 }
 0x10b   : > { %9637 = vmatmul.mubr.msk.f32.gmra.mrb[42].mxu0 %vm223_vm1, %v12604_v12  ;;  %v9335_v12 = vpop.f32.mrb[2].mxu1 }
 0x10c   : > { %9639 = vmatprep.mubr.msk.f32.mxu0 %vm223_vm1, %v12616_v26  ;;  %v1418_v57 = vadd.f32 %v9418_v29, %v9335_v12  ;;  %v1412_v26 = vpop.f32.mrb[3].mxu0  ;;  %v2177_v29 = vrot.slane %v12730_v9, 6 }
 0x10d   : > { %v2180_v26 = vrot.slane %v12734_v5, 6 }
 0x10f   : > { %9640 = vmatmul.mubr.msk.f32.gmra.mrb[44].mxu0 %vm223_vm1, %v12621_v41  ;;  %v966_v41 = vpop.f32.mrb[3].mxu1 }
 0x110   : > { %9642 = vmatprep.mubr.msk.f32.mxu0 %vm223_vm1, %v12633_v30  ;;  %v12738_v50 = vpop.f32.mrb[4].mxu1  ;;  %v2178_v41 = vrot.slane %v12732_v51, 6 }
 0x111   : > { %15241 = vst [vmem:[#allocation77_spill] sm:$0xff] %v12738_v50  ;;  %v12744_v12 = vpop.f32.mrb[5].mxu1 }
 0x112   : > { %15242 = vst [vmem:[#allocation78_spill] sm:$0xff] %v12744_v12  ;;  %v12758_v50 = vsel %vm521_vm3, %v2177_v29, %v2178_v41  ;;  %v12762_v12 = vsel %vm521_vm3, %v2178_v41, %v2180_v26  ;;  %v15250_v41 = vld [vmem:[#allocation6_spill] sm:$0xff] }
 0x113   : > { %9643 = vmatmul.mubr.msk.f32.gmra.mrb[46].mxu0 %vm223_vm1, %v12637_v63  ;;  %15245 = vst [vmem:[#allocation81_spill] sm:$0xff] %v12758_v50  ;;  %15246 = vst [vmem:[#allocation82_spill] sm:$0xff] %v12762_v12 }
 0x114   : > { %9645 = vmatprep.mubr.msk.f32.mxu0 %vm223_vm1, %v12650_v16 }
 0x117   : > { %9646 = vmatmul.mubr.msk.f32.gmra.mrb[48].mxu0 %vm223_vm1, %v12654_v60 }
 0x118   : > { %9648 = vmatprep.mubr.msk.f32.mxu0 %vm223_vm1, %v12666_v52  ;;  %v12747_v52 = vld [vmem:[#allocation2 + $0x258] sm:$0xff] }
 0x11b   : > { %9649 = vmatmul.mubr.msk.f32.gmra.mrb[50].mxu0 %vm223_vm1, %v12671_v23 }
 0x11c   : > { %9651 = vmatprep.mubr.msk.f32.mxu0 %vm223_vm1, %v12683_v0  ;;  %v2182_v0 = vrot.slane %v12747_v52, 6 }
 0x11e   : > { %v12749_v60 = vpop.f32.mrb[6].mxu1 }
 0x11f   : > { %15243 = vst [vmem:[#allocation79_spill] sm:$0xff] %v12749_v60  ;;  %9652 = vmatmul.mubr.msk.f32.gmra.mrb[52].mxu0 %vm223_vm1, %v12691_v49  ;;  %v12753_v23 = vpop.f32.mrb[7].mxu1  ;;  %v15251_v49 = vld [vmem:[#allocation7_spill] sm:$0xff] }
 0x120   : > { %15244 = vst [vmem:[#allocation80_spill] sm:$0xff] %v12753_v23  ;;  %9654 = vmatprep.mubr.msk.f32.mxu0 %vm223_vm1, %v12698_v46  ;;  %v12773_v23 = vsel %vm521_vm3, %v2180_v26, %v2182_v0  ;;  %v15252_v0 = vld [vmem:[#allocation8_spill] sm:$0xff]  ;;  %v15254_v26 = vld [vmem:[#allocation10_spill] sm:$0xff] }
 0x121   : > { %15249 = vst [vmem:[#allocation85_spill] sm:$0xff] %v12773_v23 }
 0x122   : > { %v12764_v16 = vpop.f32.mrb[8].mxu1 }
 0x123   : > { %15247 = vst [vmem:[#allocation83_spill] sm:$0xff] %v12764_v16  ;;  %9655 = vmatmul.mubr.msk.f32.gmra.mrb[62].mxu0 %vm223_vm1, %v12758_v50  ;;  %v12768_v60 = vpop.f32.mrb[9].mxu1  ;;  %v12782_v50 = vld [vmem:[%s14889_s1 + $0x18] sm:$0xf] }
 0x124   : > { %15248 = vst [vmem:[#allocation84_spill] sm:$0xff] %v12768_v60  ;;  %9657 = vmatprep.mubr.msk.f32.mxu0 %vm223_vm1, %v12762_v12 }
 0x126   : > { %v9498_v29 = vpop.f32.mrb[10].mxu0 }
 0x127   : > { %v1850_v46 = vpop.f32.mrb[11].mxu0  ;;  %9658 = vmatmul.mubr.msk.f32.gmra.mrb[64].mxu0 %vm223_vm1, %v12773_v23  ;;  %v15260_v29 = vld [vmem:[#allocation16_spill] sm:$0xff] }
 0x128   : > { %9662 = vmatprep.mubr.msk.f32.mxu0 %vm223_vm1, %v15250_v41  ;;  %v15253_v46 = vld [vmem:[#allocation9_spill] sm:$0xff] }
 0x129   : > { %v15261_v41 = vld [vmem:[#allocation17_spill] sm:$0xff] }
 0x12a   : > { %v9501_v16 = vpop.f32.mrb[12].mxu0 }
 0x12b   : > { %v12784_v60 = vadd.f32 %v9501_v16, %v1418_v57  ;;  %v1860_v12 = vpop.f32.mrb[13].mxu0  ;;  %9663 = vmatmul.mubr.msk.f32.vlgmr.msra.gmra.mrb[66].mxu0 %vm223_vm1, %v15251_v49  ;;  %v15255_v57 = vld [vmem:[#allocation11_spill] sm:$0xff]  ;;  %v15256_v16 = vld [vmem:[#allocation12_spill] sm:$0xff]  ;;  %v15257_v49 = vld [vmem:[#allocation13_spill] sm:$0xff] }
 0x12c   : > { %9744 = vmatpush3.msk.msra.mxu0 %vm886_vm0, %v12435_v53  ;;  %9665 = vmatprep.mubr.msk.f32.mxu0 %vm223_vm1, %v15252_v0  ;;  %v15258_v53 = vld [vmem:[#allocation14_spill] sm:$0xff]  ;;  %v15259_v12 = vld [vmem:[#allocation15_spill] sm:$0xff] }
 0x12d   : > { %9826 = vmatprep.subr.msk.mxu0 %vm886_vm0, %v12782_v50  ;;  %v15262_v0 = vld [vmem:[#allocation18_spill] sm:$0xff] }
 0x12f   : > { %9666 = vmatmul.mubr.msk.f32.gmra.mrb[68].mxu0 %vm223_vm1, %v15253_v46  ;;  %v15292_v46 = vld [vmem:[#allocation60_spill] sm:$0xff] }
 0x130   : > { %9668 = vmatprep.mubr.msk.f32.mxu0 %vm223_vm1, %v15254_v26  ;;  %v15290_v26 = vld [vmem:[#allocation57_spill] sm:$0xff] }
 0x133   : > { %9669 = vmatmul.mubr.msk.f32.gmra.mrb[4].mxu0 %vm223_vm1, %v15255_v57  ;;  %v15263_v57 = vld [vmem:[#allocation19_spill] sm:$0xff] }
 0x134   : > { %9671 = vmatprep.mubr.msk.f32.mxu0 %vm223_vm1, %v15256_v16  ;;  %v15264_v16 = vld [vmem:[#allocation20_spill] sm:$0xff] }
 0x137   : > { %9672 = vmatmul.mubr.msk.f32.gmra.mrb[6].mxu0 %vm223_vm1, %v15257_v49  ;;  %v15265_v49 = vld [vmem:[#allocation21_spill] sm:$0xff] }
 0x138   : > { %9674 = vmatprep.mubr.msk.f32.mxu0 %vm223_vm1, %v15258_v53  ;;  %v15266_v53 = vld [vmem:[#allocation22_spill] sm:$0xff] }
 0x13b   : > { %9675 = vmatmul.mubr.msk.f32.gmra.mrb[8].mxu0 %vm223_vm1, %v15259_v12  ;;  %v15267_v12 = vld [vmem:[#allocation23_spill] sm:$0xff] }
 0x13c   : > { %9677 = vmatprep.mubr.msk.f32.mxu0 %vm223_vm1, %v15260_v29  ;;  %v15268_v29 = vld [vmem:[#allocation24_spill] sm:$0xff] }
 0x13f   : > { %9678 = vmatmul.mubr.msk.f32.gmra.mrb[14].mxu0 %vm223_vm1, %v15261_v41  ;;  %v15269_v41 = vld [vmem:[#allocation25_spill] sm:$0xff] }
 0x140   : > { %9680 = vmatprep.mubr.msk.f32.mxu0 %vm223_vm1, %v15262_v0  ;;  %v15270_v0 = vld [vmem:[#allocation26_spill] sm:$0xff] }
 0x143   : > { %9681 = vmatmul.mubr.msk.f32.gmra.mrb[16].mxu0 %vm223_vm1, %v15263_v57  ;;  %v15271_v57 = vld [vmem:[#allocation27_spill] sm:$0xff] }
 0x144   : > { %9683 = vmatprep.mubr.msk.f32.mxu0 %vm223_vm1, %v15264_v16  ;;  %v15272_v16 = vld [vmem:[#allocation28_spill] sm:$0xff] }
 0x147   : > { %9684 = vmatmul.mubr.msk.f32.gmra.mrb[18].mxu0 %vm223_vm1, %v15265_v49  ;;  %v15273_v49 = vld [vmem:[#allocation29_spill] sm:$0xff] }
 0x148   : > { %9686 = vmatprep.mubr.msk.f32.mxu0 %vm223_vm1, %v15266_v53  ;;  %v15274_v53 = vld [vmem:[#allocation30_spill] sm:$0xff] }
 0x14b   : > { %9687 = vmatmul.mubr.msk.f32.gmra.mrb[20].mxu0 %vm223_vm1, %v15267_v12  ;;  %v15275_v12 = vld [vmem:[#allocation31_spill] sm:$0xff] }
 0x14c   : > { %9689 = vmatprep.mubr.msk.f32.mxu0 %vm223_vm1, %v15268_v29  ;;  %v15276_v29 = vld [vmem:[#allocation34_spill] sm:$0xff] }
 0x14f   : > { %9690 = vmatmul.mubr.msk.f32.gmra.mrb[22].mxu0 %vm223_vm1, %v15269_v41  ;;  %v15277_v41 = vld [vmem:[#allocation35_spill] sm:$0xff] }
 0x150   : > { %9692 = vmatprep.mubr.msk.f32.mxu0 %vm223_vm1, %v15270_v0  ;;  %v15278_v0 = vld [vmem:[#allocation39_spill] sm:$0xff] }
 0x153   : > { %9693 = vmatmul.mubr.msk.f32.gmra.mrb[24].mxu0 %vm223_vm1, %v15271_v57  ;;  %v15279_v57 = vld [vmem:[#allocation40_spill] sm:$0xff] }
 0x154   : > { %9695 = vmatprep.mubr.msk.f32.mxu0 %vm223_vm1, %v15272_v16  ;;  %v15280_v16 = vld [vmem:[#allocation44_spill] sm:$0xff] }
 0x157   : > { %9696 = vmatmul.mubr.msk.f32.gmra.mrb[26].mxu0 %vm223_vm1, %v15273_v49  ;;  %v15281_v49 = vld [vmem:[#allocation45_spill] sm:$0xff] }
 0x158   : > { %9698 = vmatprep.mubr.msk.f32.mxu0 %vm223_vm1, %v15274_v53  ;;  %v15282_v53 = vld [vmem:[#allocation46_spill] sm:$0xff] }
 0x15b   : > { %9699 = vmatmul.mubr.msk.f32.gmra.mrb[28].mxu0 %vm223_vm1, %v15275_v12  ;;  %v15283_v12 = vld [vmem:[#allocation47_spill] sm:$0xff] }
 0x15c   : > { %9701 = vmatprep.mubr.msk.f32.mxu0 %vm223_vm1, %v15276_v29  ;;  %v15284_v29 = vld [vmem:[#allocation49_spill] sm:$0xff] }
 0x15f   : > { %9702 = vmatmul.mubr.msk.f32.gmra.mrb[30].mxu0 %vm223_vm1, %v15277_v41  ;;  %v15285_v41 = vld [vmem:[#allocation50_spill] sm:$0xff] }
 0x160   : > { %9704 = vmatprep.mubr.msk.f32.mxu0 %vm223_vm1, %v15278_v0  ;;  %v15286_v0 = vld [vmem:[#allocation52_spill] sm:$0xff] }
 0x163   : > { %9705 = vmatmul.mubr.msk.f32.gmra.mrb[32].mxu0 %vm223_vm1, %v15279_v57  ;;  %v15287_v57 = vld [vmem:[#allocation53_spill] sm:$0xff] }
 0x164   : > { %9707 = vmatprep.mubr.msk.f32.mxu0 %vm223_vm1, %v15280_v16  ;;  %v15288_v16 = vld [vmem:[#allocation54_spill] sm:$0xff] }
 0x167   : > { %9708 = vmatmul.mubr.msk.f32.gmra.mrb[34].mxu0 %vm223_vm1, %v15281_v49 }
 0x168   : > { %9710 = vmatprep.mubr.msk.f32.mxu0 %vm223_vm1, %v15282_v53  ;;  %v15289_v53 = vld [vmem:[#allocation55_spill] sm:$0xff] }
 0x16b   : > { %9711 = vmatmul.mubr.msk.f32.gmra.mrb[36].mxu0 %vm223_vm1, %v15283_v12 }
 0x16c   : > { %9713 = vmatprep.mubr.msk.f32.mxu0 %vm223_vm1, %v15284_v29 }
 0x16f   : > { %9714 = vmatmul.mubr.msk.f32.gmra.mrb[38].mxu0 %vm223_vm1, %v15285_v41  ;;  %v15291_v41 = vld [vmem:[#allocation58_spill] sm:$0xff] }
 0x170   : > { %9716 = vmatprep.mubr.msk.f32.mxu0 %vm223_vm1, %v15286_v0 }
 0x173   : > { %9717 = vmatmul.mubr.msk.f32.gmra.mrb[40].mxu0 %vm223_vm1, %v15287_v57 }
 0x174   : > { %9719 = vmatprep.mubr.msk.f32.mxu0 %vm223_vm1, %v15288_v16  ;;  %v15294_v16 = vld [vmem:[#allocation61_spill] sm:$0xff] }
 0x176   : > { %v9407_v49 = vpop.f32.mrb[50].mxu1 }
 0x177   : > { %9720 = vmatmul.mubr.msk.f32.gmra.mrb[42].mxu0 %vm223_vm1, %v15289_v53  ;;  %v12868_v12 = vpop.f32.mrb[51].mxu1  ;;  %v15296_v53 = vld [vmem:[#allocation62_spill] sm:$0xff] }
 0x178   : > { %9722 = vmatprep.mubr.msk.f32.mxu0 %vm223_vm1, %v15290_v26 }
 0x17a   : > { %v9410_v29 = vpop.f32.mrb[52].mxu1 }
 0x17b   : > { %9723 = vmatmul.mubr.msk.f32.gmra.mrb[44].mxu0 %vm223_vm1, %v15291_v41  ;;  %v1216_v0 = vpop.f32.mrb[53].mxu1  ;;  %v15298_v29 = vld [vmem:[#allocation63_spill] sm:$0xff] }
 0x17c   : > { %9725 = vmatprep.mubr.msk.f32.mxu0 %vm223_vm1, %v15292_v46  ;;  %v15300_v0 = vld [vmem:[#allocation64_spill] sm:$0xff] }
 0x17e   : > { %v12876_v57 = vpop.f32.mrb[10].mxu1 }
 0x17f   : > { %15293 = vst [vmem:[#allocation6_spill] sm:$0xff] %v12876_v57  ;;  %9726 = vmatmul.mubr.msk.f32.gmra.mrb[46].mxu0 %vm223_vm1, %v15294_v16  ;;  %v12880_v49 = vpop.f32.mrb[11].mxu1  ;;  %v15302_v57 = vld [vmem:[#allocation65_spill] sm:$0xff] }
 0x180   : > { %15295 = vst [vmem:[#allocation7_spill] sm:$0xff] %v12880_v49  ;;  %9728 = vmatprep.mubr.msk.f32.mxu0 %vm223_vm1, %v15296_v53  ;;  %v15304_v49 = vld [vmem:[#allocation66_spill] sm:$0xff]  ;;  %v2585_v53 = vrot.slane %v12732_v51, 7 }
 0x182   : > { %v12884_v23 = vpop.f32.mrb[12].mxu1 }
 0x183   : > { %15297 = vst [vmem:[#allocation8_spill] sm:$0xff] %v12884_v23  ;;  %9729 = vmatmul.mubr.msk.f32.gmra.mrb[48].mxu0 %vm223_vm1, %v15298_v29  ;;  %v12888_v41 = vpop.f32.mrb[13].mxu1  ;;  %v2584_v23 = vrot.slane %v12730_v9, 7  ;;  %v2587_v29 = vrot.slane %v12734_v5, 7  ;;  %v2589_v9 = vrot.slane %v12747_v52, 7 }
 0x184   : > { %15299 = vst [vmem:[#allocation86_spill] sm:$0xff] %v12888_v41  ;;  %9731 = vmatprep.mubr.msk.f32.mxu0 %vm223_vm1, %v15300_v0 }
 0x186   : > { %v12892_v46 = vpop.f32.mrb[14].mxu1 }
 0x187   : > { %15301 = vst [vmem:[#allocation87_spill] sm:$0xff] %v12892_v46  ;;  %9732 = vmatmul.mubr.msk.f32.gmra.mrb[50].mxu0 %vm223_vm1, %v15302_v57  ;;  %v12896_v16 = vpop.f32.mrb[15].mxu1 }
 0x188   : > { %15303 = vst [vmem:[#allocation88_spill] sm:$0xff] %v12896_v16  ;;  %9734 = vmatprep.mubr.msk.f32.mxu0 %vm223_vm1, %v15304_v49  ;;  %v12914_v16 = vsel %vm649_vm2, %v2584_v23, %v2585_v53  ;;  %v12918_v49 = vsel %vm649_vm2, %v2585_v53, %v2587_v29  ;;  %v12929_v23 = vsel %vm649_vm2, %v2587_v29, %v2589_v9  ;;  %v12943_v29 = vld [vmem:[%s14889_s1 + $0x1c] sm:$0xf] }
 0x18a   : > { %v9573_v41 = vpop.f32.mrb[54].mxu0  ;;  %v12903_v26 = vpop.f32.mrb[16].mxu1 }
 0x18b   : > { %15305 = vst [vmem:[#allocation89_spill] sm:$0xff] %v12903_v26  ;;  %v12905_v0 = vpop.f32.mrb[55].mxu0  ;;  %9735 = vmatmul.mubr.msk.f32.gmra.mrb[52].mxu0 %vm223_vm1, %v12310_v18  ;;  %v12909_v46 = vpop.f32.mrb[17].mxu1 }
 0x18c   : > { %15306 = vst [vmem:[#allocation90_spill] sm:$0xff] %v12909_v46  ;;  %9737 = vmatprep.mubr.msk.f32.mxu0 %vm223_vm1, %v12322_v35 }
 0x18e   : > { %v9576_v41 = vpop.f32.mrb[56].mxu0  ;;  %v12920_v26 = vpop.f32.mrb[18].mxu1 }
 0x18f   : > { %15307 = vst [vmem:[#allocation91_spill] sm:$0xff] %v12920_v26  ;;  %v2110_v57 = vpop.f32.mrb[57].mxu0  ;;  %9738 = vmatmul.mubr.msk.f32.gmra.mrb[70].mxu0 %vm223_vm1, %v12914_v16  ;;  %v12924_v18 = vpop.f32.mrb[19].mxu1 }
 0x190   : > { %15308 = vst [vmem:[#allocation92_spill] sm:$0xff] %v12924_v18  ;;  %9740 = vmatprep.mubr.msk.f32.mxu0 %vm223_vm1, %v12918_v49  ;;  %v11247_v57 = vld [vmem:[#allocation2 + $0x28] sm:$0xff] }
 0x192   : > { %v9581_v46 = vpop.f32.mrb[58].mxu0  ;;  %v12931_v35 = vpop.f32.mrb[20].mxu1 }
 0x193   : > { %15309 = vst [vmem:[#allocation93_spill] sm:$0xff] %v12931_v35  ;;  %v2261_v53 = vpop.f32.mrb[59].mxu0  ;;  %9741 = vmatmul.mubr.msk.f32.gmra.mrb[72].mxu0 %vm223_vm1, %v12929_v23  ;;  %v12935_v41 = vpop.f32.mrb[21].mxu1 }
 0x194   : > { %15310 = vst [vmem:[#allocation94_spill] sm:$0xff] %v12935_v41  ;;  %9745 = vmatprep.mubr.msk.f32.mxu0 %vm223_vm1, %v11247_v57  ;;  %v11248_v53 = vld [vmem:[#allocation2 + $0x30] sm:$0xff]  ;;  %v11249_v57 = vld [vmem:[#allocation2 + $0x38] sm:$0xff]  ;;  %v12958_v41 = vld [vmem:[#allocation2 + $0x48] sm:$0xff] }
 0x195   : > { %15314 = vst [vmem:[#allocation98_spill] sm:$0xff] %v12958_v41 }
 0x196   : > { %v9584_v26 = vpop.f32.mrb[60].mxu0  ;;  %v12938_v18 = vpop.f32.mrb[22].mxu1 }
 0x197   : > { %15311 = vst [vmem:[#allocation95_spill] sm:$0xff] %v12938_v18  ;;  %v12946_v46 = vadd.f32 %v9584_v26, %v12784_v60  ;;  %v2271_v9 = vpop.f32.mrb[61].mxu0  ;;  %9746 = vmatmul.mubr.msk.f32.vlgmr.msra.gmra.mrb[74].mxu0 %vm223_vm1, %v11248_v53  ;;  %v12949_v35 = vpop.f32.mrb[23].mxu1  ;;  %v12964_v26 = vld [vmem:[#allocation2 + $0x50] sm:$0xff] }
 0x198   : > { %15312 = vst [vmem:[#allocation96_spill] sm:$0xff] %v12949_v35  ;;  %9827 = vmatpush3.msk.msra.mxu0 %vm886_vm0, %v12782_v50  ;;  %9748 = vmatprep.mubr.msk.f32.mxu0 %vm223_vm1, %v11249_v57  ;;  %15316 = vst [vmem:[#allocation100_spill] sm:$0xff] %v12964_v26  ;;  %v12970_v9 = vld [vmem:[#allocation2 + $0x58] sm:$0xff]  ;;  %v12976_v57 = vld [vmem:[#allocation2 + $0x68] sm:$0xff] }
 0x199   : > { %9909 = vmatprep.subr.msk.mxu0 %vm886_vm0, %v12943_v29  ;;  %15318 = vst [vmem:[#allocation102_spill] sm:$0xff] %v12970_v9  ;;  %15320 = vst [vmem:[#allocation104_spill] sm:$0xff] %v12976_v57  ;;  %v12988_v35 = vld [vmem:[#allocation2 + $0x78] sm:$0xff] }
 0x19a   : > { %v12956_v18 = vpop.f32.mrb[24].mxu1  ;;  %15324 = vst [vmem:[#allocation108_spill] sm:$0xff] %v12988_v35 }
 0x19b   : > { %15313 = vst [vmem:[#allocation97_spill] sm:$0xff] %v12956_v18  ;;  %9749 = vmatmul.mubr.msk.f32.gmra.mrb[76].mxu0 %vm223_vm1, %v12958_v41  ;;  %v12962_v60 = vpop.f32.mrb[25].mxu1  ;;  %v12982_v18 = vld [vmem:[#allocation2 + $0x70] sm:$0xff] }
 0x19c   : > { %15315 = vst [vmem:[#allocation99_spill] sm:$0xff] %v12962_v60  ;;  %9751 = vmatprep.mubr.msk.f32.mxu0 %vm223_vm1, %v12964_v26  ;;  %15322 = vst [vmem:[#allocation106_spill] sm:$0xff] %v12982_v18  ;;  %v13112_v26 = vld [vmem:[#allocation2 + $0x158] sm:$0xff]  ;;  %v13122_v41 = vld [vmem:[#allocation2 + $0x170] sm:$0xff] }
 0x19e   : > { %v12968_v50 = vpop.f32.mrb[26].mxu1 }
 0x19f   : > { %15317 = vst [vmem:[#allocation101_spill] sm:$0xff] %v12968_v50  ;;  %9752 = vmatmul.mubr.msk.f32.gmra.mrb[4].mxu0 %vm223_vm1, %v12970_v9  ;;  %v12974_v53 = vpop.f32.mrb[27].mxu1  ;;  %v12994_v9 = vld [vmem:[#allocation2 + $0x88] sm:$0xff] }
 0x1a0   : > { %15319 = vst [vmem:[#allocation103_spill] sm:$0xff] %v12974_v53  ;;  %9754 = vmatprep.mubr.msk.f32.mxu0 %vm223_vm1, %v12976_v57  ;;  %15326 = vst [vmem:[#allocation110_spill] sm:$0xff] %v12994_v9  ;;  %v13000_v57 = vld [vmem:[#allocation2 + $0x90] sm:$0xff] }
 0x1a1   : > { %15328 = vst [vmem:[#allocation112_spill] sm:$0xff] %v13000_v57 }
 0x1a2   : > { %v12980_v60 = vpop.f32.mrb[28].mxu1 }
 0x1a3   : > { %15321 = vst [vmem:[#allocation105_spill] sm:$0xff] %v12980_v60  ;;  %9755 = vmatmul.mubr.msk.f32.gmra.mrb[6].mxu0 %vm223_vm1, %v12982_v18  ;;  %v12986_v50 = vpop.f32.mrb[29].mxu1  ;;  %v13006_v18 = vld [vmem:[#allocation2 + $0x98] sm:$0xff] }
 0x1a4   : > { %15323 = vst [vmem:[#allocation107_spill] sm:$0xff] %v12986_v50  ;;  %9757 = vmatprep.mubr.msk.f32.mxu0 %vm223_vm1, %v12988_v35  ;;  %15330 = vst [vmem:[#allocation114_spill] sm:$0xff] %v13006_v18  ;;  %v13012_v35 = vld [vmem:[#allocation2 + $0xa8] sm:$0xff] }
 0x1a5   : > { %15332 = vst [vmem:[#allocation116_spill] sm:$0xff] %v13012_v35 }
 0x1a6   : > { %v12992_v53 = vpop.f32.mrb[30].mxu1 }
 0x1a7   : > { %15325 = vst [vmem:[#allocation109_spill] sm:$0xff] %v12992_v53  ;;  %9758 = vmatmul.mubr.msk.f32.gmra.mrb[8].mxu0 %vm223_vm1, %v12994_v9  ;;  %v12998_v60 = vpop.f32.mrb[31].mxu1  ;;  %v13018_v9 = vld [vmem:[#allocation2 + $0xb0] sm:$0xff] }
 0x1a8   : > { %15327 = vst [vmem:[#allocation111_spill] sm:$0xff] %v12998_v60  ;;  %9760 = vmatprep.mubr.msk.f32.mxu0 %vm223_vm1, %v13000_v57  ;;  %15334 = vst [vmem:[#allocation118_spill] sm:$0xff] %v13018_v9  ;;  %v13024_v57 = vld [vmem:[#allocation2 + $0xb8] sm:$0xff] }
 0x1a9   : > { %15336 = vst [vmem:[#allocation120_spill] sm:$0xff] %v13024_v57 }
 0x1aa   : > { %v13004_v50 = vpop.f32.mrb[32].mxu1 }
 0x1ab   : > { %15329 = vst [vmem:[#allocation113_spill] sm:$0xff] %v13004_v50  ;;  %9761 = vmatmul.mubr.msk.f32.gmra.mrb[14].mxu0 %vm223_vm1, %v13006_v18  ;;  %v13010_v53 = vpop.f32.mrb[33].mxu1  ;;  %v13030_v18 = vld [vmem:[#allocation2 + $0xc8] sm:$0xff] }
 0x1ac   : > { %15331 = vst [vmem:[#allocation115_spill] sm:$0xff] %v13010_v53  ;;  %9763 = vmatprep.mubr.msk.f32.mxu0 %vm223_vm1, %v13012_v35  ;;  %15338 = vst [vmem:[#allocation122_spill] sm:$0xff] %v13030_v18  ;;  %v13036_v35 = vld [vmem:[#allocation2 + $0xd0] sm:$0xff] }
 0x1ad   : > { %15340 = vst [vmem:[#allocation124_spill] sm:$0xff] %v13036_v35 }
 0x1ae   : > { %v13016_v60 = vpop.f32.mrb[34].mxu1 }
 0x1af   : > { %15333 = vst [vmem:[#allocation117_spill] sm:$0xff] %v13016_v60  ;;  %9764 = vmatmul.mubr.msk.f32.gmra.mrb[16].mxu0 %vm223_vm1, %v13018_v9  ;;  %v13022_v50 = vpop.f32.mrb[35].mxu1  ;;  %v13042_v9 = vld [vmem:[#allocation2 + $0xd8] sm:$0xff] }
 0x1b0   : > { %15335 = vst [vmem:[#allocation119_spill] sm:$0xff] %v13022_v50  ;;  %9766 = vmatprep.mubr.msk.f32.mxu0 %vm223_vm1, %v13024_v57  ;;  %15342 = vst [vmem:[#allocation126_spill] sm:$0xff] %v13042_v9  ;;  %v13048_v57 = vld [vmem:[#allocation2 + $0xe8] sm:$0xff] }
 0x1b1   : > { %15344 = vst [vmem:[#allocation128_spill] sm:$0xff] %v13048_v57 }
 0x1b2   : > { %v13028_v53 = vpop.f32.mrb[36].mxu1 }
 0x1b3   : > { %15337 = vst [vmem:[#allocation121_spill] sm:$0xff] %v13028_v53  ;;  %9767 = vmatmul.mubr.msk.f32.gmra.mrb[18].mxu0 %vm223_vm1, %v13030_v18  ;;  %v13034_v60 = vpop.f32.mrb[37].mxu1  ;;  %v13054_v18 = vld [vmem:[#allocation2 + $0xf0] sm:$0xff] }
 0x1b4   : > { %15339 = vst [vmem:[#allocation123_spill] sm:$0xff] %v13034_v60  ;;  %9769 = vmatprep.mubr.msk.f32.mxu0 %vm223_vm1, %v13036_v35  ;;  %15346 = vst [vmem:[#allocation130_spill] sm:$0xff] %v13054_v18  ;;  %v13060_v35 = vld [vmem:[#allocation2 + $0xf8] sm:$0xff] }
 0x1b5   : > { %15348 = vst [vmem:[#allocation132_spill] sm:$0xff] %v13060_v35 }
 0x1b6   : > { %v13040_v50 = vpop.f32.mrb[38].mxu1 }
 0x1b7   : > { %15341 = vst [vmem:[#allocation125_spill] sm:$0xff] %v13040_v50  ;;  %9770 = vmatmul.mubr.msk.f32.gmra.mrb[20].mxu0 %vm223_vm1, %v13042_v9  ;;  %v13046_v53 = vpop.f32.mrb[39].mxu1  ;;  %v13066_v9 = vld [vmem:[#allocation2 + $0x108] sm:$0xff] }
 0x1b8   : > { %15343 = vst [vmem:[#allocation127_spill] sm:$0xff] %v13046_v53  ;;  %9772 = vmatprep.mubr.msk.f32.mxu0 %vm223_vm1, %v13048_v57  ;;  %15350 = vst [vmem:[#allocation134_spill] sm:$0xff] %v13066_v9  ;;  %v13072_v57 = vld [vmem:[#allocation2 + $0x110] sm:$0xff] }
 0x1b9   : > { %15352 = vst [vmem:[#allocation136_spill] sm:$0xff] %v13072_v57 }
 0x1ba   : > { %v13052_v60 = vpop.f32.mrb[40].mxu1 }
 0x1bb   : > { %15345 = vst [vmem:[#allocation129_spill] sm:$0xff] %v13052_v60  ;;  %9773 = vmatmul.mubr.msk.f32.gmra.mrb[22].mxu0 %vm223_vm1, %v13054_v18  ;;  %v13058_v50 = vpop.f32.mrb[41].mxu1  ;;  %v13078_v18 = vld [vmem:[#allocation2 + $0x118] sm:$0xff] }
 0x1bc   : > { %15347 = vst [vmem:[#allocation131_spill] sm:$0xff] %v13058_v50  ;;  %9775 = vmatprep.mubr.msk.f32.mxu0 %vm223_vm1, %v13060_v35  ;;  %15354 = vst [vmem:[#allocation138_spill] sm:$0xff] %v13078_v18  ;;  %v13084_v35 = vld [vmem:[#allocation2 + $0x128] sm:$0xff] }
 0x1bd   : > { %15356 = vst [vmem:[#allocation140_spill] sm:$0xff] %v13084_v35 }
 0x1be   : > { %v13064_v53 = vpop.f32.mrb[42].mxu1 }
 0x1bf   : > { %15349 = vst [vmem:[#allocation133_spill] sm:$0xff] %v13064_v53  ;;  %9776 = vmatmul.mubr.msk.f32.gmra.mrb[24].mxu0 %vm223_vm1, %v13066_v9  ;;  %v13070_v60 = vpop.f32.mrb[43].mxu1  ;;  %v13090_v9 = vld [vmem:[#allocation2 + $0x130] sm:$0xff] }
 0x1c0   : > { %15351 = vst [vmem:[#allocation135_spill] sm:$0xff] %v13070_v60  ;;  %9778 = vmatprep.mubr.msk.f32.mxu0 %vm223_vm1, %v13072_v57  ;;  %15358 = vst [vmem:[#allocation142_spill] sm:$0xff] %v13090_v9  ;;  %v13096_v57 = vld [vmem:[#allocation2 + $0x138] sm:$0xff] }
 0x1c1   : > { %15360 = vst [vmem:[#allocation144_spill] sm:$0xff] %v13096_v57 }
 0x1c2   : > { %v13076_v50 = vpop.f32.mrb[44].mxu1 }
 0x1c3   : > { %15353 = vst [vmem:[#allocation137_spill] sm:$0xff] %v13076_v50  ;;  %9779 = vmatmul.mubr.msk.f32.gmra.mrb[26].mxu0 %vm223_vm1, %v13078_v18  ;;  %v13082_v53 = vpop.f32.mrb[45].mxu1  ;;  %v13102_v18 = vld [vmem:[#allocation2 + $0x148] sm:$0xff] }
 0x1c4   : > { %15355 = vst [vmem:[#allocation139_spill] sm:$0xff] %v13082_v53  ;;  %9781 = vmatprep.mubr.msk.f32.mxu0 %vm223_vm1, %v13084_v35  ;;  %15362 = vst [vmem:[#allocation146_spill] sm:$0xff] %v13102_v18  ;;  %v13108_v35 = vld [vmem:[#allocation2 + $0x150] sm:$0xff] }
 0x1c5   : > { %15364 = vst [vmem:[#allocation148_spill] sm:$0xff] %v13108_v35 }
 0x1c6   : > { %v13088_v60 = vpop.f32.mrb[46].mxu1 }
 0x1c7   : > { %15357 = vst [vmem:[#allocation141_spill] sm:$0xff] %v13088_v60  ;;  %9782 = vmatmul.mubr.msk.f32.gmra.mrb[28].mxu0 %vm223_vm1, %v13090_v9  ;;  %v13094_v50 = vpop.f32.mrb[47].mxu1 }
 0x1c8   : > { %15359 = vst [vmem:[#allocation143_spill] sm:$0xff] %v13094_v50  ;;  %9784 = vmatprep.mubr.msk.f32.mxu0 %vm223_vm1, %v13096_v57  ;;  %v13117_v57 = vld [vmem:[#allocation2 + $0x168] sm:$0xff] }
 0x1ca   : > { %v13100_v53 = vpop.f32.mrb[48].mxu1 }
 0x1cb   : > { %15361 = vst [vmem:[#allocation145_spill] sm:$0xff] %v13100_v53  ;;  %9785 = vmatmul.mubr.msk.f32.gmra.mrb[30].mxu0 %vm223_vm1, %v13102_v18  ;;  %v13106_v60 = vpop.f32.mrb[49].mxu1 }
 0x1cc   : > { %15363 = vst [vmem:[#allocation147_spill] sm:$0xff] %v13106_v60  ;;  %9787 = vmatprep.mubr.msk.f32.mxu0 %vm223_vm1, %v13108_v35  ;;  %v13126_v35 = vld [vmem:[#allocation2 + $0x178] sm:$0xff] }
 0x1ce   : > { %v9490_v50 = vpop.f32.mrb[54].mxu1 }
 0x1cf   : > { %v1652_v9 = vpop.f32.mrb[55].mxu1  ;;  %9788 = vmatmul.mubr.msk.f32.gmra.mrb[32].mxu0 %vm223_vm1, %v13112_v26 }
 0x1d0   : > { %v1653_v53 = vadd.f32 %v1652_v9, %v12868_v12  ;;  %9790 = vmatprep.mubr.msk.f32.mxu0 %vm223_vm1, %v13117_v57  ;;  %v13130_v12 = vld [vmem:[#allocation2 + $0x188] sm:$0xff] }
 0x1d2   : > { %v2169_v60 = vadd.f32 %v12905_v0, %v1653_v53  ;;  %v9493_v18 = vpop.f32.mrb[56].mxu1 }
 0x1d3   : > { %9791 = vmatmul.mubr.msk.f32.gmra.mrb[34].mxu0 %vm223_vm1, %v13122_v41  ;;  %v1662_v50 = vpop.f32.mrb[57].mxu1  ;;  %v15375_v18 = vld [vmem:[#allocation37_spill] sm:$0xff] }
 0x1d4   : > { %9793 = vmatprep.mubr.msk.f32.mxu0 %vm223_vm1, %v13126_v35  ;;  %v15388_v50 = vld [vmem:[#allocation9_spill] sm:$0xff] }
 0x1d7   : > { %9794 = vmatmul.mubr.msk.f32.gmra.mrb[36].mxu0 %vm223_vm1, %v13130_v12 }
 0x1d8   : > { %9796 = vmatprep.mubr.msk.f32.mxu0 %vm223_vm1, %v12120_v54 }
 0x1db   : > { %9797 = vmatmul.mubr.msk.f32.gmra.mrb[38].mxu0 %vm223_vm1, %v12122_v48 }
 0x1dc   : > { %9799 = vmatprep.mubr.msk.f32.mxu0 %vm223_vm1, %v12142_v32 }
 0x1df   : > { %9800 = vmatmul.mubr.msk.f32.gmra.mrb[40].mxu0 %vm223_vm1, %v12144_v20 }
 0x1e0   : > { %9802 = vmatprep.mubr.msk.f32.mxu0 %vm223_vm1, %v12163_v14 }
 0x1e3   : > { %9803 = vmatmul.mubr.msk.f32.gmra.mrb[42].mxu0 %vm223_vm1, %v12167_v43  ;;  %v15372_v43 = vld [vmem:[#allocation32_spill] sm:$0xff] }
 0x1e4   : > { %9805 = vmatprep.mubr.msk.f32.mxu0 %vm223_vm1, %v12186_v47 }
 0x1e7   : > { %9806 = vmatmul.mubr.msk.f32.gmra.mrb[44].mxu0 %vm223_vm1, %v12188_v37 }
 0x1e8   : > { %9808 = vmatprep.mubr.msk.f32.mxu0 %vm223_vm1, %v12208_v45  ;;  %v15373_v45 = vld [vmem:[#allocation33_spill] sm:$0xff] }
 0x1eb   : > { %9809 = vmatmul.mubr.msk.f32.gmra.mrb[46].mxu0 %vm223_vm1, %v12210_v6 }
 0x1ec   : > { %9811 = vmatprep.mubr.msk.f32.mxu0 %vm223_vm1, %v12229_v17  ;;  %v15371_v17 = vld [vmem:[#allocation75_spill] sm:$0xff] }
 0x1ef   : > { %9812 = vmatmul.mubr.msk.f32.gmra.mrb[48].mxu0 %vm223_vm1, %v12233_v10  ;;  %v15374_v10 = vld [vmem:[#allocation36_spill] sm:$0xff] }
 0x1f0   : > { %9814 = vmatprep.mubr.msk.f32.mxu0 %vm223_vm1, %v12252_v44  ;;  %v15370_v44 = vld [vmem:[#allocation74_spill] sm:$0xff] }
 0x1f3   : > { %9815 = vmatmul.mubr.msk.f32.gmra.mrb[50].mxu0 %vm223_vm1, %v12254_v40  ;;  %v15369_v40 = vld [vmem:[#allocation73_spill] sm:$0xff] }
 0x1f4   : > { %9817 = vmatprep.mubr.msk.f32.mxu0 %vm223_vm1, %v12274_v27 }
 0x1f6   : > { %v9656_v37 = vpop.f32.mrb[62].mxu0 }
 0x1f7   : > { %v2511_v47 = vpop.f32.mrb[63].mxu0  ;;  %9818 = vmatmul.mubr.msk.f32.gmra.mrb[52].mxu0 %vm223_vm1, %v12276_v19 }
 0x1f8   : > { %v13166_v14 = vadd.f32 %v2511_v47, %v2169_v60  ;;  %9820 = vmatprep.mubr.msk.f32.mxu0 %vm223_vm1, %v12295_v3  ;;  %v13181_v3 = vld [vmem:[%s14889_s1 + $0x20] sm:$0xf] }
 0x1fa   : > { %v9659_v20 = vpop.f32.mrb[64].mxu0 }
 0x1fb   : > { %v2521_v32 = vpop.f32.mrb[65].mxu0  ;;  %9821 = vmatmul.mubr.msk.f32.gmra.mrb[78].mxu0 %vm223_vm1, %v12732_v51  ;;  %v15389_v20 = vld [vmem:[#allocation10_spill] sm:$0xff] }
 0x1fc   : > { %9823 = vmatprep.mubr.msk.f32.mxu0 %vm223_vm1, %v12734_v5  ;;  %v15390_v32 = vld [vmem:[#allocation11_spill] sm:$0xff] }
 0x1fe   : > { %v9664_v48 = vpop.f32.mrb[66].mxu0 }
 0x1ff   : > { %v2668_v54 = vpop.f32.mrb[67].mxu0  ;;  %9824 = vmatmul.mubr.msk.f32.gmra.mrb[80].mxu0 %vm223_vm1, %v12747_v52  ;;  %v15391_v48 = vld [vmem:[#allocation12_spill] sm:$0xff] }
 0x200   : > { %9828 = vmatprep.mubr.msk.f32.mxu0 %vm223_vm1, %v11747_v1  ;;  %v15365_v1 = vld [vmem:[#allocation69_spill] sm:$0xff] }
 0x201   : > { %v15392_v54 = vld [vmem:[#allocation13_spill] sm:$0xff] }
 0x202   : > { %v9667_v6 = vpop.f32.mrb[68].mxu0 }
 0x203   : > { %v13184_v19 = vadd.f32 %v9667_v6, %v12946_v46  ;;  %v2678_v27 = vpop.f32.mrb[69].mxu0  ;;  %9829 = vmatmul.mubr.msk.f32.vlgmr.msra.gmra.mrb[82].mxu0 %vm223_vm1, %v11774_v15  ;;  %v15366_v15 = vld [vmem:[#allocation70_spill] sm:$0xff] }
 0x204   : > { %9910 = vmatpush3.msk.msra.mxu0 %vm886_vm0, %v12943_v29  ;;  %9831 = vmatprep.mubr.msk.f32.mxu0 %vm223_vm1, %v11783_v21  ;;  %v15367_v21 = vld [vmem:[#allocation71_spill] sm:$0xff]  ;;  %v15393_v6 = vld [vmem:[#allocation14_spill] sm:$0xff]  ;;  %v15395_v27 = vld [vmem:[#allocation16_spill] sm:$0xff] }
 0x205   : > { %9992 = vmatprep.subr.msk.mxu0 %vm886_vm0, %v13181_v3 }
 0x207   : > { %9832 = vmatmul.mubr.msk.f32.gmra.mrb[84].mxu0 %vm223_vm1, %v11813_v33  ;;  %v15368_v33 = vld [vmem:[#allocation72_spill] sm:$0xff] }
 0x208   : > { %9834 = vmatprep.mubr.msk.f32.mxu0 %vm223_vm1, %v12328_v7  ;;  %v15376_v7 = vld [vmem:[#allocation38_spill] sm:$0xff] }
 0x20b   : > { %9835 = vmatmul.mubr.msk.f32.gmra.mrb[4].mxu0 %vm223_vm1, %v12341_v62  ;;  %v15377_v62 = vld [vmem:[#allocation41_spill] sm:$0xff] }
 0x20c   : > { %9837 = vmatprep.mubr.msk.f32.mxu0 %vm223_vm1, %v12345_v28  ;;  %v15378_v28 = vld [vmem:[#allocation42_spill] sm:$0xff] }
 0x20f   : > { %9838 = vmatmul.mubr.msk.f32.gmra.mrb[6].mxu0 %vm223_vm1, %v12357_v31  ;;  %v15379_v31 = vld [vmem:[#allocation43_spill] sm:$0xff] }
 0x210   : > { %9840 = vmatprep.mubr.msk.f32.mxu0 %vm223_vm1, %v12362_v42  ;;  %v15380_v42 = vld [vmem:[#allocation48_spill] sm:$0xff] }
 0x213   : > { %9841 = vmatmul.mubr.msk.f32.gmra.mrb[8].mxu0 %vm223_vm1, %v12374_v56  ;;  %v15381_v56 = vld [vmem:[#allocation51_spill] sm:$0xff] }
 0x214   : > { %9843 = vmatprep.mubr.msk.f32.mxu0 %vm223_vm1, %v12378_v38  ;;  %v15382_v38 = vld [vmem:[#allocation56_spill] sm:$0xff] }
 0x217   : > { %9844 = vmatmul.mubr.msk.f32.gmra.mrb[14].mxu0 %vm223_vm1, %v12391_v8  ;;  %v15383_v8 = vld [vmem:[#allocation59_spill] sm:$0xff] }
 0x218   : > { %9846 = vmatprep.mubr.msk.f32.mxu0 %vm223_vm1, %v12395_v13  ;;  %v13282_v13 = vld [vmem:[#allocation2 + $0x260] sm:$0xff] }
 0x21b   : > { %9847 = vmatmul.mubr.msk.f32.gmra.mrb[16].mxu0 %vm223_vm1, %v12407_v2  ;;  %v13284_v2 = vld [vmem:[#allocation2 + $0x268] sm:$0xff] }
 0x21c   : > { %9849 = vmatprep.mubr.msk.f32.mxu0 %vm223_vm1, %v12412_v36  ;;  %v13286_v36 = vld [vmem:[#allocation2 + $0x270] sm:$0xff] }
 0x21f   : > { %9850 = vmatmul.mubr.msk.f32.gmra.mrb[18].mxu0 %vm223_vm1, %v15365_v1  ;;  %v15396_v1 = vld [vmem:[#allocation17_spill] sm:$0xff] }
 0x220   : > { %9852 = vmatprep.mubr.msk.f32.mxu0 %vm223_vm1, %v15366_v15  ;;  %v15398_v15 = vld [vmem:[#allocation19_spill] sm:$0xff] }
 0x223   : > { %9853 = vmatmul.mubr.msk.f32.gmra.mrb[20].mxu0 %vm223_vm1, %v15367_v21  ;;  %v15399_v21 = vld [vmem:[#allocation20_spill] sm:$0xff] }
 0x224   : > { %9855 = vmatprep.mubr.msk.f32.mxu0 %vm223_vm1, %v15368_v33  ;;  %v15400_v33 = vld [vmem:[#allocation21_spill] sm:$0xff] }
 0x227   : > { %9856 = vmatmul.mubr.msk.f32.gmra.mrb[22].mxu0 %vm223_vm1, %v15369_v40  ;;  %v15401_v40 = vld [vmem:[#allocation22_spill] sm:$0xff] }
 0x228   : > { %9858 = vmatprep.mubr.msk.f32.mxu0 %vm223_vm1, %v12471_v22  ;;  %v15384_v22 = vld [vmem:[#allocation76_spill] sm:$0xff] }
 0x22b   : > { %9859 = vmatmul.mubr.msk.f32.gmra.mrb[24].mxu0 %vm223_vm1, %v15370_v44  ;;  %v15402_v44 = vld [vmem:[#allocation23_spill] sm:$0xff] }
 0x22c   : > { %9861 = vmatprep.mubr.msk.f32.mxu0 %vm223_vm1, %v12487_v59  ;;  %v15385_v59 = vld [vmem:[#allocation81_spill] sm:$0xff] }
 0x22f   : > { %9862 = vmatmul.mubr.msk.f32.gmra.mrb[26].mxu0 %vm223_vm1, %v15371_v17  ;;  %v15403_v17 = vld [vmem:[#allocation24_spill] sm:$0xff] }
 0x230   : > { %9864 = vmatprep.mubr.msk.f32.mxu0 %vm223_vm1, %v15372_v43  ;;  %v15404_v43 = vld [vmem:[#allocation25_spill] sm:$0xff] }
 0x233   : > { %9865 = vmatmul.mubr.msk.f32.gmra.mrb[28].mxu0 %vm223_vm1, %v12516_v34  ;;  %v3395_v34 = vrot.slane %v13282_v13, 6 }
 0x234   : > { %9867 = vmatprep.mubr.msk.f32.mxu0 %vm223_vm1, %v12521_v4  ;;  %v3396_v4 = vrot.slane %v13284_v2, 6 }
 0x237   : > { %9868 = vmatmul.mubr.msk.f32.gmra.mrb[30].mxu0 %vm223_vm1, %v12533_v58  ;;  %v3398_v58 = vrot.slane %v13286_v36, 6 }
 0x238   : > { %9870 = vmatprep.mubr.msk.f32.mxu0 %vm223_vm1, %v12537_v11  ;;  %v13295_v11 = vld [vmem:[#allocation2 + $0x278] sm:$0xff] }
 0x239   : > { %v3399_v0 = vsel %vm521_vm3, %v3396_v4, %v3398_v58 }
 0x23b   : > { %9871 = vmatmul.mubr.msk.f32.gmra.mrb[32].mxu0 %vm223_vm1, %v12550_v24 }
 0x23c   : > { %9873 = vmatprep.mubr.msk.f32.mxu0 %vm223_vm1, %v12554_v25 }
 0x23f   : > { %9874 = vmatmul.mubr.msk.f32.gmra.mrb[34].mxu0 %vm223_vm1, %v12566_v55  ;;  %v15386_v55 = vld [vmem:[#allocation82_spill] sm:$0xff] }
 0x240   : > { %9876 = vmatprep.mubr.msk.f32.mxu0 %vm223_vm1, %v12571_v39 }
 0x243   : > { %9877 = vmatmul.mubr.msk.f32.gmra.mrb[36].mxu0 %vm223_vm1, %v12583_v61  ;;  %v15387_v61 = vld [vmem:[#allocation85_spill] sm:$0xff] }
 0x244   : > { %9879 = vmatprep.mubr.msk.f32.mxu0 %vm223_vm1, %v15373_v45  ;;  %v15405_v45 = vld [vmem:[#allocation26_spill] sm:$0xff] }
 0x247   : > { %9880 = vmatmul.mubr.msk.f32.gmra.mrb[38].mxu0 %vm223_vm1, %v15374_v10  ;;  %v15406_v10 = vld [vmem:[#allocation27_spill] sm:$0xff] }
 0x248   : > { %9882 = vmatprep.mubr.msk.f32.mxu0 %vm223_vm1, %v15375_v18  ;;  %v15407_v18 = vld [vmem:[#allocation28_spill] sm:$0xff] }
 0x24b   : > { %9883 = vmatmul.mubr.msk.f32.gmra.mrb[40].mxu0 %vm223_vm1, %v15376_v7  ;;  %v15408_v7 = vld [vmem:[#allocation29_spill] sm:$0xff] }
 0x24c   : > { %9885 = vmatprep.mubr.msk.f32.mxu0 %vm223_vm1, %v15377_v62  ;;  %v15409_v62 = vld [vmem:[#allocation30_spill] sm:$0xff] }
 0x24f   : > { %9886 = vmatmul.mubr.msk.f32.gmra.mrb[42].mxu0 %vm223_vm1, %v12633_v30  ;;  %v3397_v30 = vsel %vm521_vm3, %v3395_v34, %v3396_v4  ;;  %v15418_v34 = vld [vmem:[#allocation47_spill] sm:$0xff]  ;;  %v15419_v4 = vld [vmem:[#allocation49_spill] sm:$0xff] }
 0x250   : > { %9888 = vmatprep.mubr.msk.f32.mxu0 %vm223_vm1, %v12637_v63  ;;  %v3400_v63 = vrot.slane %v13295_v11, 6 }
 0x252   : > { %v3401_v60 = vsel %vm521_vm3, %v3398_v58, %v3400_v63  ;;  %v15420_v58 = vld [vmem:[#allocation50_spill] sm:$0xff] }
 0x253   : > { %9889 = vmatmul.mubr.msk.f32.gmra.mrb[44].mxu0 %vm223_vm1, %v15378_v28  ;;  %v15410_v28 = vld [vmem:[#allocation31_spill] sm:$0xff]  ;;  %v15426_v63 = vld [vmem:[#allocation58_spill] sm:$0xff] }
 0x254   : > { %9891 = vmatprep.mubr.msk.f32.mxu0 %vm223_vm1, %v15379_v31  ;;  %v15411_v31 = vld [vmem:[#allocation34_spill] sm:$0xff] }
 0x257   : > { %9892 = vmatmul.mubr.msk.f32.gmra.mrb[46].mxu0 %vm223_vm1, %v15380_v42  ;;  %v15412_v42 = vld [vmem:[#allocation35_spill] sm:$0xff] }
 0x258   : > { %9894 = vmatprep.mubr.msk.f32.mxu0 %vm223_vm1, %v15381_v56  ;;  %v15413_v56 = vld [vmem:[#allocation39_spill] sm:$0xff] }
 0x25b   : > { %9895 = vmatmul.mubr.msk.f32.gmra.mrb[48].mxu0 %vm223_vm1, %v15382_v38  ;;  %v15414_v38 = vld [vmem:[#allocation40_spill] sm:$0xff] }
 0x25c   : > { %9897 = vmatprep.mubr.msk.f32.mxu0 %vm223_vm1, %v15383_v8  ;;  %v15415_v8 = vld [vmem:[#allocation44_spill] sm:$0xff] }
 0x25f   : > { %9898 = vmatmul.mubr.msk.f32.gmra.mrb[50].mxu0 %vm223_vm1, %v15384_v22  ;;  %v15416_v22 = vld [vmem:[#allocation45_spill] sm:$0xff] }
 0x260   : > { %9900 = vmatprep.mubr.msk.f32.mxu0 %vm223_vm1, %v15385_v59  ;;  %v15417_v59 = vld [vmem:[#allocation46_spill] sm:$0xff] }
 0x262   : > { %v9739_v24 = vpop.f32.mrb[70].mxu0 }
 0x263   : > { %v2918_v25 = vpop.f32.mrb[71].mxu0  ;;  %9901 = vmatmul.mubr.msk.f32.gmra.mrb[52].mxu0 %vm223_vm1, %v15386_v55  ;;  %v15421_v24 = vld [vmem:[#allocation52_spill] sm:$0xff]  ;;  %v15423_v55 = vld [vmem:[#allocation54_spill] sm:$0xff] }
 0x264   : > { %v13300_v39 = vadd.f32 %v2918_v25, %v13166_v14  ;;  %9903 = vmatprep.mubr.msk.f32.mxu0 %vm223_vm1, %v15387_v61  ;;  %v15422_v25 = vld [vmem:[#allocation53_spill] sm:$0xff]  ;;  %v15424_v61 = vld [vmem:[#allocation55_spill] sm:$0xff] }
 0x266   : > { %v9742_v29 = vpop.f32.mrb[72].mxu0 }
 0x267   : > { %v2928_v46 = vpop.f32.mrb[73].mxu0  ;;  %9904 = vmatmul.mubr.msk.f32.gmra.mrb[86].mxu0 %vm223_vm1, %v3397_v30  ;;  %v15425_v30 = vld [vmem:[#allocation57_spill] sm:$0xff] }
 0x268   : > { %9906 = vmatprep.mubr.msk.f32.mxu0 %vm223_vm1, %v3399_v0  ;;  %v15427_v0 = vld [vmem:[#allocation60_spill] sm:$0xff]  ;;  %v15428_v29 = vld [vmem:[#allocation61_spill] sm:$0xff]  ;;  %v15429_v46 = vld [vmem:[#allocation62_spill] sm:$0xff] }
 0x26a   : > { %v9747_v9 = vpop.f32.mrb[74].mxu0 }
 0x26b   : > { %v3068_v53 = vpop.f32.mrb[75].mxu0  ;;  %9907 = vmatmul.mubr.msk.f32.gmra.mrb[88].mxu0 %vm223_vm1, %v3401_v60  ;;  %v15430_v60 = vld [vmem:[#allocation63_spill] sm:$0xff]  ;;  %v15431_v9 = vld [vmem:[#allocation64_spill] sm:$0xff] }
 0x26c   : > { %9911 = vmatprep.mubr.msk.f32.mxu0 %vm223_vm1, %v15388_v50  ;;  %v15432_v53 = vld [vmem:[#allocation65_spill] sm:$0xff]  ;;  %v15433_v50 = vld [vmem:[#allocation66_spill] sm:$0xff] }
 0x26e   : > { %v9750_v37 = vpop.f32.mrb[76].mxu0 }
 0x26f   : > { %v13314_v47 = vadd.f32 %v9750_v37, %v13184_v19  ;;  %v3078_v14 = vpop.f32.mrb[77].mxu0  ;;  %9912 = vmatmul.mubr.msk.f32.vlgmr.msra.gmra.mrb[90].mxu0 %vm223_vm1, %v15389_v20  ;;  %v15394_v19 = vld [vmem:[#allocation15_spill] sm:$0xff]  ;;  %v8219_v37 = vld [vmem:[%s14891_s3 + $0x10] sm:$0xff] }
 0x270   : > { %9993 = vmatpush3.msk.msra.mxu0 %vm886_vm0, %v13181_v3  ;;  %9914 = vmatprep.mubr.msk.f32.mxu0 %vm223_vm1, %v15390_v32  ;;  %v15397_v3 = vld [vmem:[#allocation18_spill] sm:$0xff]  ;;  %v8220_v14 = vld [vmem:[%s14891_s3 + $0x18] sm:$0xff]  ;;  %v15434_v20 = vld [vmem:[#allocation67_spill] sm:$0xff] }
 0x271   : > { %v10543_v32 = vpack.c.bf16 %v8220_v14, %v8219_v37  ;;  %v11291_v37 = vld [vmem:[#allocation2 + $0x1f8] sm:$0xff]  ;;  %v11292_v14 = vld [vmem:[#allocation2 + $0x208] sm:$0xff] }
 0x273   : > { %9915 = vmatmul.mubr.msk.f32.gmra.mrb[92].mxu0 %vm223_vm1, %v15391_v48  ;;  %10544 = vmatprep.subr.bf16.mxu1 %v10543_v32  ;;  %v15435_v48 = vld [vmem:[#allocation68_spill] sm:$0xff] }
 0x274   : > { %9917 = vmatprep.mubr.msk.f32.mxu0 %vm223_vm1, %v15392_v54  ;;  %10546 = vmatpush3.bf16.msra.mxu1 %v10543_v32  ;;  %v3802_v54 = vrot.slane %v13282_v13, 7  ;;  %v11294_v32 = vld [vmem:[#allocation2 + $0x218] sm:$0xff] }
 0x277   : > { %9918 = vmatmul.mubr.msk.f32.gmra.mrb[4].mxu0 %vm223_vm1, %v15393_v6  ;;  %v3803_v6 = vrot.slane %v13284_v2, 7 }
 0x278   : > { %9920 = vmatprep.mubr.msk.f32.mxu0 %vm223_vm1, %v15394_v19  ;;  %v3805_v19 = vrot.slane %v13286_v36, 7 }
 0x27a   : > { %v3806_v13 = vsel %vm649_vm2, %v3803_v6, %v3805_v19 }
 0x27b   : > { %9921 = vmatmul.mubr.msk.f32.gmra.mrb[6].mxu0 %vm223_vm1, %v15395_v27 }
 0x27c   : > { %9923 = vmatprep.mubr.msk.f32.mxu0 %vm223_vm1, %v15396_v1 }
 0x27f   : > { %9924 = vmatmul.mubr.msk.f32.gmra.mrb[8].mxu0 %vm223_vm1, %v15397_v3 }
 0x280   : > { %9926 = vmatprep.mubr.msk.f32.mxu0 %vm223_vm1, %v15398_v15  ;;  %v3804_v15 = vsel %vm649_vm2, %v3802_v54, %v3803_v6  ;;  %v11296_v54 = vld [vmem:[#allocation2 + $0x230] sm:$0xff]  ;;  %v11297_v6 = vld [vmem:[#allocation2 + $0x238] sm:$0xff] }
 0x283   : > { %9927 = vmatmul.mubr.msk.f32.gmra.mrb[14].mxu0 %vm223_vm1, %v15399_v21 }
 0x284   : > { %9929 = vmatprep.mubr.msk.f32.mxu0 %vm223_vm1, %v15400_v33 }
 0x287   : > { %9930 = vmatmul.mubr.msk.f32.gmra.mrb[16].mxu0 %vm223_vm1, %v15401_v40 }
 0x288   : > { %9932 = vmatprep.mubr.msk.f32.mxu0 %vm223_vm1, %v15402_v44  ;;  %v15436_v44 = vld [vmem:[#allocation98_spill] sm:$0xff] }
 0x28b   : > { %9933 = vmatmul.mubr.msk.f32.gmra.mrb[18].mxu0 %vm223_vm1, %v15403_v17 }
 0x28c   : > { %9935 = vmatprep.mubr.msk.f32.mxu0 %vm223_vm1, %v15404_v43 }
 0x28f   : > { %9936 = vmatmul.mubr.msk.f32.gmra.mrb[20].mxu0 %vm223_vm1, %v15405_v45  ;;  %v15437_v45 = vld [vmem:[#allocation100_spill] sm:$0xff] }
 0x290   : > { %9938 = vmatprep.mubr.msk.f32.mxu0 %vm223_vm1, %v15406_v10  ;;  %v15438_v10 = vld [vmem:[#allocation102_spill] sm:$0xff] }
 0x293   : > { %9939 = vmatmul.mubr.msk.f32.gmra.mrb[22].mxu0 %vm223_vm1, %v15407_v18  ;;  %v15439_v18 = vld [vmem:[#allocation104_spill] sm:$0xff] }
 0x294   : > { %9941 = vmatprep.mubr.msk.f32.mxu0 %vm223_vm1, %v15408_v7  ;;  %v15440_v7 = vld [vmem:[#allocation106_spill] sm:$0xff] }
 0x297   : > { %9942 = vmatmul.mubr.msk.f32.gmra.mrb[24].mxu0 %vm223_vm1, %v15409_v62  ;;  %v15441_v62 = vld [vmem:[#allocation108_spill] sm:$0xff] }
 0x298   : > { %9944 = vmatprep.mubr.msk.f32.mxu0 %vm223_vm1, %v15410_v28  ;;  %v15442_v28 = vld [vmem:[#allocation110_spill] sm:$0xff] }
 0x29b   : > { %9945 = vmatmul.mubr.msk.f32.gmra.mrb[26].mxu0 %vm223_vm1, %v15411_v31  ;;  %v15444_v31 = vld [vmem:[#allocation114_spill] sm:$0xff] }
 0x29c   : > { %9947 = vmatprep.mubr.msk.f32.mxu0 %vm223_vm1, %v15412_v42  ;;  %v15445_v42 = vld [vmem:[#allocation116_spill] sm:$0xff] }
 0x29f   : > { %9948 = vmatmul.mubr.msk.f32.gmra.mrb[28].mxu0 %vm223_vm1, %v15413_v56  ;;  %v15446_v56 = vld [vmem:[#allocation118_spill] sm:$0xff] }
 0x2a0   : > { %9950 = vmatprep.mubr.msk.f32.mxu0 %vm223_vm1, %v15414_v38  ;;  %v15447_v38 = vld [vmem:[#allocation120_spill] sm:$0xff] }
 0x2a3   : > { %9951 = vmatmul.mubr.msk.f32.gmra.mrb[30].mxu0 %vm223_vm1, %v15415_v8  ;;  %v15448_v8 = vld [vmem:[#allocation122_spill] sm:$0xff] }
 0x2a4   : > { %9953 = vmatprep.mubr.msk.f32.mxu0 %vm223_vm1, %v15416_v22  ;;  %v15449_v22 = vld [vmem:[#allocation124_spill] sm:$0xff] }
 0x2a7   : > { %9954 = vmatmul.mubr.msk.f32.gmra.mrb[32].mxu0 %vm223_vm1, %v15417_v59  ;;  %v15450_v59 = vld [vmem:[#allocation126_spill] sm:$0xff] }
 0x2a8   : > { %9956 = vmatprep.mubr.msk.f32.mxu0 %vm223_vm1, %v15418_v34  ;;  %v15451_v34 = vld [vmem:[#allocation128_spill] sm:$0xff] }
 0x2ab   : > { %9957 = vmatmul.mubr.msk.f32.gmra.mrb[34].mxu0 %vm223_vm1, %v15419_v4  ;;  %v15452_v4 = vld [vmem:[#allocation130_spill] sm:$0xff] }
 0x2ac   : > { %9959 = vmatprep.mubr.msk.f32.mxu0 %vm223_vm1, %v15420_v58  ;;  %v15453_v58 = vld [vmem:[#allocation132_spill] sm:$0xff] }
 0x2af   : > { %9960 = vmatmul.mubr.msk.f32.gmra.mrb[36].mxu0 %vm223_vm1, %v15421_v24  ;;  %v15454_v24 = vld [vmem:[#allocation134_spill] sm:$0xff] }
 0x2b0   : > { %9962 = vmatprep.mubr.msk.f32.mxu0 %vm223_vm1, %v15422_v25  ;;  %v15455_v25 = vld [vmem:[#allocation136_spill] sm:$0xff] }
 0x2b3   : > { %9963 = vmatmul.mubr.msk.f32.gmra.mrb[38].mxu0 %vm223_vm1, %v15423_v55  ;;  %v15456_v55 = vld [vmem:[#allocation138_spill] sm:$0xff] }
 0x2b4   : > { %9965 = vmatprep.mubr.msk.f32.mxu0 %vm223_vm1, %v15424_v61  ;;  %v15457_v61 = vld [vmem:[#allocation140_spill] sm:$0xff] }
 0x2b7   : > { %9966 = vmatmul.mubr.msk.f32.gmra.mrb[40].mxu0 %vm223_vm1, %v15425_v30  ;;  %v15458_v30 = vld [vmem:[#allocation142_spill] sm:$0xff] }
 0x2b8   : > { %9968 = vmatprep.mubr.msk.f32.mxu0 %vm223_vm1, %v15426_v63  ;;  %v15459_v63 = vld [vmem:[#allocation144_spill] sm:$0xff] }
 0x2bb   : > { %9969 = vmatmul.mubr.msk.f32.gmra.mrb[42].mxu0 %vm223_vm1, %v15427_v0  ;;  %v15460_v0 = vld [vmem:[#allocation146_spill] sm:$0xff] }
 0x2bc   : > { %9971 = vmatprep.mubr.msk.f32.mxu0 %vm223_vm1, %v15428_v29  ;;  %v15461_v29 = vld [vmem:[#allocation148_spill] sm:$0xff] }
 0x2bf   : > { %9972 = vmatmul.mubr.msk.f32.gmra.mrb[44].mxu0 %vm223_vm1, %v15429_v46  ;;  %v11281_v46 = vld [vmem:[#allocation2 + $0x190] sm:$0xff] }
 0x2c0   : > { %9974 = vmatprep.mubr.msk.f32.mxu0 %vm223_vm1, %v15430_v60  ;;  %v11282_v60 = vld [vmem:[#allocation2 + $0x198] sm:$0xff] }
 0x2c3   : > { %9975 = vmatmul.mubr.msk.f32.gmra.mrb[46].mxu0 %vm223_vm1, %v15431_v9  ;;  %v11283_v9 = vld [vmem:[#allocation2 + $0x1a8] sm:$0xff] }
 0x2c4   : > { %9977 = vmatprep.mubr.msk.f32.mxu0 %vm223_vm1, %v15432_v53  ;;  %v11289_v53 = vld [vmem:[#allocation2 + $0x1e8] sm:$0xff] }
 0x2c7   : > { %9978 = vmatmul.mubr.msk.f32.gmra.mrb[48].mxu0 %vm223_vm1, %v15433_v50  ;;  %v11290_v50 = vld [vmem:[#allocation2 + $0x1f0] sm:$0xff] }
 0x2c8   : > { %9980 = vmatprep.mubr.msk.f32.mxu0 %vm223_vm1, %v15434_v20  ;;  %v11293_v20 = vld [vmem:[#allocation2 + $0x210] sm:$0xff] }
 0x2cb   : > { %9981 = vmatmul.mubr.msk.f32.gmra.mrb[50].mxu0 %vm223_vm1, %v15435_v48  ;;  %v11295_v48 = vld [vmem:[#allocation2 + $0x228] sm:$0xff] }
 0x2cc   : > { %9983 = vmatprep.mubr.msk.f32.mxu0 %vm223_vm1, %v12914_v16  ;;  %v3807_v16 = vrot.slane %v13295_v11, 7 }
 0x2ce   : > { %v9822_v27 = vpop.f32.mrb[78].mxu0 }
 0x2cf   : > { %v3318_v1 = vpop.f32.mrb[79].mxu0  ;;  %9984 = vmatmul.mubr.msk.f32.gmra.mrb[52].mxu0 %vm223_vm1, %v12918_v49  ;;  %v3808_v49 = vsel %vm649_vm2, %v3805_v19, %v3807_v16 }
 0x2d0   : > { %v13426_v3 = vadd.f32 %v3318_v1, %v13300_v39  ;;  %9986 = vmatprep.mubr.msk.f32.mxu0 %vm223_vm1, %v12929_v23  ;;  %v15462_v1 = vmov 0.0  }
 0x2d2   : > { %v9825_v21 = vpop.f32.mrb[80].mxu0 }
 0x2d3   : > { %v3328_v33 = vpop.f32.mrb[81].mxu0  ;;  %9987 = vmatmul.mubr.msk.f32.gmra.mrb[94].mxu0 %vm223_vm1, %v3804_v15  ;;  %v13524_v15 = vrot.slane %v15462_v1, 1 }
 0x2d4   : > { %9989 = vmatprep.mubr.msk.f32.mxu0 %vm223_vm1, %v3806_v13 }
 0x2d5   : > { %15463 = vst [vmem:[#allocation69_spill] sm:$0xff] %v13524_v15  ;;  %10079 = vmatprep.mubr.msk.f32.mxu1 %vm4934_vm4, %v13524_v15 }
 0x2d6   : > { %v9830_v40 = vpop.f32.mrb[82].mxu0  ;;  %10080 = vmatmul.mubr.msk.f32.vlgmr.msra.gmra.mrb[58].mxu1 %vm4934_vm4, %v13524_v15 }
 0x2d7   : > { %v3479_v39 = vpop.f32.mrb[83].mxu0  ;;  %9990 = vmatmul.mubr.msk.f32.gmra.mrb[96].mxu0 %vm223_vm1, %v3808_v49  ;;  %v4800_v49 = vld [vmem:[%s14891_s3] sm:$0xff] }
 0x2d8   : > { %9994 = vmatprep.mubr.msk.f32.mxu0 %vm223_vm1, %v15436_v44 }
 0x2da   : > { %v9833_v23 = vpop.f32.mrb[84].mxu0 }
 0x2db   : > { %v13440_v17 = vadd.f32 %v9833_v23, %v13314_v47  ;;  %v3489_v43 = vpop.f32.mrb[85].mxu0  ;;  %9995 = vmatmul.mubr.msk.f32.vlgmr.msra.gmra.mrb[98].mxu0 %vm223_vm1, %v15437_v45  ;;  %v15443_v47 = vld [vmem:[#allocation112_spill] sm:$0xff] }
 0x2dc   : > { %9997 = vmatprep.mubr.msk.f32.mxu0 %vm223_vm1, %v15438_v10 }
 0x2df   : > { %9998 = vmatmul.mubr.msk.f32.gmra.mrb[100].mxu0 %vm223_vm1, %v15439_v18 }
 0x2e0   : > { %10000 = vmatprep.mubr.msk.f32.mxu0 %vm223_vm1, %v15440_v7  ;;  %v4724_v7 = vlaneseq }
 0x2e3   : > { %10001 = vmatmul.mubr.msk.f32.gmra.mrb[4].mxu0 %vm223_vm1, %v15441_v62 }
 0x2e4   : > { %10003 = vmatprep.mubr.msk.f32.mxu0 %vm223_vm1, %v15442_v28  ;;  %v13560_v28 = vld [vmem:[%s14890_s2] ss:$0 sm:$0xff] }
 0x2e7   : > { %10004 = vmatmul.mubr.msk.f32.gmra.mrb[6].mxu0 %vm223_vm1, %v15443_v47 }
 0x2e8   : > { %10006 = vmatprep.mubr.msk.f32.mxu0 %vm223_vm1, %v15444_v31 }
 0x2eb   : > { %10007 = vmatmul.mubr.msk.f32.gmra.mrb[8].mxu0 %vm223_vm1, %v15445_v42  ;;  %v13562_v42 = vshrl.u32 %v4724_v7, 7 }
 0x2ec   : > { %10009 = vmatprep.mubr.msk.f32.mxu0 %vm223_vm1, %v15446_v56 }
 0x2ed   : > { %15464 = vst [vmem:[#allocation70_spill] sm:$0xff] %v13562_v42  ;;  %vm4728_vm5 = vcmp.ge.s32.totalorder %v13562_v42, 1 }
 0x2ef   : > { %10010 = vmatmul.mubr.msk.f32.gmra.mrb[14].mxu0 %vm223_vm1, %v15447_v38 }
 0x2f0   : > { %10012 = vmatprep.mubr.msk.f32.mxu0 %vm223_vm1, %v15448_v8  ;;  %v13566_v8 = vadd.s32 16, %v13562_v42 }
 0x2f2   : > { %vm4739_vm6 = vcmp.le.s32.totalorder %v13566_v8, 16 }
 0x2f3   : > { %10013 = vmatmul.mubr.msk.f32.gmra.mrb[16].mxu0 %vm223_vm1, %v15449_v22 }
 0x2f4   : > { %10015 = vmatprep.mubr.msk.f32.mxu0 %vm223_vm1, %v15450_v59  ;;  %v15465_v59 = vld [vmem:[#allocation77_spill] sm:$0xff] }
 0x2f7   : > { %10016 = vmatmul.mubr.msk.f32.gmra.mrb[18].mxu0 %vm223_vm1, %v15451_v34 }
 0x2f8   : > { %10018 = vmatprep.mubr.msk.f32.mxu0 %vm223_vm1, %v15452_v4 }
 0x2fb   : > { %10019 = vmatmul.mubr.msk.f32.gmra.mrb[20].mxu0 %vm223_vm1, %v15453_v58  ;;  %v15466_v58 = vld [vmem:[#allocation78_spill] sm:$0xff] }
 0x2fc   : > { %10021 = vmatprep.mubr.msk.f32.mxu0 %vm223_vm1, %v15454_v24 }
 0x2ff   : > { %10022 = vmatmul.mubr.msk.f32.gmra.mrb[22].mxu0 %vm223_vm1, %v15455_v25 }
 0x300   : > { %10024 = vmatprep.mubr.msk.f32.mxu0 %vm223_vm1, %v15456_v55 }
 0x303   : > { %10025 = vmatmul.mubr.msk.f32.gmra.mrb[24].mxu0 %vm223_vm1, %v15457_v61 }
 0x304   : > { %10027 = vmatprep.mubr.msk.f32.mxu0 %vm223_vm1, %v15458_v30 }
 0x307   : > { %10028 = vmatmul.mubr.msk.f32.gmra.mrb[26].mxu0 %vm223_vm1, %v15459_v63 }
 0x308   : > { %10030 = vmatprep.mubr.msk.f32.mxu0 %vm223_vm1, %v15460_v0  ;;  %v15467_v0 = vld [vmem:[#allocation79_spill] sm:$0xff] }
 0x30b   : > { %10031 = vmatmul.mubr.msk.f32.gmra.mrb[28].mxu0 %vm223_vm1, %v15461_v29 }
 0x30c   : > { %10033 = vmatprep.mubr.msk.f32.mxu0 %vm223_vm1, %v13112_v26  ;;  %v11284_v26 = vld [vmem:[#allocation2 + $0x1b0] sm:$0xff] }
 0x30f   : > { %10034 = vmatmul.mubr.msk.f32.gmra.mrb[30].mxu0 %vm223_vm1, %v13117_v57  ;;  %v11285_v57 = vld [vmem:[#allocation2 + $0x1b8] sm:$0xff] }
 0x310   : > { %10036 = vmatprep.mubr.msk.f32.mxu0 %vm223_vm1, %v13122_v41  ;;  %v11286_v41 = vld [vmem:[#allocation2 + $0x1c8] sm:$0xff] }
 0x313   : > { %10037 = vmatmul.mubr.msk.f32.gmra.mrb[32].mxu0 %vm223_vm1, %v13126_v35  ;;  %v11287_v35 = vld [vmem:[#allocation2 + $0x1d0] sm:$0xff] }
 0x314   : > { %10039 = vmatprep.mubr.msk.f32.mxu0 %vm223_vm1, %v13130_v12  ;;  %v11288_v12 = vld [vmem:[#allocation2 + $0x1d8] sm:$0xff] }
 0x317   : > { %10040 = vmatmul.mubr.msk.f32.gmra.mrb[34].mxu0 %vm223_vm1, %v11281_v46 }
 0x318   : > { %10042 = vmatprep.mubr.msk.f32.mxu0 %vm223_vm1, %v11282_v60 }
 0x31b   : > { %10043 = vmatmul.mubr.msk.f32.gmra.mrb[36].mxu0 %vm223_vm1, %v11283_v9  ;;  %v15468_v9 = vld [vmem:[#allocation80_spill] sm:$0xff] }
 0x31c   : > { %10045 = vmatprep.mubr.msk.f32.mxu0 %vm223_vm1, %v11284_v26 }
 0x31f   : > { %10046 = vmatmul.mubr.msk.f32.gmra.mrb[38].mxu0 %vm223_vm1, %v11285_v57 }
 0x320   : > { %10048 = vmatprep.mubr.msk.f32.mxu0 %vm223_vm1, %v11286_v41 }
 0x323   : > { %10049 = vmatmul.mubr.msk.f32.gmra.mrb[40].mxu0 %vm223_vm1, %v11287_v35 }
 0x324   : > { %10051 = vmatprep.mubr.msk.f32.mxu0 %vm223_vm1, %v11288_v12 }
 0x327   : > { %10052 = vmatmul.mubr.msk.f32.gmra.mrb[42].mxu0 %vm223_vm1, %v11289_v53 }
 0x328   : > { %10054 = vmatprep.mubr.msk.f32.mxu0 %vm223_vm1, %v11290_v50 }
 0x32b   : > { %10055 = vmatmul.mubr.msk.f32.gmra.mrb[44].mxu0 %vm223_vm1, %v11291_v37 }
 0x32c   : > { %10057 = vmatprep.mubr.msk.f32.mxu0 %vm223_vm1, %v11292_v14 }
 0x32f   : > { %10058 = vmatmul.mubr.msk.f32.gmra.mrb[46].mxu0 %vm223_vm1, %v11293_v20  ;;  %v15469_v20 = vld [vmem:[#allocation83_spill] sm:$0xff] }
 0x330   : > { %10060 = vmatprep.mubr.msk.f32.mxu0 %vm223_vm1, %v11294_v32 }
 0x333   : > { %10061 = vmatmul.mubr.msk.f32.gmra.mrb[48].mxu0 %vm223_vm1, %v11295_v48 }
 0x334   : > { %10063 = vmatprep.mubr.msk.f32.mxu0 %vm223_vm1, %v11296_v54 }
 0x337   : > { %10064 = vmatmul.mubr.msk.f32.gmra.mrb[50].mxu0 %vm223_vm1, %v11297_v6  ;;  %v15470_v6 = vld [vmem:[#allocation84_spill] sm:$0xff] }
 0x338   : > { %10066 = vmatprep.mubr.msk.f32.mxu0 %vm223_vm1, %v12732_v51 }
 0x33a   : > { %v9905_v19 = vpop.f32.mrb[86].mxu0 }
 0x33b   : > { %v3729_v27 = vpop.f32.mrb[87].mxu0  ;;  %10067 = vmatmul.mubr.msk.f32.gmra.mrb[52].mxu0 %vm223_vm1, %v12734_v5 }
 0x33c   : > { %v3798_v16 = vadd.f32 %v3729_v27, %v13426_v3  ;;  %10069 = vmatprep.mubr.msk.f32.mxu0 %vm223_vm1, %v12747_v52 }
 0x33e   : > { %v9908_v13 = vpop.f32.mrb[88].mxu0 }
 0x33f   : > { %v3739_v51 = vpop.f32.mrb[89].mxu0  ;;  %10070 = vmatmul.mubr.msk.f32.gmra.mrb[102].mxu0 %vm223_vm1, %v13284_v2  ;;  %v4801_v2 = vld [vmem:[%s14891_s3 + $0x8] sm:$0xff] }
 0x340   : > { %10072 = vmatprep.mubr.msk.f32.mxu0 %vm223_vm1, %v13286_v36  ;;  %v10547_v40 = vpack.c.bf16 %v4801_v2, %v4800_v49  ;;  %v8283_v36 = vld [vmem:[%s14891_s3 + $0x20] sm:$0xff] }
 0x342   : > { %v9913_v5 = vpop.f32.mrb[90].mxu0  ;;  %10548 = vmatprep.subr.bf16.mxu1 %v10547_v40 }
 0x343   : > { %v3886_v3 = vpop.f32.mrb[91].mxu0  ;;  %10073 = vmatmul.mubr.msk.f32.gmra.mrb[104].mxu0 %vm223_vm1, %v13295_v11  ;;  %10550 = vmatpush3.bf16.msra.mxu1 %v10547_v40  ;;  %v8284_v11 = vld [vmem:[%s14891_s3 + $0x28] sm:$0xff] }
 0x344   : > { %v13552_v39 = vpack.c.bf16 %v8284_v11, %v8283_v36  ;;  %v15474_v11 = vld [vmem:[#allocation7_spill] sm:$0xff] }
 0x346   : > { %v9916_v52 = vpop.f32.mrb[92].mxu0  ;;  %10552 = vmatprep.subr.bf16.mxu1 %v13552_v39 }
 0x347   : > { %v4158_v21 = vadd.f32 %v9916_v52, %v13440_v17  ;;  %v3896_v33 = vpop.f32.mrb[93].mxu0 }
 0x3a6   : > { %v9988_v44 = vpop.f32.mrb[94].mxu0 }
 0x3a7   : > { %v4136_v23 = vpop.f32.mrb[95].mxu0 }
 0x3a8   : > { %v13555_v17 = vadd.f32 %v4136_v23, %v3798_v16 }
 0x3aa   : > { %v9991_v43 = vpop.f32.mrb[96].mxu0 }
 0x3ab   : > { %v4146_v45 = vpop.f32.mrb[97].mxu0 }
 0x3ae   : > { %v9996_v10 = vpop.f32.mrb[98].mxu0 }
 0x3af   : > { %v4286_v18 = vpop.f32.mrb[99].mxu0 }
 0x3b2   : > { %v9999_v62 = vpop.f32.mrb[100].mxu0 }
 0x3b3   : > { %v4558_v47 = vadd.f32 %v9999_v62, %v4158_v21  ;;  %v4296_v31 = vpop.f32.mrb[101].mxu0  ;;  %v15473_v21 = vld [vmem:[#allocation6_spill] sm:$0xff] }
 0x3b4   : > { %v15476_v31 = vld [vmem:[#allocation8_spill] sm:$0xff] }
 0x3b5   : > { %v4619_v56 = vadd.f32 %v13560_v28, %v4558_v47 }
 0x3b6   : > { %v10002_v38 = vpop.f32.mrb[4].mxu0 }
 0x3b7   : > { %v4673_v22 = vmax.f32 %v4619_v56, 0.0  ;;  %v10581_v34 = vadd.f32 %v10002_v38, %v15465_v59  ;;  %v4306_v4 = vpop.f32.mrb[5].mxu0  ;;  %v15477_v59 = vld [vmem:[#allocation86_spill] sm:$0xff] }
 0x3b8   : > { %v10582_v24 = vadd.f32 %v4306_v4, %v15466_v58 }
 0x3b9   : > { %v4621_v25 = vadd.f32 %v10581_v34, %v13560_v28  ;;  %v13576_v30 = vsel %vm4728_vm5, %v4673_v22, 0.0 }
 0x3ba   : > { %v4620_v55 = vadd.f32 %v10582_v24, %v13560_v28  ;;  %v10005_v61 = vpop.f32.mrb[6].mxu0  ;;  %v4856_v50 = vrot.slane %v13576_v30, 1 }
 0x3bb   : > { %v4675_v63 = vmax.f32 %v4621_v25, 0.0  ;;  %v10583_v29 = vadd.f32 %v10005_v61, %v15467_v0  ;;  %v4316_v46 = vpop.f32.mrb[7].mxu0 }
 0x3bc   : > { %v13579_v60 = vmax.f32 %v4620_v55, 0.0  ;;  %v10584_v26 = vadd.f32 %v4316_v46, %v15468_v9  ;;  %v15479_v46 = vld [vmem:[#allocation87_spill] sm:$0xff] }
 0x3bd   : > { %v13584_v57 = vsel %vm4739_vm6, %v4675_v63, 0.0  ;;  %v4623_v41 = vadd.f32 %v10583_v29, %v13560_v28 }
 0x3be   : > { %v4859_v35 = vrot.slane %v13584_v57, 1  ;;  %v4622_v12 = vadd.f32 %v10584_v26, %v13560_v28  ;;  %v10008_v53 = vpop.f32.mrb[8].mxu0  ;;  %v4857_v37 = vrot.slane %v13579_v60, 1 }
 0x3bf   : > { %v13591_v14 = vmax.f32 %v4623_v41, 0.0  ;;  %v10585_v32 = vadd.f32 %v10008_v53, %v15469_v20  ;;  %v4326_v48 = vpop.f32.mrb[9].mxu0 }
 0x3c0   : > { %v4676_v54 = vmax.f32 %v4622_v12, 0.0  ;;  %v10586_v19 = vadd.f32 %v4326_v48, %v15470_v6  ;;  %v13596_v27 = vsel %vm4850_vm7, %v4856_v50, %v4857_v37  ;;  %v13599_v16 = vsel %vm4850_vm7, %v4857_v37, %v4859_v35  ;;  %v15480_v35 = vld [vmem:[#allocation88_spill] sm:$0xff]  ;;  %v15483_v6 = vld [vmem:[#allocation89_spill] sm:$0xff] }
 0x3c1   : > { %15471 = vst [vmem:[#allocation71_spill] sm:$0xff] %v13596_v27  ;;  %15472 = vst [vmem:[#allocation72_spill] sm:$0xff] %v13599_v16  ;;  %v4625_v13 = vadd.f32 %v10585_v32, %v13560_v28  ;;  %10082 = vmatprep.mubr.msk.f32.mxu1 %vm4934_vm4, %v13596_v27  ;;  %v4862_v40 = vrot.slane %v13591_v14, 1 }
 0x3c2   : > { %v13606_v51 = vsel %vm4728_vm5, %v4676_v54, 0.0  ;;  %v4624_v5 = vadd.f32 %v10586_v19, %v13560_v28  ;;  %v10011_v3 = vpop.f32.mrb[14].mxu0  ;;  %10083 = vmatmul.mubr.msk.f32.gmra.mrb[60].mxu1 %vm4934_vm4, %v13599_v16 }
 0x3c3   : > { %v4679_v52 = vmax.f32 %v4625_v13, 0.0  ;;  %v10587_v33 = vadd.f32 %v10011_v3, %v15473_v21  ;;  %v4336_v49 = vpop.f32.mrb[15].mxu0  ;;  %v4861_v2 = vrot.slane %v13606_v51, 1  ;;  %v15484_v21 = vld [vmem:[#allocation90_spill] sm:$0xff] }
 0x3c4   : > { %v4678_v36 = vmax.f32 %v4624_v5, 0.0  ;;  %v10588_v44 = vadd.f32 %v4336_v49, %v15474_v11 }
 0x3c5   : > { %v4627_v23 = vadd.f32 %v10587_v33, %v13560_v28  ;;  %v13617_v43 = vsel %vm4850_vm7, %v4861_v2, %v4862_v40  ;;  %v13628_v7 = vsel %vm4728_vm5, %v4679_v52, 0.0 }
 0x3c6   : > { %15475 = vst [vmem:[#allocation73_spill] sm:$0xff] %v13617_v43  ;;  %v13621_v45 = vsel %vm4739_vm6, %v4678_v36, 0.0  ;;  %v4626_v10 = vadd.f32 %v10588_v44, %v13560_v28  ;;  %v10014_v18 = vpop.f32.mrb[16].mxu0  ;;  %10085 = vmatprep.mubr.msk.f32.mxu1 %vm4934_vm4, %v13617_v43  ;;  %v4866_v63 = vrot.slane %v13628_v7, 1 }
 0x3c7   : > { %v4864_v62 = vrot.slane %v13621_v45, 1  ;;  %v4681_v47 = vmax.f32 %v4627_v23, 0.0  ;;  %v10589_v56 = vadd.f32 %v10014_v18, %v15476_v31  ;;  %v4346_v38 = vpop.f32.mrb[17].mxu0  ;;  %v15486_v18 = vld [vmem:[#allocation91_spill] sm:$0xff] }
 0x3c8   : > { %v13632_v22 = vmax.f32 %v4626_v10, 0.0  ;;  %v10590_v34 = vadd.f32 %v4346_v38, %v15477_v59 }
 0x3c9   : > { %v13637_v4 = vsel %vm4739_vm6, %v4681_v47, 0.0  ;;  %v4629_v58 = vadd.f32 %v10589_v56, %v13560_v28  ;;  %v13641_v24 = vsel %vm4850_vm7, %v4862_v40, %v4864_v62  ;;  %v15487_v56 = vld [vmem:[#allocation92_spill] sm:$0xff] }
 0x3ca   : > { %15478 = vst [vmem:[#allocation74_spill] sm:$0xff] %v13641_v24  ;;  %v4869_v25 = vrot.slane %v13637_v4, 1  ;;  %v4628_v55 = vadd.f32 %v10590_v34, %v13560_v28  ;;  %v10017_v61 = vpop.f32.mrb[18].mxu0  ;;  %10086 = vmatmul.mubr.msk.f32.gmra.mrb[62].mxu1 %vm4934_vm4, %v13641_v24  ;;  %v4867_v0 = vrot.slane %v13632_v22, 1 }
 0x3cb   : > { %v13649_v29 = vmax.f32 %v4629_v58, 0.0  ;;  %v10591_v9 = vadd.f32 %v10017_v61, %v15479_v46  ;;  %v4356_v26 = vpop.f32.mrb[19].mxu0 }
 0x3cc   : > { %v4682_v41 = vmax.f32 %v4628_v55, 0.0  ;;  %v10592_v12 = vadd.f32 %v4356_v26, %v15480_v35  ;;  %v13654_v53 = vsel %vm4850_vm7, %v4866_v63, %v4867_v0  ;;  %v13657_v50 = vsel %vm4850_vm7, %v4867_v0, %v4869_v25 }
 0x3cd   : > { %15481 = vst [vmem:[#allocation75_spill] sm:$0xff] %v13654_v53  ;;  %15482 = vst [vmem:[#allocation32_spill] sm:$0xff] %v13657_v50  ;;  %v4631_v37 = vadd.f32 %v10591_v9, %v13560_v28  ;;  %10088 = vmatprep.mubr.msk.f32.mxu1 %vm4934_vm4, %v13654_v53  ;;  %v4872_v3 = vrot.slane %v13649_v29, 1  ;;  %v15489_v9 = vld [vmem:[#allocation93_spill] sm:$0xff] }
 0x3ce   : > { %v13664_v20 = vsel %vm4728_vm5, %v4682_v41, 0.0  ;;  %v4630_v32 = vadd.f32 %v10592_v12, %v13560_v28  ;;  %v10020_v48 = vpop.f32.mrb[20].mxu0  ;;  %10089 = vmatmul.mubr.msk.f32.gmra.mrb[64].mxu1 %vm4934_vm4, %v13657_v50  ;;  %v15490_v12 = vld [vmem:[#allocation94_spill] sm:$0xff] }
 0x3cf   : > { %v4685_v54 = vmax.f32 %v4631_v37, 0.0  ;;  %v10593_v19 = vadd.f32 %v10020_v48, %v15483_v6  ;;  %v4366_v13 = vpop.f32.mrb[21].mxu0  ;;  %v4871_v5 = vrot.slane %v13664_v20, 1 }
 0x3d0   : > { %v4684_v52 = vmax.f32 %v4630_v32, 0.0  ;;  %v10594_v33 = vadd.f32 %v4366_v13, %v15484_v21 }
 0x3d1   : > { %v4633_v49 = vadd.f32 %v10593_v19, %v13560_v28  ;;  %v13675_v2 = vsel %vm4850_vm7, %v4871_v5, %v4872_v3  ;;  %v13686_v44 = vsel %vm4728_vm5, %v4685_v54, 0.0 }
 0x3d2   : > { %15485 = vst [vmem:[#allocation33_spill] sm:$0xff] %v13675_v2  ;;  %v13679_v40 = vsel %vm4739_vm6, %v4684_v52, 0.0  ;;  %v4632_v36 = vadd.f32 %v10594_v33, %v13560_v28  ;;  %v10023_v11 = vpop.f32.mrb[22].mxu0  ;;  %10091 = vmatprep.mubr.msk.f32.mxu1 %vm4934_vm4, %v13675_v2  ;;  %v4876_v63 = vrot.slane %v13686_v44, 1 }
 0x3d3   : > { %v4874_v23 = vrot.slane %v13679_v40, 1  ;;  %v4687_v10 = vmax.f32 %v4633_v49, 0.0  ;;  %v10595_v62 = vadd.f32 %v10023_v11, %v15486_v18  ;;  %v4376_v47 = vpop.f32.mrb[23].mxu0  ;;  %v15494_v11 = vld [vmem:[#allocation96_spill] sm:$0xff] }
 0x3d4   : > { %v13690_v31 = vmax.f32 %v4632_v36, 0.0  ;;  %v10596_v38 = vadd.f32 %v4376_v47, %v15487_v56 }
 0x3d5   : > { %v13695_v59 = vsel %vm4739_vm6, %v4687_v10, 0.0  ;;  %v4635_v34 = vadd.f32 %v10595_v62, %v13560_v28  ;;  %v13699_v58 = vsel %vm4850_vm7, %v4872_v3, %v4874_v23  ;;  %v15493_v3 = vld [vmem:[#allocation95_spill] sm:$0xff] }
 0x3d6   : > { %15488 = vst [vmem:[#allocation36_spill] sm:$0xff] %v13699_v58  ;;  %v4879_v25 = vrot.slane %v13695_v59, 1  ;;  %v4634_v55 = vadd.f32 %v10596_v38, %v13560_v28  ;;  %v10026_v61 = vpop.f32.mrb[24].mxu0  ;;  %10092 = vmatmul.mubr.msk.f32.gmra.mrb[66].mxu1 %vm4934_vm4, %v13699_v58  ;;  %v4877_v0 = vrot.slane %v13690_v31, 1 }
 0x3d7   : > { %v13707_v46 = vmax.f32 %v4635_v34, 0.0  ;;  %v10597_v26 = vadd.f32 %v10026_v61, %v15489_v9  ;;  %v4386_v41 = vpop.f32.mrb[25].mxu0  ;;  %v15497_v9 = vld [vmem:[#allocation99_spill] sm:$0xff] }
 0x3d8   : > { %v4688_v35 = vmax.f32 %v4634_v55, 0.0  ;;  %v10598_v37 = vadd.f32 %v4386_v41, %v15490_v12  ;;  %v13712_v32 = vsel %vm4850_vm7, %v4876_v63, %v4877_v0  ;;  %v13715_v48 = vsel %vm4850_vm7, %v4877_v0, %v4879_v25  ;;  %v15496_v55 = vld [vmem:[#allocation97_spill] sm:$0xff] }
 0x3d9   : > { %15491 = vst [vmem:[#allocation37_spill] sm:$0xff] %v13712_v32  ;;  %15492 = vst [vmem:[#allocation38_spill] sm:$0xff] %v13715_v48  ;;  %v4637_v54 = vadd.f32 %v10597_v26, %v13560_v28  ;;  %10094 = vmatprep.mubr.msk.f32.mxu1 %vm4934_vm4, %v13712_v32  ;;  %v4882_v49 = vrot.slane %v13707_v46, 1 }
 0x3da   : > { %v13722_v6 = vsel %vm4728_vm5, %v4688_v35, 0.0  ;;  %v4636_v19 = vadd.f32 %v10598_v37, %v13560_v28  ;;  %v10029_v13 = vpop.f32.mrb[26].mxu0  ;;  %10095 = vmatmul.mubr.msk.f32.gmra.mrb[68].mxu1 %vm4934_vm4, %v13715_v48 }
 0x3db   : > { %v4691_v5 = vmax.f32 %v4637_v54, 0.0  ;;  %v10599_v52 = vadd.f32 %v10029_v13, %v15493_v3  ;;  %v4396_v21 = vpop.f32.mrb[27].mxu0  ;;  %v4881_v33 = vrot.slane %v13722_v6, 1 }
 0x3dc   : > { %v4690_v36 = vmax.f32 %v4636_v19, 0.0  ;;  %v10600_v23 = vadd.f32 %v4396_v21, %v15494_v11 }
 0x3dd   : > { %v4639_v10 = vadd.f32 %v10599_v52, %v13560_v28  ;;  %v13733_v18 = vsel %vm4850_vm7, %v4881_v33, %v4882_v49  ;;  %v13744_v38 = vsel %vm4728_vm5, %v4691_v5, 0.0  ;;  %v15499_v52 = vld [vmem:[#allocation101_spill] sm:$0xff] }
 0x3de   : > { %15495 = vst [vmem:[#allocation41_spill] sm:$0xff] %v13733_v18  ;;  %v13737_v62 = vsel %vm4739_vm6, %v4690_v36, 0.0  ;;  %v4638_v47 = vadd.f32 %v10600_v23, %v13560_v28  ;;  %v10032_v56 = vpop.f32.mrb[28].mxu0  ;;  %10097 = vmatprep.mubr.msk.f32.mxu1 %vm4934_vm4, %v13733_v18  ;;  %v4886_v13 = vrot.slane %v13744_v38, 1 }
 0x3df   : > { %v4884_v34 = vrot.slane %v13737_v62, 1  ;;  %v4693_v25 = vmax.f32 %v4639_v10, 0.0  ;;  %v10601_v61 = vadd.f32 %v10032_v56, %v15496_v55  ;;  %v4406_v63 = vpop.f32.mrb[29].mxu0 }
 0x3e0   : > { %v13748_v0 = vmax.f32 %v4638_v47, 0.0  ;;  %v10602_v26 = vadd.f32 %v4406_v63, %v15497_v9 }
 0x3e1   : > { %v13753_v41 = vsel %vm4739_vm6, %v4693_v25, 0.0  ;;  %v4641_v35 = vadd.f32 %v10601_v61, %v13560_v28  ;;  %v13757_v12 = vsel %vm4850_vm7, %v4882_v49, %v4884_v34  ;;  %v15500_v49 = vld [vmem:[#allocation103_spill] sm:$0xff]  ;;  %v15503_v61 = vld [vmem:[#allocation105_spill] sm:$0xff] }
 0x3e2   : > { %15498 = vst [vmem:[#allocation42_spill] sm:$0xff] %v13757_v12  ;;  %v4889_v37 = vrot.slane %v13753_v41, 1  ;;  %v4640_v54 = vadd.f32 %v10602_v26, %v13560_v28  ;;  %v10035_v19 = vpop.f32.mrb[30].mxu0  ;;  %10098 = vmatmul.mubr.msk.f32.gmra.mrb[70].mxu1 %vm4934_vm4, %v13757_v12  ;;  %v4887_v5 = vrot.slane %v13748_v0, 1 }
 0x3e3   : > { %v13765_v3 = vmax.f32 %v4641_v35, 0.0  ;;  %v10603_v21 = vadd.f32 %v10035_v19, %v15499_v52  ;;  %v4416_v33 = vpop.f32.mrb[31].mxu0 }
 0x3e4   : > { %v4694_v36 = vmax.f32 %v4640_v54, 0.0  ;;  %v10604_v11 = vadd.f32 %v4416_v33, %v15500_v49  ;;  %v13770_v23 = vsel %vm4850_vm7, %v4886_v13, %v4887_v5  ;;  %v13773_v10 = vsel %vm4850_vm7, %v4887_v5, %v4889_v37  ;;  %v15504_v54 = vld [vmem:[#allocation107_spill] sm:$0xff] }
 0x3e5   : > { %15501 = vst [vmem:[#allocation43_spill] sm:$0xff] %v13770_v23  ;;  %15502 = vst [vmem:[#allocation48_spill] sm:$0xff] %v13773_v10  ;;  %v4643_v47 = vadd.f32 %v10603_v21, %v13560_v28  ;;  %10100 = vmatprep.mubr.msk.f32.mxu1 %vm4934_vm4, %v13770_v23  ;;  %v4892_v35 = vrot.slane %v13765_v3, 1 }
 0x3e6   : > { %v13780_v56 = vsel %vm4728_vm5, %v4694_v36, 0.0  ;;  %v4642_v34 = vadd.f32 %v10604_v11, %v13560_v28  ;;  %v10038_v25 = vpop.f32.mrb[32].mxu0  ;;  %10101 = vmatmul.mubr.msk.f32.gmra.mrb[72].mxu1 %vm4934_vm4, %v13773_v10 }
 0x3e7   : > { %v4697_v55 = vmax.f32 %v4643_v47, 0.0  ;;  %v10605_v63 = vadd.f32 %v10038_v25, %v15503_v61  ;;  %v4426_v9 = vpop.f32.mrb[33].mxu0  ;;  %v4891_v26 = vrot.slane %v13780_v56, 1  ;;  %v15506_v47 = vld [vmem:[#allocation109_spill] sm:$0xff] }
 0x3e8   : > { %v4696_v37 = vmax.f32 %v4642_v34, 0.0  ;;  %v10606_v19 = vadd.f32 %v4426_v9, %v15504_v54 }
 0x3e9   : > { %v4645_v13 = vadd.f32 %v10605_v63, %v13560_v28  ;;  %v13791_v5 = vsel %vm4850_vm7, %v4891_v26, %v4892_v35  ;;  %v13802_v36 = vsel %vm4728_vm5, %v4697_v55, 0.0  ;;  %v15507_v63 = vld [vmem:[#allocation111_spill] sm:$0xff] }
 0x3ea   : > { %15505 = vst [vmem:[#allocation51_spill] sm:$0xff] %v13791_v5  ;;  %v13795_v52 = vsel %vm4739_vm6, %v4696_v37, 0.0  ;;  %v4644_v21 = vadd.f32 %v10606_v19, %v13560_v28  ;;  %v10041_v33 = vpop.f32.mrb[34].mxu0  ;;  %10103 = vmatprep.mubr.msk.f32.mxu1 %vm4934_vm4, %v13791_v5 }
 0x3eb   : > { %v4894_v49 = vrot.slane %v13795_v52, 1  ;;  %v4699_v11 = vmax.f32 %v4645_v13, 0.0  ;;  %v10607_v34 = vadd.f32 %v10041_v33, %v15506_v47  ;;  %v4436_v25 = vpop.f32.mrb[35].mxu0 }
 0x3ec   : > { %v13806_v61 = vmax.f32 %v4644_v21, 0.0  ;;  %v10608_v9 = vadd.f32 %v4436_v25, %v15507_v63  ;;  %v4896_v21 = vrot.slane %v13802_v36, 1 }
 0x3ed   : > { %v13811_v26 = vsel %vm4739_vm6, %v4699_v11, 0.0  ;;  %v4647_v37 = vadd.f32 %v10607_v34, %v13560_v28  ;;  %v13815_v54 = vsel %vm4850_vm7, %v4892_v35, %v4894_v49  ;;  %v15509_v11 = vld [vmem:[#allocation113_spill] sm:$0xff]  ;;  %v15510_v35 = vld [vmem:[#allocation115_spill] sm:$0xff] }
 0x3ee   : > { %15508 = vst [vmem:[#allocation56_spill] sm:$0xff] %v13815_v54  ;;  %v4899_v55 = vrot.slane %v13811_v26, 1  ;;  %v4646_v19 = vadd.f32 %v10608_v9, %v13560_v28  ;;  %v10044_v13 = vpop.f32.mrb[36].mxu0  ;;  %10104 = vmatmul.mubr.msk.f32.gmra.mrb[74].mxu1 %vm4934_vm4, %v13815_v54  ;;  %v4897_v33 = vrot.slane %v13806_v61, 1 }
 0x3ef   : > { %v13823_v47 = vmax.f32 %v4647_v37, 0.0  ;;  %v10609_v25 = vadd.f32 %v10044_v13, %v15509_v11  ;;  %v4446_v34 = vpop.f32.mrb[37].mxu0  ;;  %v15513_v11 = vld [vmem:[#allocation117_spill] sm:$0xff] }
 0x3f0   : > { %v4700_v63 = vmax.f32 %v4646_v19, 0.0  ;;  %v10610_v49 = vadd.f32 %v4446_v34, %v15510_v35  ;;  %v13828_v15 = vsel %vm4850_vm7, %v4896_v21, %v4897_v33  ;;  %v13831_v9 = vsel %vm4850_vm7, %v4897_v33, %v4899_v55 }
 0x3f1   : > { %15511 = vst [vmem:[#allocation59_spill] sm:$0xff] %v13828_v15  ;;  %15512 = vst [vmem:[#allocation76_spill] sm:$0xff] %v13831_v9  ;;  %v4649_v54 = vadd.f32 %v10609_v25, %v13560_v28  ;;  %10106 = vmatprep.mubr.msk.f32.mxu1 %vm4934_vm4, %v13828_v15  ;;  %v4902_v25 = vrot.slane %v13823_v47, 1  ;;  %v15514_v15 = vld [vmem:[#allocation119_spill] sm:$0xff] }
 0x3f2   : > { %v13838_v37 = vsel %vm4728_vm5, %v4700_v63, 0.0  ;;  %v4648_v13 = vadd.f32 %v10610_v49, %v13560_v28  ;;  %v10047_v19 = vpop.f32.mrb[38].mxu0  ;;  %10107 = vmatmul.mubr.msk.f32.gmra.mrb[76].mxu1 %vm4934_vm4, %v13831_v9 }
 0x3f3   : > { %v4703_v21 = vmax.f32 %v4649_v54, 0.0  ;;  %v10611_v34 = vadd.f32 %v10047_v19, %v15513_v11  ;;  %v4456_v55 = vpop.f32.mrb[39].mxu0  ;;  %v4901_v33 = vrot.slane %v13838_v37, 1 }
 0x3f4   : > { %v4702_v35 = vmax.f32 %v4648_v13, 0.0  ;;  %v10612_v5 = vadd.f32 %v4456_v55, %v15514_v15 }
 0x3f5   : > { %v4651_v63 = vadd.f32 %v10611_v34, %v13560_v28  ;;  %v13849_v10 = vsel %vm4850_vm7, %v4901_v33, %v4902_v25  ;;  %v13860_v13 = vsel %vm4728_vm5, %v4703_v21, 0.0  ;;  %v15516_v34 = vld [vmem:[#allocation121_spill] sm:$0xff] }
 0x3f6   : > { %15515 = vst [vmem:[#allocation81_spill] sm:$0xff] %v13849_v10  ;;  %v13853_v49 = vsel %vm4739_vm6, %v4702_v35, 0.0  ;;  %v4650_v54 = vadd.f32 %v10612_v5, %v13560_v28  ;;  %v10050_v19 = vpop.f32.mrb[40].mxu0  ;;  %10109 = vmatprep.mubr.msk.f32.mxu1 %vm4934_vm4, %v13849_v10  ;;  %v15517_v35 = vld [vmem:[#allocation123_spill] sm:$0xff] }
 0x3f7   : > { %v4904_v15 = vrot.slane %v13853_v49, 1  ;;  %v4705_v11 = vmax.f32 %v4651_v63, 0.0  ;;  %v10613_v55 = vadd.f32 %v10050_v19, %v15516_v34  ;;  %v4466_v33 = vpop.f32.mrb[41].mxu0 }
 0x3f8   : > { %v13864_v9 = vmax.f32 %v4650_v54, 0.0  ;;  %v10614_v23 = vadd.f32 %v4466_v33, %v15517_v35  ;;  %v4906_v54 = vrot.slane %v13860_v13, 1 }
 0x3f9   : > { %v13869_v5 = vsel %vm4739_vm6, %v4705_v11, 0.0  ;;  %v4653_v10 = vadd.f32 %v10613_v55, %v13560_v28  ;;  %v13873_v12 = vsel %vm4850_vm7, %v4902_v25, %v4904_v15  ;;  %v15519_v11 = vld [vmem:[#allocation125_spill] sm:$0xff]  ;;  %v15520_v25 = vld [vmem:[#allocation127_spill] sm:$0xff] }
 0x3fa   : > { %15518 = vst [vmem:[#allocation82_spill] sm:$0xff] %v13873_v12  ;;  %v4909_v21 = vrot.slane %v13869_v5, 1  ;;  %v4652_v63 = vadd.f32 %v10614_v23, %v13560_v28  ;;  %v10053_v18 = vpop.f32.mrb[42].mxu0  ;;  %10110 = vmatmul.mubr.msk.f32.gmra.mrb[78].mxu1 %vm4934_vm4, %v13873_v12  ;;  %v4907_v19 = vrot.slane %v13864_v9, 1 }
 0x3fb   : > { %v13881_v34 = vmax.f32 %v4653_v10, 0.0  ;;  %v10615_v33 = vadd.f32 %v10053_v18, %v15519_v11  ;;  %v4476_v55 = vpop.f32.mrb[43].mxu0  ;;  %v15523_v11 = vld [vmem:[#allocation129_spill] sm:$0xff] }
 0x3fc   : > { %v4706_v35 = vmax.f32 %v4652_v63, 0.0  ;;  %v10616_v15 = vadd.f32 %v4476_v55, %v15520_v25  ;;  %v13886_v48 = vsel %vm4850_vm7, %v4906_v54, %v4907_v19  ;;  %v13889_v23 = vsel %vm4850_vm7, %v4907_v19, %v4909_v21 }
 0x3fd   : > { %15521 = vst [vmem:[#allocation85_spill] sm:$0xff] %v13886_v48  ;;  %15522 = vst [vmem:[#allocation9_spill] sm:$0xff] %v13889_v23  ;;  %v4655_v12 = vadd.f32 %v10615_v33, %v13560_v28  ;;  %10112 = vmatprep.mubr.msk.f32.mxu1 %vm4934_vm4, %v13886_v48  ;;  %v4912_v33 = vrot.slane %v13881_v34, 1  ;;  %v15524_v48 = vld [vmem:[#allocation131_spill] sm:$0xff] }
 0x3fe   : > { %v13896_v10 = vsel %vm4728_vm5, %v4706_v35, 0.0  ;;  %v4654_v18 = vadd.f32 %v10616_v15, %v13560_v28  ;;  %v10056_v63 = vpop.f32.mrb[44].mxu0  ;;  %10113 = vmatmul.mubr.msk.f32.gmra.mrb[80].mxu1 %vm4934_vm4, %v13889_v23 }
 0x3ff   : > { %v4709_v54 = vmax.f32 %v4655_v12, 0.0  ;;  %v10617_v55 = vadd.f32 %v10056_v63, %v15523_v11  ;;  %v4486_v21 = vpop.f32.mrb[45].mxu0  ;;  %v4911_v19 = vrot.slane %v13896_v10, 1 }
 0x400   : > { %v4708_v25 = vmax.f32 %v4654_v18, 0.0  ;;  %v10618_v32 = vadd.f32 %v4486_v21, %v15524_v48 }
 0x401   : > { %v4657_v35 = vadd.f32 %v10617_v55, %v13560_v28  ;;  %v13907_v58 = vsel %vm4850_vm7, %v4911_v19, %v4912_v33  ;;  %v13918_v18 = vsel %vm4728_vm5, %v4709_v54, 0.0  ;;  %v15526_v55 = vld [vmem:[#allocation133_spill] sm:$0xff] }
 0x402   : > { %15525 = vst [vmem:[#allocation10_spill] sm:$0xff] %v13907_v58  ;;  %v13911_v15 = vsel %vm4739_vm6, %v4708_v25, 0.0  ;;  %v4656_v12 = vadd.f32 %v10618_v32, %v13560_v28  ;;  %v10059_v63 = vpop.f32.mrb[46].mxu0  ;;  %10115 = vmatprep.mubr.msk.f32.mxu1 %vm4934_vm4, %v13907_v58  ;;  %v15527_v25 = vld [vmem:[#allocation135_spill] sm:$0xff] }
 0x403   : > { %v4914_v48 = vrot.slane %v13911_v15, 1  ;;  %v4711_v11 = vmax.f32 %v4657_v35, 0.0  ;;  %v10619_v21 = vadd.f32 %v10059_v63, %v15526_v55  ;;  %v4496_v19 = vpop.f32.mrb[47].mxu0 }
 0x404   : > { %v13922_v23 = vmax.f32 %v4656_v12, 0.0  ;;  %v10620_v2 = vadd.f32 %v4496_v19, %v15527_v25  ;;  %v4916_v12 = vrot.slane %v13918_v18, 1 }
 0x405   : > { %v13927_v32 = vsel %vm4739_vm6, %v4711_v11, 0.0  ;;  %v4659_v58 = vadd.f32 %v10619_v21, %v13560_v28  ;;  %v13931_v50 = vsel %vm4850_vm7, %v4912_v33, %v4914_v48  ;;  %v15529_v11 = vld [vmem:[#allocation137_spill] sm:$0xff]  ;;  %v15530_v33 = vld [vmem:[#allocation139_spill] sm:$0xff] }
 0x406   : > { %15528 = vst [vmem:[#allocation11_spill] sm:$0xff] %v13931_v50  ;;  %v4919_v54 = vrot.slane %v13927_v32, 1  ;;  %v4658_v35 = vadd.f32 %v10620_v2, %v13560_v28  ;;  %v10062_v53 = vpop.f32.mrb[48].mxu0  ;;  %10116 = vmatmul.mubr.msk.f32.gmra.mrb[82].mxu1 %vm4934_vm4, %v13931_v50  ;;  %v4917_v63 = vrot.slane %v13922_v23, 1 }
 0x407   : > { %v13939_v55 = vmax.f32 %v4659_v58, 0.0  ;;  %v10621_v19 = vadd.f32 %v10062_v53, %v15529_v11  ;;  %v4506_v21 = vpop.f32.mrb[49].mxu0  ;;  %v15533_v11 = vld [vmem:[#allocation141_spill] sm:$0xff] }
 0x408   : > { %v4712_v25 = vmax.f32 %v4658_v35, 0.0  ;;  %v10622_v48 = vadd.f32 %v4506_v21, %v15530_v33  ;;  %v13944_v24 = vsel %vm4850_vm7, %v4916_v12, %v4917_v63  ;;  %v13947_v2 = vsel %vm4850_vm7, %v4917_v63, %v4919_v54 }
 0x409   : > { %15531 = vst [vmem:[#allocation12_spill] sm:$0xff] %v13944_v24  ;;  %15532 = vst [vmem:[#allocation13_spill] sm:$0xff] %v13947_v2  ;;  %v4661_v50 = vadd.f32 %v10621_v19, %v13560_v28  ;;  %10118 = vmatprep.mubr.msk.f32.mxu1 %vm4934_vm4, %v13944_v24  ;;  %v4922_v19 = vrot.slane %v13939_v55, 1  ;;  %v15534_v24 = vld [vmem:[#allocation143_spill] sm:$0xff] }
 0x40a   : > { %v13954_v58 = vsel %vm4728_vm5, %v4712_v25, 0.0  ;;  %v4660_v53 = vadd.f32 %v10622_v48, %v13560_v28  ;;  %v10065_v35 = vpop.f32.mrb[50].mxu0  ;;  %10119 = vmatmul.mubr.msk.f32.gmra.mrb[84].mxu1 %vm4934_vm4, %v13947_v2 }
 0x40b   : > { %v4715_v12 = vmax.f32 %v4661_v50, 0.0  ;;  %v10623_v21 = vadd.f32 %v10065_v35, %v15533_v11  ;;  %v4516_v54 = vpop.f32.mrb[51].mxu0  ;;  %v4921_v63 = vrot.slane %v13954_v58, 1 }
 0x40c   : > { %v4714_v33 = vmax.f32 %v4660_v53, 0.0  ;;  %v10624_v43 = vadd.f32 %v4516_v54, %v15534_v24 }
 0x40d   : > { %v4663_v25 = vadd.f32 %v10623_v21, %v13560_v28  ;;  %v13965_v16 = vsel %vm4850_vm7, %v4921_v63, %v4922_v19  ;;  %v13976_v53 = vsel %vm4728_vm5, %v4715_v12, 0.0  ;;  %v15536_v21 = vld [vmem:[#allocation145_spill] sm:$0xff] }
 0x40e   : > { %15535 = vst [vmem:[#allocation14_spill] sm:$0xff] %v13965_v16  ;;  %v13969_v48 = vsel %vm4739_vm6, %v4714_v33, 0.0  ;;  %v4662_v50 = vadd.f32 %v10624_v43, %v13560_v28  ;;  %v10068_v35 = vpop.f32.mrb[52].mxu0  ;;  %10121 = vmatprep.mubr.msk.f32.mxu1 %vm4934_vm4, %v13965_v16  ;;  %v15538_v33 = vld [vmem:[#allocation147_spill] sm:$0xff] }
 0x40f   : > { %v4924_v24 = vrot.slane %v13969_v48, 1  ;;  %v4717_v11 = vmax.f32 %v4663_v25, 0.0  ;;  %v13980_v54 = vadd.f32 %v10068_v35, %v15536_v21  ;;  %v4526_v63 = vpop.f32.mrb[53].mxu0  ;;  %v4926_v25 = vrot.slane %v13976_v53, 1 }
 0x410   : > { %v13982_v2 = vmax.f32 %v4662_v50, 0.0  ;;  %v13985_v27 = vadd.f32 %v4526_v63, %v15538_v33 }
 0x411   : > { %v13989_v43 = vsel %vm4739_vm6, %v4717_v11, 0.0  ;;  %v13992_v16 = vsel %vm4850_vm7, %v4922_v19, %v4924_v24  ;;  %v8318_v24 = vld [vmem:[%s14891_s3 + $0x38] sm:$0xff] }
 0x412   : > { %15537 = vst [vmem:[#allocation15_spill] sm:$0xff] %v13982_v2  ;;  %v4929_v12 = vrot.slane %v13989_v43, 1  ;;  %v10071_v42 = vpop.f32.mrb[102].mxu0  ;;  %10122 = vmatmul.mubr.msk.f32.gmra.mrb[86].mxu1 %vm4934_vm4, %v13992_v16  ;;  %v4927_v50 = vrot.slane %v13982_v2, 1 }
 0x413   : > { %v4536_v35 = vpop.f32.mrb[103].mxu0  ;;  %v8317_v42 = vld [vmem:[%s14891_s3 + $0x30] sm:$0xff] }
 0x414   : > { %v14000_v21 = vadd.f32 %v4536_v35, %v13555_v17  ;;  %v14003_v11 = vsel %vm4850_vm7, %v4926_v25, %v4927_v50  ;;  %v14006_v19 = vsel %vm4850_vm7, %v4927_v50, %v4929_v12  ;;  %v10555_v33 = vpack.c.bf16 %v8318_v24, %v8317_v42  ;;  %v8351_v12 = vld [vmem:[%s14891_s3 + $0x40] sm:$0xff]  ;;  %v8352_v25 = vld [vmem:[%s14891_s3 + $0x48] sm:$0xff] }
 0x415   : > { %15539 = vst [vmem:[#allocation16_spill] sm:$0xff] %v14003_v11  ;;  %10124 = vmatprep.mubr.msk.f32.mxu1 %vm4934_vm4, %v14003_v11  ;;  %v5520_v50 = vrot.slane %v13579_v60, 2  ;;  %v5519_v35 = vrot.slane %v13576_v30, 2  ;;  %v14094_v42 = vpack.c.bf16 %v8352_v25, %v8351_v12  ;;  %v5522_v24 = vrot.slane %v13584_v57, 2 }
 0x416   : > { %10125 = vmatmul.mubr.msk.f32.gmra.mrb[88].mxu1 %vm4934_vm4, %v14006_v19  ;;  %v10074_v17 = vpop.f32.mrb[104].mxu0  ;;  %v5527_v12 = vrot.slane %v13621_v45, 2 }
 0x417   : > { %10131 = vmatprep.mubr.f32.mxu1 %v15462_v1  ;;  %v4546_v63 = vpop.f32.mrb[105].mxu0  ;;  %v14100_v17 = vsel %vm5513_vm8, %v5519_v35, %v5520_v50  ;;  %v14109_v57 = vsel %vm5513_vm8, %v5520_v50, %v5522_v24  ;;  %v5529_v35 = vrot.slane %v13628_v7, 2  ;;  %v5534_v24 = vrot.slane %v13664_v20, 2 }
 0x418   : > { %v5524_v63 = vrot.slane %v13606_v51, 2 }
 0x41a   : > { %10132 = vmatmul.mubr.f32.vlgmr.msra.gmra.mrb[58].mxu1 %v15462_v1 }
 0x41b   : > { %10554 = vmatpush3.bf16.msra.mxu1 %v13552_v39  ;;  %10134 = vmatprep.mubr.msk.f32.mxu1 %vm4934_vm4, %v13576_v30  ;;  %v14080_v39 = vrot.slane %v15462_v1, 2  ;;  %v5525_v1 = vrot.slane %v13591_v14, 2 }
 0x41c   : > { %10556 = vmatprep.subr.bf16.mxu1 %v10555_v33 }
 0x41d   : > { %15540 = vst [vmem:[#allocation17_spill] sm:$0xff] %v14080_v39  ;;  %v14114_v25 = vsel %vm5513_vm8, %v5524_v63, %v5525_v1  ;;  %v14122_v45 = vsel %vm5513_vm8, %v5525_v1, %v5527_v12  ;;  %v5535_v63 = vrot.slane %v13649_v29, 2  ;;  %v5540_v12 = vrot.slane %v13690_v31, 2 }
 0x41e   : > { %10135 = vmatmul.mubr.msk.f32.gmra.mrb[60].mxu1 %vm4934_vm4, %v13579_v60  ;;  %15541 = vst [vmem:[#allocation18_spill] sm:$0xff] %v14114_v25 }
 0x41f   : > { %10137 = vmatprep.mubr.msk.f32.mxu1 %vm4934_vm4, %v13606_v51  ;;  %v14140_v1 = vsel %vm5513_vm8, %v5534_v24, %v5535_v63  ;;  %v5545_v24 = vrot.slane %v13707_v46, 2 }
 0x420   : > { %15543 = vst [vmem:[#allocation20_spill] sm:$0xff] %v14140_v1 }
 0x422   : > { %10138 = vmatmul.mubr.msk.f32.gmra.mrb[62].mxu1 %vm4934_vm4, %v13591_v14 }
 0x423   : > { %10140 = vmatprep.mubr.msk.f32.mxu1 %vm4934_vm4, %v13628_v7 }
 0x426   : > { %10141 = vmatmul.mubr.msk.f32.gmra.mrb[64].mxu1 %vm4934_vm4, %v13632_v22 }
 0x427   : > { %10143 = vmatprep.mubr.msk.f32.mxu1 %vm4934_vm4, %v13664_v20 }
 0x42a   : > { %10144 = vmatmul.mubr.msk.f32.gmra.mrb[66].mxu1 %vm4934_vm4, %v13649_v29 }
 0x42b   : > { %10146 = vmatprep.mubr.msk.f32.mxu1 %vm4934_vm4, %v13686_v44 }
 0x42e   : > { %10147 = vmatmul.mubr.msk.f32.gmra.mrb[68].mxu1 %vm4934_vm4, %v13690_v31 }
 0x42f   : > { %10149 = vmatprep.mubr.msk.f32.mxu1 %vm4934_vm4, %v13722_v6 }
 0x432   : > { %10150 = vmatmul.mubr.msk.f32.gmra.mrb[70].mxu1 %vm4934_vm4, %v13707_v46 }
 0x433   : > { %10152 = vmatprep.mubr.msk.f32.mxu1 %vm4934_vm4, %v13744_v38 }
 0x436   : > { %10153 = vmatmul.mubr.msk.f32.gmra.mrb[72].mxu1 %vm4934_vm4, %v13748_v0 }
 0x437   : > { %10155 = vmatprep.mubr.msk.f32.mxu1 %vm4934_vm4, %v13780_v56 }
 0x43a   : > { %10156 = vmatmul.mubr.msk.f32.gmra.mrb[74].mxu1 %vm4934_vm4, %v13765_v3 }
 0x43b   : > { %10158 = vmatprep.mubr.msk.f32.mxu1 %vm4934_vm4, %v13802_v36 }
 0x43e   : > { %10159 = vmatmul.mubr.msk.f32.gmra.mrb[76].mxu1 %vm4934_vm4, %v13806_v61 }
 0x43f   : > { %10161 = vmatprep.mubr.msk.f32.mxu1 %vm4934_vm4, %v13838_v37 }
 0x442   : > { %10162 = vmatmul.mubr.msk.f32.gmra.mrb[78].mxu1 %vm4934_vm4, %v13823_v47 }
 0x443   : > { %10164 = vmatprep.mubr.msk.f32.mxu1 %vm4934_vm4, %v13860_v13 }
 0x446   : > { %10165 = vmatmul.mubr.msk.f32.gmra.mrb[80].mxu1 %vm4934_vm4, %v13864_v9 }
 0x447   : > { %10167 = vmatprep.mubr.msk.f32.mxu1 %vm4934_vm4, %v13896_v10 }
 0x44a   : > { %10168 = vmatmul.mubr.msk.f32.gmra.mrb[82].mxu1 %vm4934_vm4, %v13881_v34 }
 0x44b   : > { %10170 = vmatprep.mubr.msk.f32.mxu1 %vm4934_vm4, %v13918_v18 }
 0x44e   : > { %10171 = vmatmul.mubr.msk.f32.gmra.mrb[84].mxu1 %vm4934_vm4, %v13922_v23 }
 0x44f   : > { %10173 = vmatprep.mubr.msk.f32.mxu1 %vm4934_vm4, %v13954_v58 }
 0x452   : > { %10174 = vmatmul.mubr.msk.f32.gmra.mrb[86].mxu1 %vm4934_vm4, %v13939_v55 }
 0x453   : > { %10176 = vmatprep.mubr.msk.f32.mxu1 %vm4934_vm4, %v13976_v53 }
 0x456   : > { %10177 = vmatmul.mubr.msk.f32.gmra.mrb[88].mxu1 %vm4934_vm4, %v13982_v2 }
 0x457   : > { %10183 = vmatprep.mubr.msk.f32.mxu1 %vm4934_vm4, %v14080_v39 }
 0x45a   : > { %10184 = vmatmul.mubr.msk.f32.vlgmr.msra.gmra.mrb[58].mxu1 %vm4934_vm4, %v14080_v39  ;;  %v5532_v39 = vrot.slane %v13637_v4, 2 }
 0x45b   : > { %10558 = vmatpush3.bf16.msra.mxu1 %v10555_v33  ;;  %10186 = vmatprep.mubr.msk.f32.mxu1 %vm4934_vm4, %v14100_v17  ;;  %v5530_v33 = vrot.slane %v13632_v22, 2 }
 0x45c   : > { %10560 = vmatprep.subr.bf16.mxu1 %v14094_v42 }
 0x45d   : > { %v14127_v50 = vsel %vm5513_vm8, %v5529_v35, %v5530_v33  ;;  %v14135_v4 = vsel %vm5513_vm8, %v5530_v33, %v5532_v39  ;;  %v5539_v35 = vrot.slane %v13686_v44, 2  ;;  %v5544_v33 = vrot.slane %v13722_v6, 2 }
 0x45e   : > { %10187 = vmatmul.mubr.msk.f32.gmra.mrb[60].mxu1 %vm4934_vm4, %v14109_v57  ;;  %15542 = vst [vmem:[#allocation19_spill] sm:$0xff] %v14127_v50 }
 0x45f   : > { %10189 = vmatprep.mubr.msk.f32.mxu1 %vm4934_vm4, %v14114_v25  ;;  %v5537_v25 = vrot.slane %v13679_v40, 2  ;;  %v14153_v39 = vsel %vm5513_vm8, %v5539_v35, %v5540_v12  ;;  %v5549_v35 = vrot.slane %v13744_v38, 2 }
 0x460   : > { %15544 = vst [vmem:[#allocation21_spill] sm:$0xff] %v14153_v39 }
 0x461   : > { %v14148_v40 = vsel %vm5513_vm8, %v5535_v63, %v5537_v25  ;;  %v14166_v25 = vsel %vm5513_vm8, %v5544_v33, %v5545_v24  ;;  %v5550_v63 = vrot.slane %v13748_v0, 2  ;;  %v5555_v33 = vrot.slane %v13765_v3, 2 }
 0x462   : > { %10190 = vmatmul.mubr.msk.f32.gmra.mrb[62].mxu1 %vm4934_vm4, %v14122_v45  ;;  %15545 = vst [vmem:[#allocation22_spill] sm:$0xff] %v14166_v25 }
 0x463   : > { %10192 = vmatprep.mubr.msk.f32.mxu1 %vm4934_vm4, %v14127_v50  ;;  %v5542_v50 = vrot.slane %v13695_v59, 2 }
 0x465   : > { %v14161_v59 = vsel %vm5513_vm8, %v5540_v12, %v5542_v50  ;;  %v14179_v50 = vsel %vm5513_vm8, %v5549_v35, %v5550_v63  ;;  %v5554_v12 = vrot.slane %v13780_v56, 2  ;;  %v5559_v35 = vrot.slane %v13802_v36, 2 }
 0x466   : > { %10193 = vmatmul.mubr.msk.f32.gmra.mrb[64].mxu1 %vm4934_vm4, %v14135_v4  ;;  %15546 = vst [vmem:[#allocation23_spill] sm:$0xff] %v14179_v50 }
 0x467   : > { %10195 = vmatprep.mubr.msk.f32.mxu1 %vm4934_vm4, %v14140_v1  ;;  %v5547_v1 = vrot.slane %v13737_v62, 2 }
 0x469   : > { %v14174_v62 = vsel %vm5513_vm8, %v5545_v24, %v5547_v1  ;;  %v14192_v1 = vsel %vm5513_vm8, %v5554_v12, %v5555_v33  ;;  %v5560_v24 = vrot.slane %v13806_v61, 2  ;;  %v5565_v12 = vrot.slane %v13823_v47, 2 }
 0x46a   : > { %10196 = vmatmul.mubr.msk.f32.gmra.mrb[66].mxu1 %vm4934_vm4, %v14148_v40  ;;  %15547 = vst [vmem:[#allocation24_spill] sm:$0xff] %v14192_v1 }
 0x46b   : > { %10198 = vmatprep.mubr.msk.f32.mxu1 %vm4934_vm4, %v14153_v39  ;;  %v5552_v39 = vrot.slane %v13753_v41, 2 }
 0x46d   : > { %v14187_v41 = vsel %vm5513_vm8, %v5550_v63, %v5552_v39  ;;  %v14205_v39 = vsel %vm5513_vm8, %v5559_v35, %v5560_v24  ;;  %v5564_v63 = vrot.slane %v13838_v37, 2  ;;  %v5569_v35 = vrot.slane %v13860_v13, 2 }
 0x46e   : > { %10199 = vmatmul.mubr.msk.f32.gmra.mrb[68].mxu1 %vm4934_vm4, %v14161_v59  ;;  %15548 = vst [vmem:[#allocation25_spill] sm:$0xff] %v14205_v39 }
 0x46f   : > { %10201 = vmatprep.mubr.msk.f32.mxu1 %vm4934_vm4, %v14166_v25  ;;  %v5557_v25 = vrot.slane %v13795_v52, 2 }
 0x471   : > { %v14200_v52 = vsel %vm5513_vm8, %v5555_v33, %v5557_v25  ;;  %v14218_v25 = vsel %vm5513_vm8, %v5564_v63, %v5565_v12  ;;  %v5570_v33 = vrot.slane %v13864_v9, 2  ;;  %v5575_v63 = vrot.slane %v13881_v34, 2 }
 0x472   : > { %10202 = vmatmul.mubr.msk.f32.gmra.mrb[70].mxu1 %vm4934_vm4, %v14174_v62  ;;  %15549 = vst [vmem:[#allocation26_spill] sm:$0xff] %v14218_v25 }
 0x473   : > { %10204 = vmatprep.mubr.msk.f32.mxu1 %vm4934_vm4, %v14179_v50  ;;  %v5562_v50 = vrot.slane %v13811_v26, 2 }
 0x475   : > { %v14213_v26 = vsel %vm5513_vm8, %v5560_v24, %v5562_v50  ;;  %v14231_v50 = vsel %vm5513_vm8, %v5569_v35, %v5570_v33  ;;  %v5574_v24 = vrot.slane %v13896_v10, 2  ;;  %v5579_v35 = vrot.slane %v13918_v18, 2 }
 0x476   : > { %10205 = vmatmul.mubr.msk.f32.gmra.mrb[72].mxu1 %vm4934_vm4, %v14187_v41  ;;  %15550 = vst [vmem:[#allocation27_spill] sm:$0xff] %v14231_v50 }
 0x477   : > { %10207 = vmatprep.mubr.msk.f32.mxu1 %vm4934_vm4, %v14192_v1  ;;  %v5567_v1 = vrot.slane %v13853_v49, 2 }
 0x479   : > { %v14226_v49 = vsel %vm5513_vm8, %v5565_v12, %v5567_v1  ;;  %v14244_v1 = vsel %vm5513_vm8, %v5574_v24, %v5575_v63  ;;  %v5580_v12 = vrot.slane %v13922_v23, 2  ;;  %v5585_v24 = vrot.slane %v13939_v55, 2 }
 0x47a   : > { %10208 = vmatmul.mubr.msk.f32.gmra.mrb[74].mxu1 %vm4934_vm4, %v14200_v52  ;;  %15551 = vst [vmem:[#allocation28_spill] sm:$0xff] %v14244_v1 }
 0x47b   : > { %10210 = vmatprep.mubr.msk.f32.mxu1 %vm4934_vm4, %v14205_v39  ;;  %v5572_v39 = vrot.slane %v13869_v5, 2 }
 0x47d   : > { %v14239_v5 = vsel %vm5513_vm8, %v5570_v33, %v5572_v39  ;;  %v14257_v39 = vsel %vm5513_vm8, %v5579_v35, %v5580_v12  ;;  %v5584_v33 = vrot.slane %v13954_v58, 2  ;;  %v5589_v35 = vrot.slane %v13976_v53, 2 }
 0x47e   : > { %10211 = vmatmul.mubr.msk.f32.gmra.mrb[76].mxu1 %vm4934_vm4, %v14213_v26  ;;  %15553 = vst [vmem:[#allocation30_spill] sm:$0xff] %v14257_v39 }
 0x47f   : > { %10213 = vmatprep.mubr.msk.f32.mxu1 %vm4934_vm4, %v14218_v25  ;;  %v5577_v25 = vrot.slane %v13911_v15, 2 }
 0x481   : > { %v14252_v15 = vsel %vm5513_vm8, %v5575_v63, %v5577_v25  ;;  %v14270_v25 = vsel %vm5513_vm8, %v5584_v33, %v5585_v24  ;;  %v5590_v63 = vrot.slane %v13982_v2, 2  ;;  %v8385_v33 = vld [vmem:[%s14891_s3 + $0x50] sm:$0xff] }
 0x482   : > { %10214 = vmatmul.mubr.msk.f32.gmra.mrb[78].mxu1 %vm4934_vm4, %v14226_v49  ;;  %15552 = vst [vmem:[#allocation29_spill] sm:$0xff] %v14252_v15  ;;  %15554 = vst [vmem:[#allocation31_spill] sm:$0xff] %v14270_v25 }
 0x483   : > { %10216 = vmatprep.mubr.msk.f32.mxu1 %vm4934_vm4, %v14231_v50  ;;  %v5582_v50 = vrot.slane %v13927_v32, 2 }
 0x485   : > { %v14265_v32 = vsel %vm5513_vm8, %v5580_v12, %v5582_v50  ;;  %v14283_v50 = vsel %vm5513_vm8, %v5589_v35, %v5590_v63  ;;  %v15557_v35 = vld [vmem:[#allocation71_spill] sm:$0xff] }
 0x486   : > { %10217 = vmatmul.mubr.msk.f32.gmra.mrb[80].mxu1 %vm4934_vm4, %v14239_v5 }
 0x487   : > { %10219 = vmatprep.mubr.msk.f32.mxu1 %vm4934_vm4, %v14244_v1  ;;  %v5587_v1 = vrot.slane %v13969_v48, 2 }
 0x489   : > { %v14278_v48 = vsel %vm5513_vm8, %v5585_v24, %v5587_v1 }
 0x48a   : > { %10220 = vmatmul.mubr.msk.f32.gmra.mrb[82].mxu1 %vm4934_vm4, %v14252_v15  ;;  %15555 = vst [vmem:[#allocation34_spill] sm:$0xff] %v14278_v48 }
 0x48b   : > { %10222 = vmatprep.mubr.msk.f32.mxu1 %vm4934_vm4, %v14257_v39  ;;  %v5592_v39 = vrot.slane %v13989_v43, 2  ;;  %v8386_v43 = vld [vmem:[%s14891_s3 + $0x58] sm:$0xff] }
 0x48c   : > { %v10563_v1 = vpack.c.bf16 %v8386_v43, %v8385_v33  ;;  %v15558_v43 = vld [vmem:[#allocation72_spill] sm:$0xff] }
 0x48d   : > { %v14288_v12 = vsel %vm5513_vm8, %v5590_v63, %v5592_v39  ;;  %v8419_v63 = vld [vmem:[%s14891_s3 + $0x60] sm:$0xff] }
 0x48e   : > { %10223 = vmatmul.mubr.msk.f32.gmra.mrb[84].mxu1 %vm4934_vm4, %v14265_v32 }
 0x48f   : > { %10225 = vmatprep.mubr.msk.f32.mxu1 %vm4934_vm4, %v14270_v25 }
 0x492   : > { %10226 = vmatmul.mubr.msk.f32.gmra.mrb[86].mxu1 %vm4934_vm4, %v14278_v48 }
 0x493   : > { %10228 = vmatprep.mubr.msk.f32.mxu1 %vm4934_vm4, %v14283_v50 }
 0x496   : > { %10229 = vmatmul.mubr.msk.f32.gmra.mrb[88].mxu1 %vm4934_vm4, %v14288_v12 }
 0x497   : > { %10235 = vmatprep.mubr.msk.f32.mxu1 %vm4934_vm4, %v13576_v30  ;;  %v4664_v30 = vadd.f32 %v13985_v27, %v13560_v28  ;;  %v15562_v28 = vld [vmem:[#allocation32_spill] sm:$0xff] }
 0x49a   : > { %10236 = vmatmul.mubr.msk.f32.vlgmr.msra.gmra.mrb[58].mxu1 %vm4934_vm4, %v13579_v60  ;;  %v4718_v60 = vmax.f32 %v4664_v30, 0.0  ;;  %v15559_v30 = vld [vmem:[#allocation73_spill] sm:$0xff] }
 0x49b   : > { %10562 = vmatpush3.bf16.msra.mxu1 %v14094_v42  ;;  %10238 = vmatprep.mubr.msk.f32.mxu1 %vm4934_vm4, %v13606_v51  ;;  %v11298_v42 = vld [vmem:[%s14890_s2] ss:$0 sm:$0xff] }
 0x49c   : > { %10564 = vmatprep.subr.bf16.mxu1 %v10563_v1  ;;  %v4665_v39 = vadd.f32 %v11298_v42, %v13980_v54  ;;  %v14367_v27 = vsel %vm4728_vm5, %v4718_v60, 0.0  ;;  %v8420_v54 = vld [vmem:[%s14891_s3 + $0x68] sm:$0xff]  ;;  %v15560_v60 = vld [vmem:[#allocation74_spill] sm:$0xff] }
 0x49d   : > { %v10567_v33 = vpack.c.bf16 %v8420_v54, %v8419_v63  ;;  %v15564_v63 = vld [vmem:[#allocation36_spill] sm:$0xff]  ;;  %v15566_v54 = vld [vmem:[#allocation38_spill] sm:$0xff] }
 0x49e   : > { %10239 = vmatmul.mubr.msk.f32.gmra.mrb[60].mxu1 %vm4934_vm4, %v13591_v14  ;;  %v14371_v24 = vmax.f32 %v4665_v39, 0.0  ;;  %v15561_v39 = vld [vmem:[#allocation75_spill] sm:$0xff] }
 0x49f   : > { %10241 = vmatprep.mubr.msk.f32.mxu1 %vm4934_vm4, %v13628_v7 }
 0x4a2   : > { %10242 = vmatmul.mubr.msk.f32.gmra.mrb[62].mxu1 %vm4934_vm4, %v13632_v22 }
 0x4a3   : > { %10244 = vmatprep.mubr.msk.f32.mxu1 %vm4934_vm4, %v13664_v20 }
 0x4a6   : > { %10245 = vmatmul.mubr.msk.f32.gmra.mrb[64].mxu1 %vm4934_vm4, %v13649_v29 }
 0x4a7   : > { %10247 = vmatprep.mubr.msk.f32.mxu1 %vm4934_vm4, %v13686_v44 }
 0x4aa   : > { %10248 = vmatmul.mubr.msk.f32.gmra.mrb[66].mxu1 %vm4934_vm4, %v13690_v31 }
 0x4ab   : > { %10250 = vmatprep.mubr.msk.f32.mxu1 %vm4934_vm4, %v13722_v6 }
 0x4ae   : > { %10251 = vmatmul.mubr.msk.f32.gmra.mrb[68].mxu1 %vm4934_vm4, %v13707_v46 }
 0x4af   : > { %10253 = vmatprep.mubr.msk.f32.mxu1 %vm4934_vm4, %v13744_v38 }
 0x4b2   : > { %10254 = vmatmul.mubr.msk.f32.gmra.mrb[70].mxu1 %vm4934_vm4, %v13748_v0 }
 0x4b3   : > { %10256 = vmatprep.mubr.msk.f32.mxu1 %vm4934_vm4, %v13780_v56 }
 0x4b6   : > { %10257 = vmatmul.mubr.msk.f32.gmra.mrb[72].mxu1 %vm4934_vm4, %v13765_v3 }
 0x4b7   : > { %10259 = vmatprep.mubr.msk.f32.mxu1 %vm4934_vm4, %v13802_v36 }
 0x4ba   : > { %10260 = vmatmul.mubr.msk.f32.gmra.mrb[74].mxu1 %vm4934_vm4, %v13806_v61 }
 0x4bb   : > { %10262 = vmatprep.mubr.msk.f32.mxu1 %vm4934_vm4, %v13838_v37 }
 0x4be   : > { %10263 = vmatmul.mubr.msk.f32.gmra.mrb[76].mxu1 %vm4934_vm4, %v13823_v47 }
 0x4bf   : > { %10265 = vmatprep.mubr.msk.f32.mxu1 %vm4934_vm4, %v13860_v13 }
 0x4c2   : > { %10266 = vmatmul.mubr.msk.f32.gmra.mrb[78].mxu1 %vm4934_vm4, %v13864_v9 }
 0x4c3   : > { %10268 = vmatprep.mubr.msk.f32.mxu1 %vm4934_vm4, %v13896_v10 }
 0x4c6   : > { %10269 = vmatmul.mubr.msk.f32.gmra.mrb[80].mxu1 %vm4934_vm4, %v13881_v34 }
 0x4c7   : > { %10271 = vmatprep.mubr.msk.f32.mxu1 %vm4934_vm4, %v13918_v18 }
 0x4ca   : > { %10272 = vmatmul.mubr.msk.f32.gmra.mrb[82].mxu1 %vm4934_vm4, %v13922_v23 }
 0x4cb   : > { %10274 = vmatprep.mubr.msk.f32.mxu1 %vm4934_vm4, %v13954_v58 }
 0x4ce   : > { %10275 = vmatmul.mubr.msk.f32.gmra.mrb[84].mxu1 %vm4934_vm4, %v13939_v55 }
 0x4cf   : > { %10277 = vmatprep.mubr.msk.f32.mxu1 %vm4934_vm4, %v13976_v53 }
 0x4d2   : > { %10278 = vmatmul.mubr.msk.f32.gmra.mrb[86].mxu1 %vm4934_vm4, %v13982_v2  ;;  %v15563_v2 = vld [vmem:[#allocation33_spill] sm:$0xff] }
 0x4d3   : > { %10280 = vmatprep.mubr.msk.f32.mxu1 %vm4934_vm4, %v14367_v27 }
 0x4d6   : > { %10281 = vmatmul.mubr.msk.f32.gmra.mrb[88].mxu1 %vm4934_vm4, %v14371_v24 }
 0x4d7   : > { %10287 = vmatprep.mubr.msk.f32.mxu1 %vm4934_vm4, %v15557_v35  ;;  %v15567_v35 = vld [vmem:[#allocation41_spill] sm:$0xff] }
 0x4da   : > { %10288 = vmatmul.mubr.msk.f32.vlgmr.msra.gmra.mrb[58].mxu1 %vm4934_vm4, %v15558_v43  ;;  %v15568_v43 = vld [vmem:[#allocation42_spill] sm:$0xff] }
 0x4db   : > { %10566 = vmatpush3.bf16.msra.mxu1 %v10563_v1  ;;  %10290 = vmatprep.mubr.msk.f32.mxu1 %vm4934_vm4, %v15559_v30  ;;  %v15565_v1 = vld [vmem:[#allocation37_spill] sm:$0xff] }
 0x4dc   : > { %10568 = vmatprep.subr.bf16.mxu1 %v10567_v33 }
 0x4de   : > { %10291 = vmatmul.mubr.msk.f32.gmra.mrb[60].mxu1 %vm4934_vm4, %v15560_v60  ;;  %v15582_v60 = vld [vmem:[#allocation13_spill] sm:$0xff] }
 0x4df   : > { %10293 = vmatprep.mubr.msk.f32.mxu1 %vm4934_vm4, %v15561_v39  ;;  %v15569_v39 = vld [vmem:[#allocation43_spill] sm:$0xff] }
 0x4e2   : > { %10294 = vmatmul.mubr.msk.f32.gmra.mrb[62].mxu1 %vm4934_vm4, %v15562_v28  ;;  %v15570_v28 = vld [vmem:[#allocation48_spill] sm:$0xff] }
 0x4e3   : > { %10296 = vmatprep.mubr.msk.f32.mxu1 %vm4934_vm4, %v15563_v2  ;;  %v15571_v2 = vld [vmem:[#allocation51_spill] sm:$0xff] }
 0x4e6   : > { %10297 = vmatmul.mubr.msk.f32.gmra.mrb[64].mxu1 %vm4934_vm4, %v15564_v63  ;;  %v15572_v63 = vld [vmem:[#allocation56_spill] sm:$0xff] }
 0x4e7   : > { %10299 = vmatprep.mubr.msk.f32.mxu1 %vm4934_vm4, %v15565_v1  ;;  %v15573_v1 = vld [vmem:[#allocation59_spill] sm:$0xff] }
 0x4ea   : > { %10300 = vmatmul.mubr.msk.f32.gmra.mrb[66].mxu1 %vm4934_vm4, %v15566_v54  ;;  %v15574_v54 = vld [vmem:[#allocation76_spill] sm:$0xff] }
 0x4eb   : > { %10302 = vmatprep.mubr.msk.f32.mxu1 %vm4934_vm4, %v15567_v35  ;;  %v15575_v35 = vld [vmem:[#allocation81_spill] sm:$0xff] }
 0x4ee   : > { %10303 = vmatmul.mubr.msk.f32.gmra.mrb[68].mxu1 %vm4934_vm4, %v15568_v43  ;;  %v15576_v43 = vld [vmem:[#allocation82_spill] sm:$0xff] }
 0x4ef   : > { %10305 = vmatprep.mubr.msk.f32.mxu1 %vm4934_vm4, %v15569_v39  ;;  %v15577_v39 = vld [vmem:[#allocation85_spill] sm:$0xff] }
 0x4f2   : > { %10306 = vmatmul.mubr.msk.f32.gmra.mrb[70].mxu1 %vm4934_vm4, %v15570_v28  ;;  %v15578_v28 = vld [vmem:[#allocation9_spill] sm:$0xff] }
 0x4f3   : > { %10308 = vmatprep.mubr.msk.f32.mxu1 %vm4934_vm4, %v15571_v2  ;;  %v15579_v2 = vld [vmem:[#allocation10_spill] sm:$0xff] }
 0x4f6   : > { %10309 = vmatmul.mubr.msk.f32.gmra.mrb[72].mxu1 %vm4934_vm4, %v15572_v63  ;;  %v15580_v63 = vld [vmem:[#allocation11_spill] sm:$0xff] }
 0x4f7   : > { %10311 = vmatprep.mubr.msk.f32.mxu1 %vm4934_vm4, %v15573_v1  ;;  %v4666_v1 = vadd.f32 %v11298_v42, %v14000_v21  ;;  %v6186_v21 = vrot.slane %v14371_v24, 1 }
 0x4fa   : > { %10312 = vmatmul.mubr.msk.f32.gmra.mrb[74].mxu1 %vm4934_vm4, %v15574_v54  ;;  %v15581_v54 = vld [vmem:[#allocation12_spill] sm:$0xff] }
 0x4fb   : > { %10314 = vmatprep.mubr.msk.f32.mxu1 %vm4934_vm4, %v15575_v35  ;;  %v4720_v35 = vmax.f32 %v4666_v1, 0.0 }
 0x4fe   : > { %10315 = vmatmul.mubr.msk.f32.gmra.mrb[76].mxu1 %vm4934_vm4, %v15576_v43  ;;  %v15583_v43 = vld [vmem:[#allocation14_spill] sm:$0xff] }
 0x4ff   : > { %10317 = vmatprep.mubr.msk.f32.mxu1 %vm4934_vm4, %v15577_v39 }
 0x502   : > { %10318 = vmatmul.mubr.msk.f32.gmra.mrb[78].mxu1 %vm4934_vm4, %v15578_v28  ;;  %v4796_v28 = vsel %vm4739_vm6, %v4720_v35, 0.0  ;;  %v8451_v35 = vld [vmem:[%s14891_s3 + $0x70] sm:$0xff] }
 0x503   : > { %10320 = vmatprep.mubr.msk.f32.mxu1 %vm4934_vm4, %v15579_v2  ;;  %v6185_v2 = vrot.slane %v14367_v27, 1  ;;  %v6188_v42 = vrot.slane %v4796_v28, 1 }
 0x505   : > { %v14447_v1 = vsel %vm4850_vm7, %v6185_v2, %v6186_v21  ;;  %v14452_v8 = vsel %vm4850_vm7, %v6186_v21, %v6188_v42  ;;  %v15585_v21 = vld [vmem:[#allocation18_spill] sm:$0xff]  ;;  %v15586_v42 = vld [vmem:[#allocation19_spill] sm:$0xff] }
 0x506   : > { %10321 = vmatmul.mubr.msk.f32.gmra.mrb[80].mxu1 %vm4934_vm4, %v15580_v63  ;;  %15584 = vst [vmem:[#allocation35_spill] sm:$0xff] %v14452_v8 }
 0x507   : > { %10323 = vmatprep.mubr.msk.f32.mxu1 %vm4934_vm4, %v15581_v54 }
 0x50a   : > { %10324 = vmatmul.mubr.msk.f32.gmra.mrb[82].mxu1 %vm4934_vm4, %v15582_v60 }
 0x50b   : > { %10326 = vmatprep.mubr.msk.f32.mxu1 %vm4934_vm4, %v15583_v43 }
 0x50e   : > { %10327 = vmatmul.mubr.msk.f32.gmra.mrb[84].mxu1 %vm4934_vm4, %v13992_v16 }
 0x50f   : > { %10329 = vmatprep.mubr.msk.f32.mxu1 %vm4934_vm4, %v14003_v11  ;;  %v8452_v11 = vld [vmem:[%s14891_s3 + $0x78] sm:$0xff] }
 0x510   : > { %v10571_v2 = vpack.c.bf16 %v8452_v11, %v8451_v35  ;;  %v15588_v11 = vld [vmem:[#allocation21_spill] sm:$0xff] }
 0x511   : > { %v15592_v35 = vld [vmem:[#allocation25_spill] sm:$0xff] }
 0x512   : > { %10330 = vmatmul.mubr.msk.f32.gmra.mrb[86].mxu1 %vm4934_vm4, %v14006_v19 }
 0x513   : > { %10332 = vmatprep.mubr.msk.f32.mxu1 %vm4934_vm4, %v14447_v1 }
 0x516   : > { %10333 = vmatmul.mubr.msk.f32.gmra.mrb[88].mxu1 %vm4934_vm4, %v14452_v8  ;;  %v15587_v8 = vld [vmem:[#allocation20_spill] sm:$0xff] }
 0x517   : > { %10339 = vmatprep.mubr.msk.f32.mxu1 %vm4934_vm4, %v14100_v17  ;;  %v15589_v17 = vld [vmem:[#allocation22_spill] sm:$0xff] }
 0x51a   : > { %10340 = vmatmul.mubr.msk.f32.vlgmr.msra.gmra.mrb[58].mxu1 %vm4934_vm4, %v14109_v57  ;;  %v15590_v57 = vld [vmem:[#allocation23_spill] sm:$0xff] }
 0x51b   : > { %10570 = vmatpush3.bf16.msra.mxu1 %v10567_v33  ;;  %10342 = vmatprep.mubr.msk.f32.mxu1 %vm4934_vm4, %v15585_v21  ;;  %v15591_v33 = vld [vmem:[#allocation24_spill] sm:$0xff] }
 0x51c   : > { %10572 = vmatprep.subr.bf16.mxu1 %v10571_v2 }
 0x51e   : > { %10343 = vmatmul.mubr.msk.f32.gmra.mrb[60].mxu1 %vm4934_vm4, %v14122_v45 }
 0x51f   : > { %10345 = vmatprep.mubr.msk.f32.mxu1 %vm4934_vm4, %v15586_v42 }
 0x522   : > { %10346 = vmatmul.mubr.msk.f32.gmra.mrb[62].mxu1 %vm4934_vm4, %v14135_v4 }
 0x523   : > { %10348 = vmatprep.mubr.msk.f32.mxu1 %vm4934_vm4, %v15587_v8 }
 0x526   : > { %10349 = vmatmul.mubr.msk.f32.gmra.mrb[64].mxu1 %vm4934_vm4, %v14148_v40 }
 0x527   : > { %10351 = vmatprep.mubr.msk.f32.mxu1 %vm4934_vm4, %v15588_v11 }
 0x52a   : > { %10352 = vmatmul.mubr.msk.f32.gmra.mrb[66].mxu1 %vm4934_vm4, %v14161_v59 }
 0x52b   : > { %10354 = vmatprep.mubr.msk.f32.mxu1 %vm4934_vm4, %v15589_v17  ;;  %v15593_v17 = vld [vmem:[#allocation26_spill] sm:$0xff] }
 0x52e   : > { %10355 = vmatmul.mubr.msk.f32.gmra.mrb[68].mxu1 %vm4934_vm4, %v14174_v62 }
 0x52f   : > { %10357 = vmatprep.mubr.msk.f32.mxu1 %vm4934_vm4, %v15590_v57  ;;  %v15594_v57 = vld [vmem:[#allocation27_spill] sm:$0xff] }
 0x532   : > { %10358 = vmatmul.mubr.msk.f32.gmra.mrb[70].mxu1 %vm4934_vm4, %v14187_v41 }
 0x533   : > { %10360 = vmatprep.mubr.msk.f32.mxu1 %vm4934_vm4, %v15591_v33  ;;  %v15595_v33 = vld [vmem:[#allocation28_spill] sm:$0xff] }
 0x536   : > { %10361 = vmatmul.mubr.msk.f32.gmra.mrb[72].mxu1 %vm4934_vm4, %v14200_v52 }
 0x537   : > { %10363 = vmatprep.mubr.msk.f32.mxu1 %vm4934_vm4, %v15592_v35  ;;  %v15596_v35 = vld [vmem:[#allocation30_spill] sm:$0xff] }
 0x53a   : > { %10364 = vmatmul.mubr.msk.f32.gmra.mrb[74].mxu1 %vm4934_vm4, %v14213_v26 }
 0x53b   : > { %10366 = vmatprep.mubr.msk.f32.mxu1 %vm4934_vm4, %v15593_v17 }
 0x53e   : > { %10367 = vmatmul.mubr.msk.f32.gmra.mrb[76].mxu1 %vm4934_vm4, %v14226_v49 }
 0x53f   : > { %10369 = vmatprep.mubr.msk.f32.mxu1 %vm4934_vm4, %v15594_v57  ;;  %v6454_v57 = vrot.slane %v14367_v27, 2 }
 0x542   : > { %10370 = vmatmul.mubr.msk.f32.gmra.mrb[78].mxu1 %vm4934_vm4, %v14239_v5 }
 0x543   : > { %10372 = vmatprep.mubr.msk.f32.mxu1 %vm4934_vm4, %v15595_v33  ;;  %v6455_v33 = vrot.slane %v14371_v24, 2 }
 0x546   : > { %10373 = vmatmul.mubr.msk.f32.gmra.mrb[80].mxu1 %vm4934_vm4, %v14252_v15  ;;  %v6457_v15 = vrot.slane %v4796_v28, 2  ;;  %v8486_v28 = vld [vmem:[%s14891_s3 + $0x88] sm:$0xff] }
 0x547   : > { %10375 = vmatprep.mubr.msk.f32.mxu1 %vm4934_vm4, %v15596_v35  ;;  %v14525_v35 = vsel %vm5513_vm8, %v6454_v57, %v6455_v33 }
 0x54a   : > { %10376 = vmatmul.mubr.msk.f32.gmra.mrb[82].mxu1 %vm4934_vm4, %v14265_v32 }
 0x54b   : > { %10378 = vmatprep.mubr.msk.f32.mxu1 %vm4934_vm4, %v14270_v25  ;;  %v14530_v25 = vsel %vm5513_vm8, %v6455_v33, %v6457_v15 }
 0x54e   : > { %10379 = vmatmul.mubr.msk.f32.gmra.mrb[84].mxu1 %vm4934_vm4, %v14278_v48  ;;  %v8485_v48 = vld [vmem:[%s14891_s3 + $0x80] sm:$0xff] }
 0x54f   : > { %10381 = vmatprep.mubr.msk.f32.mxu1 %vm4934_vm4, %v14283_v50  ;;  %v10575_v57 = vpack.c.bf16 %v8486_v28, %v8485_v48 }
 0x552   : > { %10382 = vmatmul.mubr.msk.f32.gmra.mrb[86].mxu1 %vm4934_vm4, %v14288_v12 }
 0x553   : > { %10384 = vmatprep.mubr.msk.f32.mxu1 %vm4934_vm4, %v14525_v35 }
 0x556   : > { %10385 = vmatmul.mubr.msk.f32.gmra.mrb[88].mxu1 %vm4934_vm4, %v14530_v25 }
 0x557   : > { %10391 = vmatprep.mubr.msk.f32.mxu1 %vm4934_vm4, %v13606_v51  ;;  %v15598_v51 = vmov 0.0  }
 0x55a   : > { %10392 = vmatmul.mubr.msk.f32.vlgmr.msra.gmra.mrb[58].mxu1 %vm4934_vm4, %v13591_v14  ;;  %v15597_v14 = vld [vmem:[#allocation15_spill] sm:$0xff] }
 0x55b   : > { %10574 = vmatpush3.bf16.msra.mxu1 %v10571_v2  ;;  %10394 = vmatprep.mubr.msk.f32.mxu1 %vm4934_vm4, %v13628_v7  ;;  %v15599_v7 = vld [vmem:[#allocation74_spill] sm:$0xff] }
 0x55c   : > { %10576 = vmatprep.subr.bf16.mxu1 %v10575_v57 }
 0x55e   : > { %10395 = vmatmul.mubr.msk.f32.gmra.mrb[60].mxu1 %vm4934_vm4, %v13632_v22  ;;  %v15600_v22 = vld [vmem:[#allocation75_spill] sm:$0xff] }
 0x55f   : > { %10397 = vmatprep.mubr.msk.f32.mxu1 %vm4934_vm4, %v13664_v20  ;;  %v15602_v20 = vld [vmem:[#allocation33_spill] sm:$0xff] }
 0x562   : > { %10398 = vmatmul.mubr.msk.f32.gmra.mrb[62].mxu1 %vm4934_vm4, %v13649_v29  ;;  %v15601_v29 = vld [vmem:[#allocation32_spill] sm:$0xff] }
 0x563   : > { %10400 = vmatprep.mubr.msk.f32.mxu1 %vm4934_vm4, %v13686_v44  ;;  %v15603_v44 = vld [vmem:[#allocation36_spill] sm:$0xff] }
 0x566   : > { %10401 = vmatmul.mubr.msk.f32.gmra.mrb[64].mxu1 %vm4934_vm4, %v13690_v31  ;;  %v15604_v31 = vld [vmem:[#allocation37_spill] sm:$0xff] }
 0x567   : > { %10403 = vmatprep.mubr.msk.f32.mxu1 %vm4934_vm4, %v13722_v6  ;;  %v15606_v6 = vld [vmem:[#allocation41_spill] sm:$0xff] }
 0x56a   : > { %10404 = vmatmul.mubr.msk.f32.gmra.mrb[66].mxu1 %vm4934_vm4, %v13707_v46  ;;  %v15605_v46 = vld [vmem:[#allocation38_spill] sm:$0xff] }
 0x56b   : > { %10406 = vmatprep.mubr.msk.f32.mxu1 %vm4934_vm4, %v13744_v38  ;;  %v15607_v38 = vld [vmem:[#allocation42_spill] sm:$0xff] }
 0x56e   : > { %10407 = vmatmul.mubr.msk.f32.gmra.mrb[68].mxu1 %vm4934_vm4, %v13748_v0  ;;  %v15608_v0 = vld [vmem:[#allocation43_spill] sm:$0xff] }
 0x56f   : > { %10409 = vmatprep.mubr.msk.f32.mxu1 %vm4934_vm4, %v13780_v56  ;;  %v15610_v56 = vld [vmem:[#allocation51_spill] sm:$0xff] }
 0x572   : > { %10410 = vmatmul.mubr.msk.f32.gmra.mrb[70].mxu1 %vm4934_vm4, %v13765_v3  ;;  %v15609_v3 = vld [vmem:[#allocation48_spill] sm:$0xff] }
 0x573   : > { %10412 = vmatprep.mubr.msk.f32.mxu1 %vm4934_vm4, %v13802_v36  ;;  %v15611_v36 = vld [vmem:[#allocation56_spill] sm:$0xff] }
 0x576   : > { %10413 = vmatmul.mubr.msk.f32.gmra.mrb[72].mxu1 %vm4934_vm4, %v13806_v61  ;;  %v15612_v61 = vld [vmem:[#allocation59_spill] sm:$0xff] }
 0x577   : > { %10415 = vmatprep.mubr.msk.f32.mxu1 %vm4934_vm4, %v13838_v37  ;;  %v15615_v37 = vld [vmem:[#allocation82_spill] sm:$0xff] }
 0x57a   : > { %10416 = vmatmul.mubr.msk.f32.gmra.mrb[74].mxu1 %vm4934_vm4, %v13823_v47  ;;  %v15613_v47 = vld [vmem:[#allocation76_spill] sm:$0xff] }
 0x57b   : > { %10418 = vmatprep.mubr.msk.f32.mxu1 %vm4934_vm4, %v13860_v13  ;;  %v15616_v13 = vld [vmem:[#allocation9_spill] sm:$0xff] }
 0x57e   : > { %10419 = vmatmul.mubr.msk.f32.gmra.mrb[76].mxu1 %vm4934_vm4, %v13864_v9  ;;  %v15614_v9 = vld [vmem:[#allocation81_spill] sm:$0xff] }
 0x57f   : > { %10421 = vmatprep.mubr.msk.f32.mxu1 %vm4934_vm4, %v13896_v10  ;;  %v15619_v10 = vld [vmem:[#allocation35_spill] sm:$0xff] }
 0x582   : > { %10422 = vmatmul.mubr.msk.f32.gmra.mrb[78].mxu1 %vm4934_vm4, %v13881_v34  ;;  %v15617_v34 = vld [vmem:[#allocation10_spill] sm:$0xff] }
 0x583   : > { %10424 = vmatprep.mubr.msk.f32.mxu1 %vm4934_vm4, %v13918_v18  ;;  %v15620_v18 = vld [vmem:[#allocation69_spill] sm:$0xff] }
 0x586   : > { %10425 = vmatmul.mubr.msk.f32.gmra.mrb[80].mxu1 %vm4934_vm4, %v13922_v23  ;;  %v15618_v23 = vld [vmem:[#allocation16_spill] sm:$0xff] }
 0x587   : > { %10427 = vmatprep.mubr.msk.f32.mxu1 %vm4934_vm4, %v13954_v58  ;;  %v15623_v58 = vld [vmem:[#allocation24_spill] sm:$0xff] }
 0x58a   : > { %10428 = vmatmul.mubr.msk.f32.gmra.mrb[82].mxu1 %vm4934_vm4, %v13939_v55  ;;  %v15622_v55 = vld [vmem:[#allocation23_spill] sm:$0xff] }
 0x58b   : > { %10430 = vmatprep.mubr.msk.f32.mxu1 %vm4934_vm4, %v13976_v53  ;;  %v15624_v53 = vld [vmem:[#allocation25_spill] sm:$0xff] }
 0x58e   : > { %10431 = vmatmul.mubr.msk.f32.gmra.mrb[84].mxu1 %vm4934_vm4, %v15597_v14 }
 0x58f   : > { %10433 = vmatprep.mubr.msk.f32.mxu1 %vm4934_vm4, %v14367_v27 }
 0x592   : > { %10434 = vmatmul.mubr.msk.f32.gmra.mrb[86].mxu1 %vm4934_vm4, %v14371_v24 }
 0x593   : > { %10436 = vmatprep.mubr.f32.mxu1 %v15598_v51 }
 0x596   : > { %10437 = vmatmul.mubr.f32.gmra.mrb[88].mxu1 %v15598_v51 }
 0x597   : > { %10443 = vmatprep.mubr.msk.f32.mxu1 %vm4934_vm4, %v15559_v30 }
 0x59a   : > { %10444 = vmatmul.mubr.msk.f32.vlgmr.msra.gmra.mrb[58].mxu1 %vm4934_vm4, %v15599_v7 }
 0x59b   : > { %10578 = vmatpush3.bf16.msra.mxu1 %v10575_v57  ;;  %10446 = vmatprep.mubr.msk.f32.mxu1 %vm4934_vm4, %v15600_v22 }
 0x59e   : > { %10447 = vmatmul.mubr.msk.f32.gmra.mrb[60].mxu1 %vm4934_vm4, %v15601_v29 }
 0x59f   : > { %10449 = vmatprep.mubr.msk.f32.mxu1 %vm4934_vm4, %v15602_v20 }
 0x5a2   : > { %10450 = vmatmul.mubr.msk.f32.gmra.mrb[62].mxu1 %vm4934_vm4, %v15603_v44 }
 0x5a3   : > { %10452 = vmatprep.mubr.msk.f32.mxu1 %vm4934_vm4, %v15604_v31 }
 0x5a6   : > { %10453 = vmatmul.mubr.msk.f32.gmra.mrb[64].mxu1 %vm4934_vm4, %v15605_v46 }
 0x5a7   : > { %10455 = vmatprep.mubr.msk.f32.mxu1 %vm4934_vm4, %v15606_v6 }
 0x5aa   : > { %10456 = vmatmul.mubr.msk.f32.gmra.mrb[66].mxu1 %vm4934_vm4, %v15607_v38 }
 0x5ab   : > { %10458 = vmatprep.mubr.msk.f32.mxu1 %vm4934_vm4, %v15608_v0 }
 0x5ae   : > { %10459 = vmatmul.mubr.msk.f32.gmra.mrb[68].mxu1 %vm4934_vm4, %v15609_v3 }
 0x5af   : > { %10461 = vmatprep.mubr.msk.f32.mxu1 %vm4934_vm4, %v15610_v56 }
 0x5b2   : > { %10462 = vmatmul.mubr.msk.f32.gmra.mrb[70].mxu1 %vm4934_vm4, %v15611_v36 }
 0x5b3   : > { %10464 = vmatprep.mubr.msk.f32.mxu1 %vm4934_vm4, %v15612_v61 }
 0x5b6   : > { %10465 = vmatmul.mubr.msk.f32.gmra.mrb[72].mxu1 %vm4934_vm4, %v15613_v47 }
 0x5b7   : > { %10467 = vmatprep.mubr.msk.f32.mxu1 %vm4934_vm4, %v15614_v9 }
 0x5ba   : > { %10468 = vmatmul.mubr.msk.f32.gmra.mrb[74].mxu1 %vm4934_vm4, %v15615_v37 }
 0x5bb   : > { %10470 = vmatprep.mubr.msk.f32.mxu1 %vm4934_vm4, %v15577_v39 }
 0x5be   : > { %10471 = vmatmul.mubr.msk.f32.gmra.mrb[76].mxu1 %vm4934_vm4, %v15616_v13 }
 0x5bf   : > { %10473 = vmatprep.mubr.msk.f32.mxu1 %vm4934_vm4, %v15617_v34 }
 0x5c2   : > { %10474 = vmatmul.mubr.msk.f32.gmra.mrb[78].mxu1 %vm4934_vm4, %v15580_v63 }
 0x5c3   : > { %10476 = vmatprep.mubr.msk.f32.mxu1 %vm4934_vm4, %v15581_v54 }
 0x5c6   : > { %10477 = vmatmul.mubr.msk.f32.gmra.mrb[80].mxu1 %vm4934_vm4, %v15582_v60 }
 0x5c7   : > { %10479 = vmatprep.mubr.msk.f32.mxu1 %vm4934_vm4, %v15583_v43 }
 0x5ca   : > { %10480 = vmatmul.mubr.msk.f32.gmra.mrb[82].mxu1 %vm4934_vm4, %v13992_v16  ;;  %v15621_v16 = vld [vmem:[#allocation22_spill] sm:$0xff] }
 0x5cb   : > { %10482 = vmatprep.mubr.msk.f32.mxu1 %vm4934_vm4, %v15618_v23 }
 0x5ce   : > { %10483 = vmatmul.mubr.msk.f32.gmra.mrb[84].mxu1 %vm4934_vm4, %v14006_v19  ;;  %v15625_v19 = vld [vmem:[#allocation27_spill] sm:$0xff] }
 0x5cf   : > { %10485 = vmatprep.mubr.msk.f32.mxu1 %vm4934_vm4, %v14447_v1 }
 0x5d2   : > { %10486 = vmatmul.mubr.msk.f32.gmra.mrb[86].mxu1 %vm4934_vm4, %v15619_v10 }
 0x5d3   : > { %10488 = vmatprep.mubr.msk.f32.mxu1 %vm4934_vm4, %v15620_v18 }
 0x5d6   : > { %10489 = vmatmul.mubr.msk.f32.gmra.mrb[88].mxu1 %vm4934_vm4, %v15620_v18 }
 0x5d7   : > { %10495 = vmatprep.mubr.msk.f32.mxu1 %vm4934_vm4, %v15585_v21 }
 0x5da   : > { %10496 = vmatmul.mubr.msk.f32.vlgmr.msra.gmra.mrb[58].mxu1 %vm4934_vm4, %v14122_v45  ;;  %v15626_v45 = vld [vmem:[#allocation28_spill] sm:$0xff] }
 0x5db   : > { %10498 = vmatprep.mubr.msk.f32.mxu1 %vm4934_vm4, %v15586_v42 }
 0x5de   : > { %10499 = vmatmul.mubr.msk.f32.gmra.mrb[60].mxu1 %vm4934_vm4, %v14135_v4  ;;  %v15627_v4 = vld [vmem:[#allocation29_spill] sm:$0xff] }
 0x5df   : > { %10501 = vmatprep.mubr.msk.f32.mxu1 %vm4934_vm4, %v15587_v8 }
 0x5e2   : > { %10502 = vmatmul.mubr.msk.f32.gmra.mrb[62].mxu1 %vm4934_vm4, %v14148_v40  ;;  %v15628_v40 = vld [vmem:[#allocation30_spill] sm:$0xff] }
 0x5e3   : > { %10504 = vmatprep.mubr.msk.f32.mxu1 %vm4934_vm4, %v15588_v11 }
 0x5e6   : > { %10505 = vmatmul.mubr.msk.f32.gmra.mrb[64].mxu1 %vm4934_vm4, %v14161_v59  ;;  %v15629_v59 = vld [vmem:[#allocation31_spill] sm:$0xff] }
 0x5e7   : > { %10507 = vmatprep.mubr.msk.f32.mxu1 %vm4934_vm4, %v15621_v16 }
 0x5ea   : > { %10508 = vmatmul.mubr.msk.f32.gmra.mrb[66].mxu1 %vm4934_vm4, %v14174_v62  ;;  %v15630_v62 = vld [vmem:[#allocation34_spill] sm:$0xff] }
 0x5eb   : > { %10510 = vmatprep.mubr.msk.f32.mxu1 %vm4934_vm4, %v15622_v55 }
 0x5ee   : > { %10511 = vmatmul.mubr.msk.f32.gmra.mrb[68].mxu1 %vm4934_vm4, %v14187_v41  ;;  %v15631_v41 = vld [vmem:[#allocation17_spill] sm:$0xff] }
 0x5ef   : > { %10513 = vmatprep.mubr.msk.f32.mxu1 %vm4934_vm4, %v15623_v58 }
 0x5f2   : > { %10514 = vmatmul.mubr.msk.f32.gmra.mrb[70].mxu1 %vm4934_vm4, %v14200_v52  ;;  %v14734_v52 = vld [vmem:[%s14892_s4] ss:$0 sm:$0xff] }
 0x5f3   : > { %10516 = vmatprep.mubr.msk.f32.mxu1 %vm4934_vm4, %v15624_v53 }
 0x5f6   : > { %10517 = vmatmul.mubr.msk.f32.gmra.mrb[72].mxu1 %vm4934_vm4, %v14213_v26 }
 0x5f7   : > { %10519 = vmatprep.mubr.msk.f32.mxu1 %vm4934_vm4, %v15593_v17 }
 0x5fa   : > { %10520 = vmatmul.mubr.msk.f32.gmra.mrb[74].mxu1 %vm4934_vm4, %v14226_v49 }
 0x5fb   : > { %10522 = vmatprep.mubr.msk.f32.mxu1 %vm4934_vm4, %v15625_v19 }
 0x5fe   : > { %10523 = vmatmul.mubr.msk.f32.gmra.mrb[76].mxu1 %vm4934_vm4, %v14239_v5 }
 0x5ff   : > { %10525 = vmatprep.mubr.msk.f32.mxu1 %vm4934_vm4, %v15626_v45 }
 0x602   : > { %10526 = vmatmul.mubr.msk.f32.gmra.mrb[78].mxu1 %vm4934_vm4, %v15627_v4 }
 0x603   : > { %10528 = vmatprep.mubr.msk.f32.mxu1 %vm4934_vm4, %v15628_v40 }
 0x606   : > { %10529 = vmatmul.mubr.msk.f32.gmra.mrb[80].mxu1 %vm4934_vm4, %v14265_v32 }
 0x607   : > { %10531 = vmatprep.mubr.msk.f32.mxu1 %vm4934_vm4, %v15629_v59 }
 0x60a   : > { %10532 = vmatmul.mubr.msk.f32.gmra.mrb[82].mxu1 %vm4934_vm4, %v15630_v62 }
 0x60b   : > { %10534 = vmatprep.mubr.msk.f32.mxu1 %vm4934_vm4, %v14283_v50 }
 0x60e   : > { %10535 = vmatmul.mubr.msk.f32.gmra.mrb[84].mxu1 %vm4934_vm4, %v14288_v12 }
 0x60f   : > { %10537 = vmatprep.mubr.msk.f32.mxu1 %vm4934_vm4, %v14525_v35 }
 0x612   : > { %10538 = vmatmul.mubr.msk.f32.gmra.mrb[86].mxu1 %vm4934_vm4, %v14530_v25 }
 0x613   : > { %10540 = vmatprep.mubr.msk.f32.mxu1 %vm4934_vm4, %v15631_v41 }
 0x616   : > { %10541 = vmatmul.mubr.msk.f32.gmra.mrb[88].mxu1 %vm4934_vm4, %v15631_v41 }
 0x6ad   : > { %v10497_v26 = vpop.f32.mrb[58].mxu1 }
 0x6ae   : > { %v7536_v49 = vadd.f32 %v10497_v26, %v14734_v52  ;;  %v7337_v5 = vpop.f32.mrb[59].mxu1 }
 0x6af   : > { %v7535_v15 = vadd.f32 %v14734_v52, %v7337_v5 }
 0x6b0   : > { %v7568_v32 = vmax.f32 %v7536_v49, 0.0 }
 0x6b1   : > { %v7567_v25 = vmax.f32 %v7535_v15, 0.0  ;;  %v10500_v48 = vpop.f32.mrb[60].mxu1 }
 0x6b2   : > { %7601 = vst.msk [vmem:[%s14740_s8 + $0x8] sm:$0xff] %vm7599_vm9, %v7568_v32  ;;  %v7538_v50 = vadd.f32 %v10500_v48, %v14734_v52  ;;  %v7347_v12 = vpop.f32.mrb[61].mxu1 }
 0x6b3   : > { %7600 = vst.msk [vmem:[%s14740_s8] sm:$0xff] %vm7599_vm9, %v7567_v25  ;;  %v7537_v27 = vadd.f32 %v14734_v52, %v7347_v12 }
 0x6b4   : > { %v7570_v24 = vmax.f32 %v7538_v50, 0.0 }
 0x6b5   : > { %v7569_v30 = vmax.f32 %v7537_v27, 0.0  ;;  %v10503_v60 = vpop.f32.mrb[62].mxu1 }
 0x6b6   : > { %7603 = vst.msk [vmem:[%s14740_s8 + $0x18] sm:$0xff] %vm7599_vm9, %v7570_v24  ;;  %v7540_v39 = vadd.f32 %v10503_v60, %v14734_v52  ;;  %v7357_v63 = vpop.f32.mrb[63].mxu1 }
 0x6b7   : > { %7602 = vst.msk [vmem:[%s14740_s8 + $0x10] sm:$0xff] %vm7599_vm9, %v7569_v30  ;;  %v7539_v54 = vadd.f32 %v14734_v52, %v7357_v63 }
 0x6b8   : > { %v7572_v43 = vmax.f32 %v7540_v39, 0.0 }
 0x6b9   : > { %v7571_v1 = vmax.f32 %v7539_v54, 0.0  ;;  %v10506_v8 = vpop.f32.mrb[64].mxu1 }
 0x6ba   : > { %7605 = vst.msk [vmem:[%s14740_s8 + $0x28] sm:$0xff] %vm7599_vm9, %v7572_v43  ;;  %v7542_v2 = vadd.f32 %v10506_v8, %v14734_v52  ;;  %v7367_v21 = vpop.f32.mrb[65].mxu1 }
 0x6bb   : > { %7604 = vst.msk [vmem:[%s14740_s8 + $0x20] sm:$0xff] %vm7599_vm9, %v7571_v1  ;;  %v7541_v42 = vadd.f32 %v14734_v52, %v7367_v21 }
 0x6bc   : > { %v7574_v11 = vmax.f32 %v7542_v2, 0.0 }
 0x6bd   : > { %v7573_v17 = vmax.f32 %v7541_v42, 0.0  ;;  %v10509_v33 = vpop.f32.mrb[66].mxu1 }
 0x6be   : > { %7607 = vst.msk [vmem:[%s14740_s8 + $0x38] sm:$0xff] %vm7599_vm9, %v7574_v11  ;;  %v7544_v35 = vadd.f32 %v10509_v33, %v14734_v52  ;;  %v7377_v28 = vpop.f32.mrb[67].mxu1 }
 0x6bf   : > { %7606 = vst.msk [vmem:[%s14740_s8 + $0x30] sm:$0xff] %vm7599_vm9, %v7573_v17  ;;  %v7543_v57 = vadd.f32 %v14734_v52, %v7377_v28 }
 0x6c0   : > { %v7576_v14 = vmax.f32 %v7544_v35, 0.0 }
 0x6c1   : > { %v7575_v51 = vmax.f32 %v7543_v57, 0.0  ;;  %v10512_v7 = vpop.f32.mrb[68].mxu1 }
 0x6c2   : > { %7609 = vst.msk [vmem:[%s14740_s8 + $0x48] sm:$0xff] %vm7599_vm9, %v7576_v14  ;;  %v7546_v22 = vadd.f32 %v10512_v7, %v14734_v52  ;;  %v7387_v29 = vpop.f32.mrb[69].mxu1 }
 0x6c3   : > { %7608 = vst.msk [vmem:[%s14740_s8 + $0x40] sm:$0xff] %vm7599_vm9, %v7575_v51  ;;  %v7545_v20 = vadd.f32 %v14734_v52, %v7387_v29 }
 0x6c4   : > { %v7578_v44 = vmax.f32 %v7546_v22, 0.0 }
 0x6c5   : > { %v7577_v31 = vmax.f32 %v7545_v20, 0.0  ;;  %v10515_v46 = vpop.f32.mrb[70].mxu1 }
 0x6c6   : > { %7611 = vst.msk [vmem:[%s14740_s8 + $0x58] sm:$0xff] %vm7599_vm9, %v7578_v44  ;;  %v7548_v6 = vadd.f32 %v10515_v46, %v14734_v52  ;;  %v7397_v38 = vpop.f32.mrb[71].mxu1 }
 0x6c7   : > { %7610 = vst.msk [vmem:[%s14740_s8 + $0x50] sm:$0xff] %vm7599_vm9, %v7577_v31  ;;  %v7547_v0 = vadd.f32 %v14734_v52, %v7397_v38 }
 0x6c8   : > { %v7580_v3 = vmax.f32 %v7548_v6, 0.0 }
 0x6c9   : > { %v7579_v56 = vmax.f32 %v7547_v0, 0.0  ;;  %v10518_v36 = vpop.f32.mrb[72].mxu1 }
 0x6ca   : > { %7613 = vst.msk [vmem:[%s14740_s8 + $0x68] sm:$0xff] %vm7599_vm9, %v7580_v3  ;;  %v7550_v61 = vadd.f32 %v10518_v36, %v14734_v52  ;;  %v7407_v47 = vpop.f32.mrb[73].mxu1 }
 0x6cb   : > { %7612 = vst.msk [vmem:[%s14740_s8 + $0x60] sm:$0xff] %vm7599_vm9, %v7579_v56  ;;  %v7549_v9 = vadd.f32 %v14734_v52, %v7407_v47 }
 0x6cc   : > { %v7582_v37 = vmax.f32 %v7550_v61, 0.0 }
 0x6cd   : > { %v7581_v13 = vmax.f32 %v7549_v9, 0.0  ;;  %v10521_v34 = vpop.f32.mrb[74].mxu1 }
 0x6ce   : > { %7615 = vst.msk [vmem:[%s14740_s8 + $0x78] sm:$0xff] %vm7599_vm9, %v7582_v37  ;;  %v7552_v23 = vadd.f32 %v10521_v34, %v14734_v52  ;;  %v7417_v10 = vpop.f32.mrb[75].mxu1 }
 0x6cf   : > { %7614 = vst.msk [vmem:[%s14740_s8 + $0x70] sm:$0xff] %vm7599_vm9, %v7581_v13  ;;  %v7551_v18 = vadd.f32 %v14734_v52, %v7417_v10 }
 0x6d0   : > { %v7584_v16 = vmax.f32 %v7552_v23, 0.0 }
 0x6d1   : > { %v7583_v55 = vmax.f32 %v7551_v18, 0.0  ;;  %v10524_v58 = vpop.f32.mrb[76].mxu1 }
 0x6d2   : > { %7617 = vst.msk [vmem:[%s14740_s8 + $0x88] sm:$0xff] %vm7599_vm9, %v7584_v16  ;;  %v7554_v53 = vadd.f32 %v10524_v58, %v14734_v52  ;;  %v7427_v19 = vpop.f32.mrb[77].mxu1 }
 0x6d3   : > { %7616 = vst.msk [vmem:[%s14740_s8 + $0x80] sm:$0xff] %vm7599_vm9, %v7583_v55  ;;  %v7553_v45 = vadd.f32 %v14734_v52, %v7427_v19 }
 0x6d4   : > { %v7586_v4 = vmax.f32 %v7554_v53, 0.0 }
 0x6d5   : > { %v7585_v40 = vmax.f32 %v7553_v45, 0.0  ;;  %v10527_v59 = vpop.f32.mrb[78].mxu1 }
 0x6d6   : > { %7619 = vst.msk [vmem:[%s14740_s8 + $0x98] sm:$0xff] %vm7599_vm9, %v7586_v4  ;;  %v7556_v62 = vadd.f32 %v10527_v59, %v14734_v52  ;;  %v7437_v41 = vpop.f32.mrb[79].mxu1 }
 0x6d7   : > { %7618 = vst.msk [vmem:[%s14740_s8 + $0x90] sm:$0xff] %vm7599_vm9, %v7585_v40  ;;  %v7555_v26 = vadd.f32 %v14734_v52, %v7437_v41 }
 0x6d8   : > { %v7588_v49 = vmax.f32 %v7556_v62, 0.0 }
 0x6d9   : > { %v7587_v5 = vmax.f32 %v7555_v26, 0.0  ;;  %v10530_v15 = vpop.f32.mrb[80].mxu1 }
 0x6da   : > { %7621 = vst.msk [vmem:[%s14740_s8 + $0xa8] sm:$0xff] %vm7599_vm9, %v7588_v49  ;;  %v7558_v32 = vadd.f32 %v10530_v15, %v14734_v52  ;;  %v7447_v25 = vpop.f32.mrb[81].mxu1 }
 0x6db   : > { %7620 = vst.msk [vmem:[%s14740_s8 + $0xa0] sm:$0xff] %vm7599_vm9, %v7587_v5  ;;  %v7557_v48 = vadd.f32 %v14734_v52, %v7447_v25 }
 0x6dc   : > { %v7590_v50 = vmax.f32 %v7558_v32, 0.0 }
 0x6dd   : > { %v7589_v12 = vmax.f32 %v7557_v48, 0.0  ;;  %v10533_v27 = vpop.f32.mrb[82].mxu1 }
 0x6de   : > { %7623 = vst.msk [vmem:[%s14740_s8 + $0xb8] sm:$0xff] %vm7599_vm9, %v7590_v50  ;;  %v7560_v24 = vadd.f32 %v10533_v27, %v14734_v52  ;;  %v7457_v30 = vpop.f32.mrb[83].mxu1 }
 0x6df   : > { %7622 = vst.msk [vmem:[%s14740_s8 + $0xb0] sm:$0xff] %vm7599_vm9, %v7589_v12  ;;  %v7559_v60 = vadd.f32 %v14734_v52, %v7457_v30 }
 0x6e0   : > { %v7592_v39 = vmax.f32 %v7560_v24, 0.0 }
 0x6e1   : > { %v7591_v63 = vmax.f32 %v7559_v60, 0.0  ;;  %v10536_v54 = vpop.f32.mrb[84].mxu1 }
 0x6e2   : > { %7625 = vst.msk [vmem:[%s14740_s8 + $0xc8] sm:$0xff] %vm7599_vm9, %v7592_v39  ;;  %v7562_v43 = vadd.f32 %v10536_v54, %v14734_v52  ;;  %v7467_v1 = vpop.f32.mrb[85].mxu1 }
 0x6e3   : > { %7624 = vst.msk [vmem:[%s14740_s8 + $0xc0] sm:$0xff] %vm7599_vm9, %v7591_v63  ;;  %v7561_v8 = vadd.f32 %v14734_v52, %v7467_v1 }
 0x6e4   : > { %v7594_v2 = vmax.f32 %v7562_v43, 0.0 }
 0x6e5   : > { %v7593_v21 = vmax.f32 %v7561_v8, 0.0  ;;  %v10539_v42 = vpop.f32.mrb[86].mxu1 }
 0x6e6   : > { %7627 = vst.msk [vmem:[%s14740_s8 + $0xd8] sm:$0xff] %vm7599_vm9, %v7594_v2  ;;  %v7564_v11 = vadd.f32 %v10539_v42, %v14734_v52  ;;  %v7477_v17 = vpop.f32.mrb[87].mxu1 }
 0x6e7   : > { %7626 = vst.msk [vmem:[%s14740_s8 + $0xd0] sm:$0xff] %vm7599_vm9, %v7593_v21  ;;  %v7563_v33 = vadd.f32 %v14734_v52, %v7477_v17 }
 0x6e8   : > { %v7596_v35 = vmax.f32 %v7564_v11, 0.0 }
 0x6e9   : > { %v7595_v28 = vmax.f32 %v7563_v33, 0.0  ;;  %v10542_v57 = vpop.f32.mrb[88].mxu1 }
 0x6ea   : > { %7629 = vst.msk [vmem:[%s14740_s8 + $0xe8] sm:$0xff] %vm7599_vm9, %v7596_v35  ;;  %v7566_v14 = vadd.f32 %v10542_v57, %v14734_v52  ;;  %v7487_v51 = vpop.f32.mrb[89].mxu1 }
 0x6eb   : > { %7628 = vst.msk [vmem:[%s14740_s8 + $0xe0] sm:$0xff] %vm7599_vm9, %v7595_v28  ;;  %v7565_v7 = vadd.f32 %v14734_v52, %v7487_v51 }
 0x6ec   : > { %v7598_v22 = vmax.f32 %v7566_v14, 0.0 }
 0x6ed   : > { %v7597_v29 = vmax.f32 %v7565_v7, 0.0 }
 0x6ee   : > { %7631 = vst.msk [vmem:[%s14740_s8 + $0xf8] sm:$0xff] %vm7599_vm9, %v7598_v22 }
 0x6ef   : > { %7630 = vst.msk [vmem:[%s14740_s8 + $0xf0] sm:$0xff] %vm7599_vm9, %v7597_v29 }
 0x6f0   : > { %11312 = shalt.err (!%p11309_p3)
}
 0x6f1   : > { %s11313_s23 = scalar_lea.hbm %s14837_s13, 4096  ;;  %s11317_s30 = scalar_lea.hbm %s14893_s5, 8192 }
 0x6f2   : > { %p11314_p4 = scmp.ne.s32.totalorder %s14837_s13, %s11313_s23  ;;  %p11318_p9 = scmp.lt.u32.totalorder %s14837_s13, %s14893_s5 }
 0x6f3   : > { %p11319_p10 = scmp.lt.u32.totalorder %s11317_s30, %s11313_s23  ;;  %p11321_p12 = scmp.lt.u32.totalorder %s11313_s23, %s14837_s13 }
 0x6f4   : > { %p11315_p7 = pnand %p11314_p4, %p11435_p5 }
 0x6f5   : > { %p11320_p11 = por %p11319_p10, %p11318_p9 }
 0x6f6   : > { %p11316_p8 = pneg %p11315_p7 }
 0x6f7   : > { %p11322_p13 = por %p11321_p12, %p11320_p11 }
 0x6f9   : > { %p11323_p0 = pnand %p11322_p13, %p11316_p8 }
 0x6fb   : > { %11326 = shalt.err (!%p11323_p0)
}
 0x6fc   : > { %s11365_s8 = smov 128   ;;  %s11366_s9 = smov 8  }
 0x6fd   : > { %11205 = dma.vmem_to_hbm [thread:$0]  (%p11435_p5), %s14839_s10, 4096, %s14837_s13, %s14847_s22, %s11365_s8, %s11365_s8, %s11366_s9  }
 0x6fe PF: > { %p11211_p1 = scmp.ge.s32.totalorder %s11361_s21, 2  ;;  %s7661_s11 = sand.u32 1, %s11349_s18  }
 0x6ff   : > { %s7662_s12 = scalar_lea.sflag [#allocation4], %s7661_s11 }
 0x700   : > { %p11208_p2 = pnand %p11211_p1, %p11439_p6 }
 0x702   : > { %11344 = dma.done.wait (!%p11208_p2), %s7662_s12, 4096  }
 0x703   : > { %11346 = vsyncadd (!%p11208_p2), %s7662_s12, 4294963200  ;;  %p15_p3 = scmp.ge.s32.totalorder %s11422_s24, 4   ;;  %s15632_s18 = smov %s11353_s19 }
 0x704   : > { %s15633_s19 = smov %s11357_s20  ;;  %s15634_s20 = smov %s11433_s27 }
 0x705   : > { %s15635_s21 = smov %s11422_s24  ;;  %17 = sbr.rel (!%p15_p3) target bundleno = 3 (0x3), region = 92 }
 0x70c   :  { %7667 = vsyncpa [#allocation4], 1 }
 0x70d   :  { %7669 = vsyncpa [#allocation4 + $0x1], 1 }

</bundles_post_ra>
